<compile_context>
chip_gen: v7x
topology: tpu7x:2x2x1
jax: 0.10.0
libtpu: 0.0.40
codegen_flags: <defaults>
</compile_context>

<pallas_src>
import functools

import jax
import jax.numpy as jnp
from jax.experimental import pallas as pl
from jax.experimental.pallas import tpu as pltpu


# ---------------- synthetic hyper-parameters (Params stand-in) --------------
class Params:
    mBase = "alex_3_1"         # AlexNet-like base net, 3 layers, width 1
    mNormMode = "normUnit"
    mFeatDist = "L2"
    mIgnoreLayers = ()
    mLinInit = 0.1
    mLinDropout = False        # -> avgLayer is just the 1x1x1 Conv3d (no bias)


# TODO(synk): the AlexNetLike / MultiScaleNet source is not part of
# distance_model.py; a deterministic 3-layer Conv3d+ReLU AlexNet-like stack
# (kernel 3, strides [2, 2, 1], padding 1) stands in for the base network.
BASE_CHANNELS = (16, 32, 32)
BASE_STRIDES = (2, 2, 1)
BASE_KERNEL = 3
BASE_PAD = 1


def _round_up(x, m):
    return ((x + m - 1) // m) * m


# ----------------------------- conv kernel ----------------------------------
def _conv_mm_kernel(p_ref, w_ref, b_ref, o_ref):
    # One M tile of the im2col conv: (Cout, K) x (K, TILE_M) in the MXU's native
    # orientation, f32 accumulation, bias + ReLU in f32, lane-dense bf16 store.
    acc = jnp.dot(w_ref[...], p_ref[...], preferred_element_type=jnp.float32)
    acc = acc + b_ref[...]                                   # (Cout, 1) broadcast
    o_ref[...] = jnp.maximum(acc, 0.0).astype(o_ref.dtype)


def conv3d_relu_cm(x, w, b, stride, pad, tile_m=2048):
    """Channel-major Conv3d + ReLU via K-major im2col matmul.

    x: (Cin, N, D, H, W) bf16; w: (Cout, Cin, k, k, k) f32; b: (Cout,) f32.
    Returns (Cout, N, Do, Ho, Wo) bf16 -- directly consumable by the next layer
    and by the distance kernels (no HBM transpose anywhere).
    """
    Cin, N, D, H, W = x.shape
    Cout, _, k, _, _ = w.shape
    Do = (D + 2 * pad - k) // stride + 1
    Ho = (H + 2 * pad - k) // stride + 1
    Wo = (W + 2 * pad - k) // stride + 1
    K = Cin * k * k * k
    M = N * Do * Ho * Wo

    xp = jnp.pad(x, ((0, 0), (0, 0), (pad, pad), (pad, pad), (pad, pad)))

    # K-major bf16 im2col: stack the k^3 channel-major shifted views straight into the
    # (K, M) layout the MXU consumes; K ordering (ci, dz, dy, dx) matches
    # w.reshape(Cout, K), so no transpose is needed anywhere.
    # TODO(synk): fuse this gather into the kernel (haloed slab DMA + in-VMEM patch
    # build) to remove the remaining patches materialization in HBM.
    cols = []
    for dz in range(k):
        for dy in range(k):
            for dx in range(k):
                cols.append(
                    xp[:, :,
                       dz:dz + Do * stride:stride,
                       dy:dy + Ho * stride:stride,
                       dx:dx + Wo * stride:stride])
    patches = jnp.stack(cols, axis=1).reshape(K, M)          # (K, M) bf16

    wmat = w.reshape(Cout, K).astype(jnp.bfloat16)

    TILE_M = min(tile_m, _round_up(M, 128))
    M_pad = _round_up(M, TILE_M)
    if M_pad != M:
        patches = jnp.pad(patches, ((0, 0), (0, M_pad - M)))
    grid_m = M_pad // TILE_M

    out = pl.pallas_call(
        _conv_mm_kernel,
        out_shape=jax.ShapeDtypeStruct((Cout, M_pad), jnp.bfloat16),
        grid=(grid_m,),
        in_specs=[
            pl.BlockSpec((K, TILE_M), lambda i: (0, i)),
            pl.BlockSpec((Cout, K), lambda i: (0, 0)),
            pl.BlockSpec((Cout, 1), lambda i: (0, 0)),
        ],
        out_specs=pl.BlockSpec((Cout, TILE_M), lambda i: (0, i)),
        compiler_params=pltpu.CompilerParams(
            dimension_semantics=("parallel",)),
    )(patches, wmat, b.reshape(Cout, 1).astype(jnp.float32))

    if M_pad != M:
        out = out[:, :M]   # padded M columns hold relu(bias); never reduced, drop
    return out.reshape(Cout, N, Do, Ho, Wo)


# ------------------------- layer-distance kernel ----------------------------
def _layer_distance_kernel(fa_ref, fb_ref, w_ref, o_ref, *, inv_s):
    # One (pair, spatial-tile) step, fully fused: bf16 -> f32 upcast, normUnit
    # normalization via a single rsqrt on the squared norm, L2 feature diff, clamped
    # 1x1x1 avg-conv as a channel-weighted sum, spatial mean accumulated directly
    # into the resident per-pair output block.
    si = pl.program_id(1)

    @pl.when(si == 0)
    def _():
        o_ref[...] = jnp.zeros_like(o_ref)

    eps = 1e-10
    fa = fa_ref[...].astype(jnp.float32)                     # (C, TILE_S)
    fb = fb_ref[...].astype(jnp.float32)
    inv_na = jax.lax.rsqrt(jnp.sum(fa * fa, axis=0, keepdims=True) + eps)
    inv_nb = jax.lax.rsqrt(jnp.sum(fb * fb, axis=0, keepdims=True) + eps)
    diff = (fb * inv_nb - fa * inv_na) ** 2                  # mFeatDist == 'L2'
    partial = jnp.sum(diff * w_ref[...]) * inv_s             # w: (C, 1) broadcast
    o_ref[...] = o_ref[...] + partial


def layer_distance(fa, fb, w_avg):
    """fa, fb: (C, P, S) bf16 features; w_avg: (C,) clamped avg weights -> (P,) f32."""
    C, P, S = fa.shape

    # Zero-pad spatial to a multiple of 128 so lanes stay dense and tiling works at
    # any volume (padded columns are all-zero -> contribute 0); mean still uses 1/S.
    S_pad = _round_up(S, 128)
    if S_pad != S:
        fa = jnp.pad(fa, ((0, 0), (0, 0), (0, S_pad - S)))
        fb = jnp.pad(fb, ((0, 0), (0, 0), (0, S_pad - S)))

    # Flatten pairs into the lane axis: sublanes carry C (multiple of 8), lanes are
    # dense, and every pair owns a whole number of spatial tiles.
    fa2 = fa.reshape(C, P * S_pad)
    fb2 = fb.reshape(C, P * S_pad)

    TILE_S = next(t for t in (2048, 1024, 512, 256, 128) if S_pad % t == 0)
    nst = S_pad // TILE_S

    kernel = functools.partial(_layer_distance_kernel, inv_s=1.0 / S)
    out = pl.pallas_call(
        kernel,
        out_shape=jax.ShapeDtypeStruct((P, 8, 128), jnp.float32),
        grid=(P, nst),                                       # pairs x spatial tiles
        in_specs=[
            pl.BlockSpec((C, TILE_S), lambda p, si: (0, p * nst + si)),
            pl.BlockSpec((C, TILE_S), lambda p, si: (0, p * nst + si)),
            pl.BlockSpec((C, 1), lambda p, si: (0, 0)),
        ],
        # One resident (1, 8, 128) accumulator block per pair: distinct blocks per
        # "parallel" pair step (megacore-safe on v7x) and legally tiled on the last
        # two dims; it holds the broadcast scalar distance.
        out_specs=pl.BlockSpec((1, 8, 128), lambda p, si: (p, 0, 0)),
        compiler_params=pltpu.CompilerParams(
            dimension_semantics=("parallel", "arbitrary")),
    )(fa2, fb2, w_avg.reshape(C, 1))
    return out[:, 0, 0]


# -------------------- parameters (deterministic init) -----------------------
def init_params(key, first_channels=3, lin_init=Params.mLinInit):
    params = {"base": [], "avg": []}
    cin = first_channels
    for cout in BASE_CHANNELS:
        key, kw = jax.random.split(key)
        w = 0.05 * jax.random.normal(
            kw, (cout, cin, BASE_KERNEL, BASE_KERNEL, BASE_KERNEL), jnp.float32)
        b = jnp.zeros((cout,), jnp.float32)
        params["base"].append((w, b))
        # avgLayer: Conv3d(cout, 1, 1, bias=False), weight filled with mLinInit
        params["avg"].append(jnp.full((cout,), lin_init, jnp.float32))
        cin = cout
    return params


def basenet_forward(base_params, x_cm):
    """x_cm: (C, N, D, H, W) bf16 channel-major. Returns list of (Cout, N, S) bf16."""
    feats = []
    h = x_cm
    for (w, b), stride in zip(base_params, BASE_STRIDES):
        h = conv3d_relu_cm(h, w, b, stride, BASE_PAD)        # (Cout, N, Do, Ho, Wo)
        feats.append(h.reshape(h.shape[0], h.shape[1], -1))  # free reshape
    return feats


# ---------------------- DistanceModel.forward equivalent --------------------
@jax.jit
def _forward_impl(params, full, idxA, idxB):
    B, _, D, H, W, C = full.shape
    dataA = jnp.take(full, idxA, axis=1).reshape(-1, D, H, W, C)
    dataB = jnp.take(full, idxB, axis=1).reshape(-1, D, H, W, C)
    P = dataA.shape[0]

    # clampWeights(): avg-layer conv weights clamped to >= 0
    avg_w = [jnp.maximum(w, 0.0) for w in params["avg"]]

    # Both branches through the base net in one pass; single permute to channel-major
    # (== torch's NCDHW permute), bf16 activations from here on.
    dataAB = jnp.concatenate([dataA, dataB], axis=0)         # (2P, D, H, W, C)
    x_cm = jnp.transpose(dataAB, (4, 0, 1, 2, 3)).astype(jnp.bfloat16)
    feats = basenet_forward(params["base"], x_cm)            # list of (Cout, 2P, S)

    result = jnp.zeros((P,), jnp.float32)                    # torch.tensor([[0.]]) + bcast
    for i, f in enumerate(feats):
        if i in Params.mIgnoreLayers:
            continue
        result = result + layer_distance(f[:, :P, :], f[:, P:, :], avg_w[i])

    if Params.mFeatDist == "L2Sqrt":
        result = jnp.sqrt(result)
    return result.reshape(B, -1)


def distance_model_forward(params, sample):
    full = sample["data"]                                    # (B, Snum, D, H, W, C)
    idxA = sample["indexA"][0, sample["idxMin"]:sample["idxMax"]].astype(jnp.int32)
    idxB = sample["indexB"][0, sample["idxMin"]:sample["idxMax"]].astype(jnp.int32)
    return _forward_impl(params, full, idxA, idxB)


# ---------------------------------- main -------------------------------------
if __name__ == "__main__":
    key = jax.random.PRNGKey(0)
    key, kd = jax.random.split(key)

    B, Snum, D, H, W, C = 1, 8, 16, 16, 16, 3
    n_pairs = 4
    data = jax.random.uniform(kd, (B, Snum, D, H, W, C), jnp.float32)

    sample = {
        "data": data,
        "indexA": jnp.arange(n_pairs, dtype=jnp.int32)[None, :],
        "indexB": (jnp.arange(n_pairs, dtype=jnp.int32) + n_pairs)[None, :],
        "idxMin": 0,
        "idxMax": n_pairs,
    }

    params = init_params(key)
    out = distance_model_forward(params, sample)
    out = jax.block_until_ready(out)
    assert out.shape == (B, n_pairs) and out.dtype == jnp.float32
    assert bool(jnp.all(jnp.isfinite(out)))
    print("KERNEL_OK")
</pallas_src>

<mosaic_0001>
module attributes {stable_mosaic.version = 11 : i64} {
  func.func @_conv_mm_kernel(%arg0: i32, %arg1: memref<81x2048xbf16, #tpu.memory_space<vmem>>, %arg2: memref<16x81xbf16, #tpu.memory_space<vmem>>, %arg3: memref<16x1xf32, #tpu.memory_space<vmem>>, %arg4: memref<16x2048xbf16, #tpu.memory_space<vmem>>) attributes {dimension_semantics = [#tpu.dimension_semantics<parallel>], iteration_bounds = array<i64: 2>, scalar_prefetch = 0 : i64, scratch_operands = 0 : i64, tpu.core_type = #tpu.core_type<tc>, window_params = [{transform_indices = @transform_0, window_bounds = array<i64: 81, 2048>}, {pipeline_mode = #tpu.pipeline_mode<synchronous>, transform_indices = @transform_1, window_bounds = array<i64: 16, 81>}, {pipeline_mode = #tpu.pipeline_mode<synchronous>, transform_indices = @transform_2, window_bounds = array<i64: 16, 1>}, {transform_indices = @transform_3, window_bounds = array<i64: 16, 2048>}]} {
    %c0 = arith.constant 0 : index
    %c0_0 = arith.constant 0 : index
    %0 = vector.load %arg2[%c0, %c0_0] : memref<16x81xbf16, #tpu.memory_space<vmem>>, vector<16x81xbf16>
    %c0_1 = arith.constant 0 : index
    %c0_2 = arith.constant 0 : index
    %1 = vector.load %arg1[%c0_1, %c0_2] : memref<81x2048xbf16, #tpu.memory_space<vmem>>, vector<81x2048xbf16>
    %cst = arith.constant dense<0.000000e+00> : vector<16x2048xf32>
    %2 = tpu.matmul %0, %1, %cst {dimension_numbers = #tpu.dot_dimension_numbers<[1], [0], [0], [1], [0, 0, 1, 1], [], []>} : vector<16x81xbf16>, vector<81x2048xbf16>, vector<16x2048xf32> -> vector<16x2048xf32>
    %c0_3 = arith.constant 0 : index
    %c0_4 = arith.constant 0 : index
    %3 = vector.load %arg3[%c0_3, %c0_4] : memref<16x1xf32, #tpu.memory_space<vmem>>, vector<16x1xf32>
    %4 = vector.broadcast %3 : vector<16x1xf32> to vector<16x2048xf32>
    %5 = arith.addf %2, %4 : vector<16x2048xf32>
    %cst_5 = arith.constant 0.000000e+00 : f32
    %6 = vector.broadcast %cst_5 : f32 to vector<16x2048xf32>
    %7 = arith.maximumf %5, %6 : vector<16x2048xf32>
    %8 = arith.truncf %7 : vector<16x2048xf32> to vector<16x2048xbf16>
    %c0_6 = arith.constant 0 : index
    %c0_7 = arith.constant 0 : index
    %9 = vector.load %arg4[%c0_6, %c0_7] : memref<16x2048xbf16, #tpu.memory_space<vmem>>, vector<16x2048xbf16>
    tpu.vector_store %arg4[%c0_6, %c0_7], %8 {strides = array<i32>} : memref<16x2048xbf16, #tpu.memory_space<vmem>>, vector<16x2048xbf16>,
    return
  }
  func.func @transform_0(%arg0: i32) -> (i32, i32) {
    %c0_i32 = arith.constant 0 : i32
    %c0_i32_0 = arith.constant 0 : i32
    return %c0_i32, %arg0 : i32, i32
  }
  func.func @transform_1(%arg0: i32) -> (i32, i32) {
    %c0_i32 = arith.constant 0 : i32
    %c0_i32_0 = arith.constant 0 : i32
    %c0_i32_1 = arith.constant 0 : i32
    return %c0_i32, %c0_i32_0 : i32, i32
  }
  func.func @transform_2(%arg0: i32) -> (i32, i32) {
    %c0_i32 = arith.constant 0 : i32
    %c0_i32_0 = arith.constant 0 : i32
    %c0_i32_1 = arith.constant 0 : i32
    return %c0_i32, %c0_i32_0 : i32, i32
  }
  func.func @transform_3(%arg0: i32) -> (i32, i32) {
    %c0_i32 = arith.constant 0 : i32
    %c0_i32_0 = arith.constant 0 : i32
    return %c0_i32, %arg0 : i32, i32
  }
}

module attributes {stable_mosaic.version = 11 : i64} {
  func.func @_layer_distance_kernel(%arg0: i32, %arg1: i32, %arg2: memref<16x512xbf16, #tpu.memory_space<vmem>>, %arg3: memref<16x512xbf16, #tpu.memory_space<vmem>>, %arg4: memref<16x1xf32, #tpu.memory_space<vmem>>, %arg5: memref<1x8x128xf32, #tpu.memory_space<vmem>>) attributes {dimension_semantics = [#tpu.dimension_semantics<parallel>, #tpu.dimension_semantics<arbitrary>], iteration_bounds = array<i64: 4, 1>, scalar_prefetch = 0 : i64, scratch_operands = 0 : i64, tpu.core_type = #tpu.core_type<tc>, window_params = [{transform_indices = @transform_0, window_bounds = array<i64: 16, 512>}, {transform_indices = @transform_1, window_bounds = array<i64: 16, 512>}, {pipeline_mode = #tpu.pipeline_mode<synchronous>, transform_indices = @transform_2, window_bounds = array<i64: 16, 1>}, {transform_indices = @transform_3, window_bounds = array<i64: 1, 8, 128>}]} {
    %c0_i32 = arith.constant 0 : i32
    %0 = arith.cmpi eq, %arg1, %c0_i32 : i32
    %1 = arith.extui %0 : i1 to i32
    %c0_i32_0 = arith.constant 0 : i32
    %2 = arith.cmpi ne, %1, %c0_i32_0 : i32
    scf.if %2 {
      %cst_17 = arith.constant 0.000000e+00 : f32
      %37 = vector.broadcast %cst_17 : f32 to vector<1x8x128xf32>
      %c0_18 = arith.constant 0 : index
      %c0_19 = arith.constant 0 : index
      %c0_20 = arith.constant 0 : index
      %38 = vector.load %arg5[%c0_18, %c0_19, %c0_20] : memref<1x8x128xf32, #tpu.memory_space<vmem>>, vector<1x8x128xf32>
      tpu.vector_store %arg5[%c0_18, %c0_19, %c0_20], %37 {strides = array<i32>} : memref<1x8x128xf32, #tpu.memory_space<vmem>>, vector<1x8x128xf32>,
    } else {
    }
    %c0 = arith.constant 0 : index
    %c0_1 = arith.constant 0 : index
    %3 = vector.load %arg2[%c0, %c0_1] : memref<16x512xbf16, #tpu.memory_space<vmem>>, vector<16x512xbf16>
    %4 = arith.extf %3 : vector<16x512xbf16> to vector<16x512xf32>
    %c0_2 = arith.constant 0 : index
    %c0_3 = arith.constant 0 : index
    %5 = vector.load %arg3[%c0_2, %c0_3] : memref<16x512xbf16, #tpu.memory_space<vmem>>, vector<16x512xbf16>
    %6 = arith.extf %5 : vector<16x512xbf16> to vector<16x512xf32>
    %7 = arith.mulf %4, %4 : vector<16x512xf32>
    %cst = arith.constant dense<0.000000e+00> : vector<512xf32>
    %8 = vector.multi_reduction <add>, %7, %cst [0] : vector<16x512xf32> to vector<512xf32>
    %9 = vector.shape_cast %8 : vector<512xf32> to vector<1x512xf32>
    %cst_4 = arith.constant 1.000000e-10 : f32
    %10 = vector.broadcast %cst_4 : f32 to vector<1x512xf32>
    %11 = arith.addf %9, %10 : vector<1x512xf32>
    %12 = math.rsqrt %11 : vector<1x512xf32>
    %13 = arith.mulf %6, %6 : vector<16x512xf32>
    %cst_5 = arith.constant dense<0.000000e+00> : vector<512xf32>
    %14 = vector.multi_reduction <add>, %13, %cst_5 [0] : vector<16x512xf32> to vector<512xf32>
    %15 = vector.shape_cast %14 : vector<512xf32> to vector<1x512xf32>
    %cst_6 = arith.constant 1.000000e-10 : f32
    %16 = vector.broadcast %cst_6 : f32 to vector<1x512xf32>
    %17 = arith.addf %15, %16 : vector<1x512xf32>
    %18 = math.rsqrt %17 : vector<1x512xf32>
    %19 = vector.broadcast %18 : vector<1x512xf32> to vector<16x512xf32>
    %20 = arith.mulf %6, %19 : vector<16x512xf32>
    %21 = vector.broadcast %12 : vector<1x512xf32> to vector<16x512xf32>
    %22 = arith.mulf %4, %21 : vector<16x512xf32>
    %23 = arith.subf %20, %22 : vector<16x512xf32>
    %24 = arith.mulf %23, %23 : vector<16x512xf32>
    %c0_7 = arith.constant 0 : index
    %c0_8 = arith.constant 0 : index
    %25 = vector.load %arg4[%c0_7, %c0_8] : memref<16x1xf32, #tpu.memory_space<vmem>>, vector<16x1xf32>
    %26 = vector.broadcast %25 : vector<16x1xf32> to vector<16x512xf32>
    %27 = arith.mulf %24, %26 : vector<16x512xf32>
    %28 = vector.shape_cast %27 : vector<16x512xf32> to vector<1x16x512xf32>
    %cst_9 = arith.constant dense<0.000000e+00> : vector<1xf32>
    %29 = vector.multi_reduction <add>, %28, %cst_9 [1, 2] : vector<1x16x512xf32> to vector<1xf32>
    %30 = vector.shape_cast %29 : vector<1xf32> to vector<1x1x1xf32>
    %31 = vector.extract %30[0, 0, 0] : f32 from vector<1x1x1xf32>
    %cst_10 = arith.constant 0.001953125 : f32
    %32 = arith.mulf %31, %cst_10 : f32
    %c0_11 = arith.constant 0 : index
    %c0_12 = arith.constant 0 : index
    %c0_13 = arith.constant 0 : index
    %33 = vector.load %arg5[%c0_11, %c0_12, %c0_13] : memref<1x8x128xf32, #tpu.memory_space<vmem>>, vector<1x8x128xf32>
    %34 = vector.broadcast %32 : f32 to vector<1x8x128xf32>
    %35 = arith.addf %33, %34 : vector<1x8x128xf32>
    %c0_14 = arith.constant 0 : index
    %c0_15 = arith.constant 0 : index
    %c0_16 = arith.constant 0 : index
    %36 = vector.load %arg5[%c0_14, %c0_15, %c0_16] : memref<1x8x128xf32, #tpu.memory_space<vmem>>, vector<1x8x128xf32>
    tpu.vector_store %arg5[%c0_14, %c0_15, %c0_16], %35 {strides = array<i32>} : memref<1x8x128xf32, #tpu.memory_space<vmem>>, vector<1x8x128xf32>,
    return
  }
  func.func @transform_0(%arg0: i32, %arg1: i32) -> (i32, i32) {
    %c1_i32 = arith.constant 1 : i32
    %0 = arith.muli %arg0, %c1_i32 : i32
    %1 = arith.addi %0, %arg1 : i32
    %c0_i32 = arith.constant 0 : i32
    %c0_i32_0 = arith.constant 0 : i32
    return %c0_i32, %1 : i32, i32
  }
  func.func @transform_1(%arg0: i32, %arg1: i32) -> (i32, i32) {
    %c1_i32 = arith.constant 1 : i32
    %0 = arith.muli %arg0, %c1_i32 : i32
    %1 = arith.addi %0, %arg1 : i32
    %c0_i32 = arith.constant 0 : i32
    %c0_i32_0 = arith.constant 0 : i32
    return %c0_i32, %1 : i32, i32
  }
  func.func @transform_2(%arg0: i32, %arg1: i32) -> (i32, i32) {
    %c0_i32 = arith.constant 0 : i32
    %c0_i32_0 = arith.constant 0 : i32
    %c0_i32_1 = arith.constant 0 : i32
    return %c0_i32, %c0_i32_0 : i32, i32
  }
  func.func @transform_3(%arg0: i32, %arg1: i32) -> (i32, i32, i32) {
    %c0_i32 = arith.constant 0 : i32
    %c0_i32_0 = arith.constant 0 : i32
    %c0_i32_1 = arith.constant 0 : i32
    return %arg0, %c0_i32, %c0_i32_0 : i32, i32, i32
  }
}

module attributes {stable_mosaic.version = 11 : i64} {
  func.func @_conv_mm_kernel(%arg0: i32, %arg1: memref<432x512xbf16, #tpu.memory_space<vmem>>, %arg2: memref<32x432xbf16, #tpu.memory_space<vmem>>, %arg3: memref<32x1xf32, #tpu.memory_space<vmem>>, %arg4: memref<32x512xbf16, #tpu.memory_space<vmem>>) attributes {dimension_semantics = [#tpu.dimension_semantics<parallel>], iteration_bounds = array<i64: 1>, scalar_prefetch = 0 : i64, scratch_operands = 0 : i64, tpu.core_type = #tpu.core_type<tc>, window_params = [{transform_indices = @transform_0, window_bounds = array<i64: 432, 512>}, {pipeline_mode = #tpu.pipeline_mode<synchronous>, transform_indices = @transform_1, window_bounds = array<i64: 32, 432>}, {pipeline_mode = #tpu.pipeline_mode<synchronous>, transform_indices = @transform_2, window_bounds = array<i64: 32, 1>}, {transform_indices = @transform_3, window_bounds = array<i64: 32, 512>}]} {
    %c0 = arith.constant 0 : index
    %c0_0 = arith.constant 0 : index
    %0 = vector.load %arg2[%c0, %c0_0] : memref<32x432xbf16, #tpu.memory_space<vmem>>, vector<32x432xbf16>
    %c0_1 = arith.constant 0 : index
    %c0_2 = arith.constant 0 : index
    %1 = vector.load %arg1[%c0_1, %c0_2] : memref<432x512xbf16, #tpu.memory_space<vmem>>, vector<432x512xbf16>
    %cst = arith.constant dense<0.000000e+00> : vector<32x512xf32>
    %2 = tpu.matmul %0, %1, %cst {dimension_numbers = #tpu.dot_dimension_numbers<[1], [0], [0], [1], [0, 0, 1, 1], [], []>} : vector<32x432xbf16>, vector<432x512xbf16>, vector<32x512xf32> -> vector<32x512xf32>
    %c0_3 = arith.constant 0 : index
    %c0_4 = arith.constant 0 : index
    %3 = vector.load %arg3[%c0_3, %c0_4] : memref<32x1xf32, #tpu.memory_space<vmem>>, vector<32x1xf32>
    %4 = vector.broadcast %3 : vector<32x1xf32> to vector<32x512xf32>
    %5 = arith.addf %2, %4 : vector<32x512xf32>
    %cst_5 = arith.constant 0.000000e+00 : f32
    %6 = vector.broadcast %cst_5 : f32 to vector<32x512xf32>
    %7 = arith.maximumf %5, %6 : vector<32x512xf32>
    %8 = arith.truncf %7 : vector<32x512xf32> to vector<32x512xbf16>
    %c0_6 = arith.constant 0 : index
    %c0_7 = arith.constant 0 : index
    %9 = vector.load %arg4[%c0_6, %c0_7] : memref<32x512xbf16, #tpu.memory_space<vmem>>, vector<32x512xbf16>
    tpu.vector_store %arg4[%c0_6, %c0_7], %8 {strides = array<i32>} : memref<32x512xbf16, #tpu.memory_space<vmem>>, vector<32x512xbf16>,
    return
  }
  func.func @transform_0(%arg0: i32) -> (i32, i32) {
    %c0_i32 = arith.constant 0 : i32
    %c0_i32_0 = arith.constant 0 : i32
    return %c0_i32, %arg0 : i32, i32
  }
  func.func @transform_1(%arg0: i32) -> (i32, i32) {
    %c0_i32 = arith.constant 0 : i32
    %c0_i32_0 = arith.constant 0 : i32
    %c0_i32_1 = arith.constant 0 : i32
    return %c0_i32, %c0_i32_0 : i32, i32
  }
  func.func @transform_2(%arg0: i32) -> (i32, i32) {
    %c0_i32 = arith.constant 0 : i32
    %c0_i32_0 = arith.constant 0 : i32
    %c0_i32_1 = arith.constant 0 : i32
    return %c0_i32, %c0_i32_0 : i32, i32
  }
  func.func @transform_3(%arg0: i32) -> (i32, i32) {
    %c0_i32 = arith.constant 0 : i32
    %c0_i32_0 = arith.constant 0 : i32
    return %c0_i32, %arg0 : i32, i32
  }
}

module attributes {stable_mosaic.version = 11 : i64} {
  func.func @_layer_distance_kernel(%arg0: i32, %arg1: i32, %arg2: memref<32x128xbf16, #tpu.memory_space<vmem>>, %arg3: memref<32x128xbf16, #tpu.memory_space<vmem>>, %arg4: memref<32x1xf32, #tpu.memory_space<vmem>>, %arg5: memref<1x8x128xf32, #tpu.memory_space<vmem>>) attributes {dimension_semantics = [#tpu.dimension_semantics<parallel>, #tpu.dimension_semantics<arbitrary>], iteration_bounds = array<i64: 4, 1>, scalar_prefetch = 0 : i64, scratch_operands = 0 : i64, tpu.core_type = #tpu.core_type<tc>, window_params = [{transform_indices = @transform_0, window_bounds = array<i64: 32, 128>}, {transform_indices = @transform_1, window_bounds = array<i64: 32, 128>}, {pipeline_mode = #tpu.pipeline_mode<synchronous>, transform_indices = @transform_2, window_bounds = array<i64: 32, 1>}, {transform_indices = @transform_3, window_bounds = array<i64: 1, 8, 128>}]} {
    %c0_i32 = arith.constant 0 : i32
    %0 = arith.cmpi eq, %arg1, %c0_i32 : i32
    %1 = arith.extui %0 : i1 to i32
    %c0_i32_0 = arith.constant 0 : i32
    %2 = arith.cmpi ne, %1, %c0_i32_0 : i32
    scf.if %2 {
      %cst_17 = arith.constant 0.000000e+00 : f32
      %37 = vector.broadcast %cst_17 : f32 to vector<1x8x128xf32>
      %c0_18 = arith.constant 0 : index
      %c0_19 = arith.constant 0 : index
      %c0_20 = arith.constant 0 : index
      %38 = vector.load %arg5[%c0_18, %c0_19, %c0_20] : memref<1x8x128xf32, #tpu.memory_space<vmem>>, vector<1x8x128xf32>
      tpu.vector_store %arg5[%c0_18, %c0_19, %c0_20], %37 {strides = array<i32>} : memref<1x8x128xf32, #tpu.memory_space<vmem>>, vector<1x8x128xf32>,
    } else {
    }
    %c0 = arith.constant 0 : index
    %c0_1 = arith.constant 0 : index
    %3 = vector.load %arg2[%c0, %c0_1] : memref<32x128xbf16, #tpu.memory_space<vmem>>, vector<32x128xbf16>
    %4 = arith.extf %3 : vector<32x128xbf16> to vector<32x128xf32>
    %c0_2 = arith.constant 0 : index
    %c0_3 = arith.constant 0 : index
    %5 = vector.load %arg3[%c0_2, %c0_3] : memref<32x128xbf16, #tpu.memory_space<vmem>>, vector<32x128xbf16>
    %6 = arith.extf %5 : vector<32x128xbf16> to vector<32x128xf32>
    %7 = arith.mulf %4, %4 : vector<32x128xf32>
    %cst = arith.constant dense<0.000000e+00> : vector<128xf32>
    %8 = vector.multi_reduction <add>, %7, %cst [0] : vector<32x128xf32> to vector<128xf32>
    %9 = vector.shape_cast %8 : vector<128xf32> to vector<1x128xf32>
    %cst_4 = arith.constant 1.000000e-10 : f32
    %10 = vector.broadcast %cst_4 : f32 to vector<1x128xf32>
    %11 = arith.addf %9, %10 : vector<1x128xf32>
    %12 = math.rsqrt %11 : vector<1x128xf32>
    %13 = arith.mulf %6, %6 : vector<32x128xf32>
    %cst_5 = arith.constant dense<0.000000e+00> : vector<128xf32>
    %14 = vector.multi_reduction <add>, %13, %cst_5 [0] : vector<32x128xf32> to vector<128xf32>
    %15 = vector.shape_cast %14 : vector<128xf32> to vector<1x128xf32>
    %cst_6 = arith.constant 1.000000e-10 : f32
    %16 = vector.broadcast %cst_6 : f32 to vector<1x128xf32>
    %17 = arith.addf %15, %16 : vector<1x128xf32>
    %18 = math.rsqrt %17 : vector<1x128xf32>
    %19 = vector.broadcast %18 : vector<1x128xf32> to vector<32x128xf32>
    %20 = arith.mulf %6, %19 : vector<32x128xf32>
    %21 = vector.broadcast %12 : vector<1x128xf32> to vector<32x128xf32>
    %22 = arith.mulf %4, %21 : vector<32x128xf32>
    %23 = arith.subf %20, %22 : vector<32x128xf32>
    %24 = arith.mulf %23, %23 : vector<32x128xf32>
    %c0_7 = arith.constant 0 : index
    %c0_8 = arith.constant 0 : index
    %25 = vector.load %arg4[%c0_7, %c0_8] : memref<32x1xf32, #tpu.memory_space<vmem>>, vector<32x1xf32>
    %26 = vector.broadcast %25 : vector<32x1xf32> to vector<32x128xf32>
    %27 = arith.mulf %24, %26 : vector<32x128xf32>
    %28 = vector.shape_cast %27 : vector<32x128xf32> to vector<1x32x128xf32>
    %cst_9 = arith.constant dense<0.000000e+00> : vector<1xf32>
    %29 = vector.multi_reduction <add>, %28, %cst_9 [1, 2] : vector<1x32x128xf32> to vector<1xf32>
    %30 = vector.shape_cast %29 : vector<1xf32> to vector<1x1x1xf32>
    %31 = vector.extract %30[0, 0, 0] : f32 from vector<1x1x1xf32>
    %cst_10 = arith.constant 1.562500e-02 : f32
    %32 = arith.mulf %31, %cst_10 : f32
    %c0_11 = arith.constant 0 : index
    %c0_12 = arith.constant 0 : index
    %c0_13 = arith.constant 0 : index
    %33 = vector.load %arg5[%c0_11, %c0_12, %c0_13] : memref<1x8x128xf32, #tpu.memory_space<vmem>>, vector<1x8x128xf32>
    %34 = vector.broadcast %32 : f32 to vector<1x8x128xf32>
    %35 = arith.addf %33, %34 : vector<1x8x128xf32>
    %c0_14 = arith.constant 0 : index
    %c0_15 = arith.constant 0 : index
    %c0_16 = arith.constant 0 : index
    %36 = vector.load %arg5[%c0_14, %c0_15, %c0_16] : memref<1x8x128xf32, #tpu.memory_space<vmem>>, vector<1x8x128xf32>
    tpu.vector_store %arg5[%c0_14, %c0_15, %c0_16], %35 {strides = array<i32>} : memref<1x8x128xf32, #tpu.memory_space<vmem>>, vector<1x8x128xf32>,
    return
  }
  func.func @transform_0(%arg0: i32, %arg1: i32) -> (i32, i32) {
    %c1_i32 = arith.constant 1 : i32
    %0 = arith.muli %arg0, %c1_i32 : i32
    %1 = arith.addi %0, %arg1 : i32
    %c0_i32 = arith.constant 0 : i32
    %c0_i32_0 = arith.constant 0 : i32
    return %c0_i32, %1 : i32, i32
  }
  func.func @transform_1(%arg0: i32, %arg1: i32) -> (i32, i32) {
    %c1_i32 = arith.constant 1 : i32
    %0 = arith.muli %arg0, %c1_i32 : i32
    %1 = arith.addi %0, %arg1 : i32
    %c0_i32 = arith.constant 0 : i32
    %c0_i32_0 = arith.constant 0 : i32
    return %c0_i32, %1 : i32, i32
  }
  func.func @transform_2(%arg0: i32, %arg1: i32) -> (i32, i32) {
    %c0_i32 = arith.constant 0 : i32
    %c0_i32_0 = arith.constant 0 : i32
    %c0_i32_1 = arith.constant 0 : i32
    return %c0_i32, %c0_i32_0 : i32, i32
  }
  func.func @transform_3(%arg0: i32, %arg1: i32) -> (i32, i32, i32) {
    %c0_i32 = arith.constant 0 : i32
    %c0_i32_0 = arith.constant 0 : i32
    %c0_i32_1 = arith.constant 0 : i32
    return %arg0, %c0_i32, %c0_i32_0 : i32, i32, i32
  }
}

module attributes {stable_mosaic.version = 11 : i64} {
  func.func @_conv_mm_kernel(%arg0: i32, %arg1: memref<864x512xbf16, #tpu.memory_space<vmem>>, %arg2: memref<32x864xbf16, #tpu.memory_space<vmem>>, %arg3: memref<32x1xf32, #tpu.memory_space<vmem>>, %arg4: memref<32x512xbf16, #tpu.memory_space<vmem>>) attributes {dimension_semantics = [#tpu.dimension_semantics<parallel>], iteration_bounds = array<i64: 1>, scalar_prefetch = 0 : i64, scratch_operands = 0 : i64, tpu.core_type = #tpu.core_type<tc>, window_params = [{transform_indices = @transform_0, window_bounds = array<i64: 864, 512>}, {pipeline_mode = #tpu.pipeline_mode<synchronous>, transform_indices = @transform_1, window_bounds = array<i64: 32, 864>}, {pipeline_mode = #tpu.pipeline_mode<synchronous>, transform_indices = @transform_2, window_bounds = array<i64: 32, 1>}, {transform_indices = @transform_3, window_bounds = array<i64: 32, 512>}]} {
    %c0 = arith.constant 0 : index
    %c0_0 = arith.constant 0 : index
    %0 = vector.load %arg2[%c0, %c0_0] : memref<32x864xbf16, #tpu.memory_space<vmem>>, vector<32x864xbf16>
    %c0_1 = arith.constant 0 : index
    %c0_2 = arith.constant 0 : index
    %1 = vector.load %arg1[%c0_1, %c0_2] : memref<864x512xbf16, #tpu.memory_space<vmem>>, vector<864x512xbf16>
    %cst = arith.constant dense<0.000000e+00> : vector<32x512xf32>
    %2 = tpu.matmul %0, %1, %cst {dimension_numbers = #tpu.dot_dimension_numbers<[1], [0], [0], [1], [0, 0, 1, 1], [], []>} : vector<32x864xbf16>, vector<864x512xbf16>, vector<32x512xf32> -> vector<32x512xf32>
    %c0_3 = arith.constant 0 : index
    %c0_4 = arith.constant 0 : index
    %3 = vector.load %arg3[%c0_3, %c0_4] : memref<32x1xf32, #tpu.memory_space<vmem>>, vector<32x1xf32>
    %4 = vector.broadcast %3 : vector<32x1xf32> to vector<32x512xf32>
    %5 = arith.addf %2, %4 : vector<32x512xf32>
    %cst_5 = arith.constant 0.000000e+00 : f32
    %6 = vector.broadcast %cst_5 : f32 to vector<32x512xf32>
    %7 = arith.maximumf %5, %6 : vector<32x512xf32>
    %8 = arith.truncf %7 : vector<32x512xf32> to vector<32x512xbf16>
    %c0_6 = arith.constant 0 : index
    %c0_7 = arith.constant 0 : index
    %9 = vector.load %arg4[%c0_6, %c0_7] : memref<32x512xbf16, #tpu.memory_space<vmem>>, vector<32x512xbf16>
    tpu.vector_store %arg4[%c0_6, %c0_7], %8 {strides = array<i32>} : memref<32x512xbf16, #tpu.memory_space<vmem>>, vector<32x512xbf16>,
    return
  }
  func.func @transform_0(%arg0: i32) -> (i32, i32) {
    %c0_i32 = arith.constant 0 : i32
    %c0_i32_0 = arith.constant 0 : i32
    return %c0_i32, %arg0 : i32, i32
  }
  func.func @transform_1(%arg0: i32) -> (i32, i32) {
    %c0_i32 = arith.constant 0 : i32
    %c0_i32_0 = arith.constant 0 : i32
    %c0_i32_1 = arith.constant 0 : i32
    return %c0_i32, %c0_i32_0 : i32, i32
  }
  func.func @transform_2(%arg0: i32) -> (i32, i32) {
    %c0_i32 = arith.constant 0 : i32
    %c0_i32_0 = arith.constant 0 : i32
    %c0_i32_1 = arith.constant 0 : i32
    return %c0_i32, %c0_i32_0 : i32, i32
  }
  func.func @transform_3(%arg0: i32) -> (i32, i32) {
    %c0_i32 = arith.constant 0 : i32
    %c0_i32_0 = arith.constant 0 : i32
    return %c0_i32, %arg0 : i32, i32
  }
}

</mosaic_0001>

<bundles_post_ra>
// kernel: _forward_impl.6
= control target key start
LH: loop header
LB: loop body
LE: loop exit
PB: predicated region body
PF: predicated region fallthrough
CT: control target
= control target key end

     0   :  { %s1807_s12 = smov 0   ;;  %s1809_s13 = smov 0   ;;  %s2278_s0 = inlined_call_operand.vmem [shape: bf16[81,4096], index: 0, kind: input, shape index: {}]   ;;  %s2279_s1 = inlined_call_operand.vmem [shape: bf16[16,81], index: 1, kind: input, shape index: {}]   ;;  %s2280_s2 = inlined_call_operand.vmem [shape: f32[16,1], index: 2, kind: input, shape index: {}]   ;;  %s2281_s3 = inlined_call_operand.vmem [shape: bf16[16,4096], index: 3, kind: output, shape index: {}]  }
   0x1   :  { %s1811_s14 = smov 0  }
   0x2 LB: > { %s1565_s15 = sadd.s32 4294967295, %s1784_s14   ;;  %s1824_s16 = sadd.s32 1, %s1784_s14   ;;  %s1784_s14 = sphi %s1811_s14, %s2285_s14   ;;  %s1780_s13 = sphi %s1809_s13, %s2284_s13   ;;  %s1776_s12 = sphi %s1807_s12, %s2283_s12  }
   0x3   : > { %s17_s17 = ssub.s32 %s1784_s14, %s1824_s16  ;;  %s20_s18 = sadd.s32 1, %s1780_s13 }
   0x4   : > { %p18_p0 = scmp.eq.s32.totalorder %s17_s17, 0  ;;  %p27_p1 = scmp.ne.s32.totalorder %s1780_s13, %s1776_s12 }
   0x5   : > { %p28_p2 = scmp.eq.s32.totalorder %s1784_s14, 0  ;;  %p99_p3 = scmp.eq.s32.totalorder %s1565_s15, 1 }
   0x6   : > { %s1835_s19 = scalar_select %p18_p0, %s1780_s13, %s20_s18  }
   0x7   : > { %p29_p4 = por %p28_p2, %p27_p1  ;;  %p1837_p5 = por %p99_p3, %p27_p1 }
   0x8   : > { %p1568_p6 = scmp.ge.s32.totalorder %s1784_s14, 2 }
   0xa   : > { %127 = sbr.rel (%p1568_p6) target bundleno = 66 (0x42), region = 24 }
  0x11   : > { %130 = sbr.rel (!%p29_p4) target bundleno = 66 (0x42), region = 28  ;;  %s132_s21 = sand.u32 (%p29_p4), 1, %s1780_s13  }
  0x12   : > { %s1699_s22 = sshll.u32 (%p29_p4), %s1784_s14, 6  ;;  %s1717_s23 = smul.u32 (%p29_p4), 704, %s132_s21 }
  0x13   : > { %s1847_s26 = scalar_lea.vmem (%p29_p4), %s2278_s0, %s1699_s22 }
  0x14   : > { %v150_v0 = vld [vmem:[%s1847_s26] sm:$0xff] (%p29_p4)  ;;  %v152_v1 = vld [vmem:[%s1847_s26 + $0x8] sm:$0xff] (%p29_p4)  ;;  %v154_v2 = vld [vmem:[%s1847_s26 + $0x10] sm:$0xff] (%p29_p4)  ;;  %s1855_s27 = scalar_lea.vmem (%p29_p4), [#allocation2], %s1717_s23 }
  0x15   : > { %v156_v3 = vld [vmem:[%s1847_s26 + $0x18] sm:$0xff] (%p29_p4)  ;;  %v158_v4 = vld [vmem:[%s1847_s26 + $0x20] sm:$0xff] (%p29_p4)  ;;  %v160_v5 = vld [vmem:[%s1847_s26 + $0x28] sm:$0xff] (%p29_p4)  ;;  %151 = vst [vmem:[%s1855_s27] sm:$0xff] (%p29_p4), %v150_v0 }
  0x16   : > { %153 = vst [vmem:[%s1855_s27 + $0x8] sm:$0xff] (%p29_p4), %v152_v1  ;;  %155 = vst [vmem:[%s1855_s27 + $0x10] sm:$0xff] (%p29_p4), %v154_v2  ;;  %v162_v6 = vld [vmem:[%s1847_s26 + $0x30] sm:$0xff] (%p29_p4)  ;;  %v164_v7 = vld [vmem:[%s1847_s26 + $0x38] sm:$0xff] (%p29_p4) }
  0x17   : > { %157 = vst [vmem:[%s1855_s27 + $0x18] sm:$0xff] (%p29_p4), %v156_v3  ;;  %159 = vst [vmem:[%s1855_s27 + $0x20] sm:$0xff] (%p29_p4), %v158_v4  ;;  %v166_v8 = vld [vmem:[%s1847_s26 + $0x80] sm:$0xff] (%p29_p4)  ;;  %v168_v9 = vld [vmem:[%s1847_s26 + $0x88] sm:$0xff] (%p29_p4) }
  0x18   : > { %161 = vst [vmem:[%s1855_s27 + $0x28] sm:$0xff] %v160_v5  ;;  %163 = vst [vmem:[%s1855_s27 + $0x30] sm:$0xff] %v162_v6  ;;  %v170_v10 = vld [vmem:[%s1847_s26 + $0x90] sm:$0xff]  ;;  %v172_v11 = vld [vmem:[%s1847_s26 + $0x98] sm:$0xff] }
  0x19   : > { %165 = vst [vmem:[%s1855_s27 + $0x38] sm:$0xff] %v164_v7  ;;  %167 = vst [vmem:[%s1855_s27 + $0x40] sm:$0xff] %v166_v8  ;;  %v174_v12 = vld [vmem:[%s1847_s26 + $0xa0] sm:$0xff]  ;;  %v176_v13 = vld [vmem:[%s1847_s26 + $0xa8] sm:$0xff] }
  0x1a   : > { %169 = vst [vmem:[%s1855_s27 + $0x48] sm:$0xff] %v168_v9  ;;  %171 = vst [vmem:[%s1855_s27 + $0x50] sm:$0xff] %v170_v10  ;;  %v178_v14 = vld [vmem:[%s1847_s26 + $0xb0] sm:$0xff]  ;;  %v180_v15 = vld [vmem:[%s1847_s26 + $0xb8] sm:$0xff] }
  0x1b   : > { %173 = vst [vmem:[%s1855_s27 + $0x58] sm:$0xff] %v172_v11  ;;  %175 = vst [vmem:[%s1855_s27 + $0x60] sm:$0xff] %v174_v12  ;;  %v182_v16 = vld [vmem:[%s1847_s26 + $0x100] sm:$0xff]  ;;  %v184_v17 = vld [vmem:[%s1847_s26 + $0x108] sm:$0xff] }
  0x1c   : > { %177 = vst [vmem:[%s1855_s27 + $0x68] sm:$0xff] %v176_v13  ;;  %179 = vst [vmem:[%s1855_s27 + $0x70] sm:$0xff] %v178_v14  ;;  %v186_v18 = vld [vmem:[%s1847_s26 + $0x110] sm:$0xff]  ;;  %v188_v19 = vld [vmem:[%s1847_s26 + $0x118] sm:$0xff] }
  0x1d   : > { %181 = vst [vmem:[%s1855_s27 + $0x78] sm:$0xff] %v180_v15  ;;  %183 = vst [vmem:[%s1855_s27 + $0x80] sm:$0xff] %v182_v16  ;;  %v190_v20 = vld [vmem:[%s1847_s26 + $0x120] sm:$0xff]  ;;  %v192_v21 = vld [vmem:[%s1847_s26 + $0x128] sm:$0xff] }
  0x1e   : > { %185 = vst [vmem:[%s1855_s27 + $0x88] sm:$0xff] %v184_v17  ;;  %187 = vst [vmem:[%s1855_s27 + $0x90] sm:$0xff] %v186_v18  ;;  %v194_v22 = vld [vmem:[%s1847_s26 + $0x130] sm:$0xff]  ;;  %v196_v23 = vld [vmem:[%s1847_s26 + $0x138] sm:$0xff] }
  0x1f   : > { %189 = vst [vmem:[%s1855_s27 + $0x98] sm:$0xff] %v188_v19  ;;  %191 = vst [vmem:[%s1855_s27 + $0xa0] sm:$0xff] %v190_v20  ;;  %v198_v24 = vld [vmem:[%s1847_s26 + $0x180] sm:$0xff]  ;;  %v200_v25 = vld [vmem:[%s1847_s26 + $0x188] sm:$0xff] }
  0x20   : > { %193 = vst [vmem:[%s1855_s27 + $0xa8] sm:$0xff] %v192_v21  ;;  %195 = vst [vmem:[%s1855_s27 + $0xb0] sm:$0xff] %v194_v22  ;;  %v202_v26 = vld [vmem:[%s1847_s26 + $0x190] sm:$0xff]  ;;  %v204_v27 = vld [vmem:[%s1847_s26 + $0x198] sm:$0xff] }
  0x21   : > { %197 = vst [vmem:[%s1855_s27 + $0xb8] sm:$0xff] %v196_v23  ;;  %199 = vst [vmem:[%s1855_s27 + $0xc0] sm:$0xff] %v198_v24  ;;  %v206_v28 = vld [vmem:[%s1847_s26 + $0x1a0] sm:$0xff]  ;;  %v208_v29 = vld [vmem:[%s1847_s26 + $0x1a8] sm:$0xff] }
  0x22   : > { %201 = vst [vmem:[%s1855_s27 + $0xc8] sm:$0xff] %v200_v25  ;;  %203 = vst [vmem:[%s1855_s27 + $0xd0] sm:$0xff] %v202_v26  ;;  %v210_v30 = vld [vmem:[%s1847_s26 + $0x1b0] sm:$0xff]  ;;  %v212_v31 = vld [vmem:[%s1847_s26 + $0x1b8] sm:$0xff] }
  0x23   : > { %205 = vst [vmem:[%s1855_s27 + $0xd8] sm:$0xff] %v204_v27  ;;  %207 = vst [vmem:[%s1855_s27 + $0xe0] sm:$0xff] %v206_v28  ;;  %v214_v32 = vld [vmem:[%s1847_s26 + $0x200] sm:$0xff]  ;;  %v216_v33 = vld [vmem:[%s1847_s26 + $0x208] sm:$0xff] }
  0x24   : > { %209 = vst [vmem:[%s1855_s27 + $0xe8] sm:$0xff] %v208_v29  ;;  %211 = vst [vmem:[%s1855_s27 + $0xf0] sm:$0xff] %v210_v30  ;;  %v218_v34 = vld [vmem:[%s1847_s26 + $0x210] sm:$0xff]  ;;  %v220_v35 = vld [vmem:[%s1847_s26 + $0x218] sm:$0xff] }
  0x25   : > { %213 = vst [vmem:[%s1855_s27 + $0xf8] sm:$0xff] %v212_v31  ;;  %215 = vst [vmem:[%s1855_s27 + $0x100] sm:$0xff] %v214_v32  ;;  %v222_v36 = vld [vmem:[%s1847_s26 + $0x220] sm:$0xff]  ;;  %v224_v37 = vld [vmem:[%s1847_s26 + $0x228] sm:$0xff] }
  0x26   : > { %217 = vst [vmem:[%s1855_s27 + $0x108] sm:$0xff] %v216_v33  ;;  %219 = vst [vmem:[%s1855_s27 + $0x110] sm:$0xff] %v218_v34  ;;  %v226_v38 = vld [vmem:[%s1847_s26 + $0x230] sm:$0xff]  ;;  %v228_v39 = vld [vmem:[%s1847_s26 + $0x238] sm:$0xff] }
  0x27   : > { %221 = vst [vmem:[%s1855_s27 + $0x118] sm:$0xff] %v220_v35  ;;  %223 = vst [vmem:[%s1855_s27 + $0x120] sm:$0xff] %v222_v36  ;;  %v230_v40 = vld [vmem:[%s1847_s26 + $0x280] sm:$0xff]  ;;  %v232_v41 = vld [vmem:[%s1847_s26 + $0x288] sm:$0xff] }
  0x28   : > { %225 = vst [vmem:[%s1855_s27 + $0x128] sm:$0xff] %v224_v37  ;;  %227 = vst [vmem:[%s1855_s27 + $0x130] sm:$0xff] %v226_v38  ;;  %v234_v42 = vld [vmem:[%s1847_s26 + $0x290] sm:$0xff]  ;;  %v236_v43 = vld [vmem:[%s1847_s26 + $0x298] sm:$0xff] }
  0x29   : > { %229 = vst [vmem:[%s1855_s27 + $0x138] sm:$0xff] %v228_v39  ;;  %231 = vst [vmem:[%s1855_s27 + $0x140] sm:$0xff] %v230_v40  ;;  %v238_v44 = vld [vmem:[%s1847_s26 + $0x2a0] sm:$0xff]  ;;  %v240_v45 = vld [vmem:[%s1847_s26 + $0x2a8] sm:$0xff] }
  0x2a   : > { %233 = vst [vmem:[%s1855_s27 + $0x148] sm:$0xff] %v232_v41  ;;  %235 = vst [vmem:[%s1855_s27 + $0x150] sm:$0xff] %v234_v42  ;;  %v242_v46 = vld [vmem:[%s1847_s26 + $0x2b0] sm:$0xff]  ;;  %v244_v47 = vld [vmem:[%s1847_s26 + $0x2b8] sm:$0xff] }
  0x2b   : > { %237 = vst [vmem:[%s1855_s27 + $0x158] sm:$0xff] %v236_v43  ;;  %239 = vst [vmem:[%s1855_s27 + $0x160] sm:$0xff] %v238_v44  ;;  %v246_v48 = vld [vmem:[%s1847_s26 + $0x300] sm:$0xff]  ;;  %v248_v49 = vld [vmem:[%s1847_s26 + $0x308] sm:$0xff] }
  0x2c   : > { %241 = vst [vmem:[%s1855_s27 + $0x168] sm:$0xff] %v240_v45  ;;  %243 = vst [vmem:[%s1855_s27 + $0x170] sm:$0xff] %v242_v46  ;;  %v250_v50 = vld [vmem:[%s1847_s26 + $0x310] sm:$0xff]  ;;  %v252_v51 = vld [vmem:[%s1847_s26 + $0x318] sm:$0xff] }
  0x2d   : > { %245 = vst [vmem:[%s1855_s27 + $0x178] sm:$0xff] %v244_v47  ;;  %247 = vst [vmem:[%s1855_s27 + $0x180] sm:$0xff] %v246_v48  ;;  %v254_v52 = vld [vmem:[%s1847_s26 + $0x320] sm:$0xff]  ;;  %v256_v53 = vld [vmem:[%s1847_s26 + $0x328] sm:$0xff] }
  0x2e   : > { %249 = vst [vmem:[%s1855_s27 + $0x188] sm:$0xff] %v248_v49  ;;  %251 = vst [vmem:[%s1855_s27 + $0x190] sm:$0xff] %v250_v50  ;;  %v258_v54 = vld [vmem:[%s1847_s26 + $0x330] sm:$0xff]  ;;  %v260_v55 = vld [vmem:[%s1847_s26 + $0x338] sm:$0xff] }
  0x2f   : > { %253 = vst [vmem:[%s1855_s27 + $0x198] sm:$0xff] %v252_v51  ;;  %255 = vst [vmem:[%s1855_s27 + $0x1a0] sm:$0xff] %v254_v52  ;;  %v262_v56 = vld [vmem:[%s1847_s26 + $0x380] sm:$0xff]  ;;  %v264_v57 = vld [vmem:[%s1847_s26 + $0x388] sm:$0xff] }
  0x30   : > { %257 = vst [vmem:[%s1855_s27 + $0x1a8] sm:$0xff] %v256_v53  ;;  %259 = vst [vmem:[%s1855_s27 + $0x1b0] sm:$0xff] %v258_v54  ;;  %v266_v58 = vld [vmem:[%s1847_s26 + $0x390] sm:$0xff]  ;;  %v268_v59 = vld [vmem:[%s1847_s26 + $0x398] sm:$0xff] }
  0x31   : > { %261 = vst [vmem:[%s1855_s27 + $0x1b8] sm:$0xff] %v260_v55  ;;  %263 = vst [vmem:[%s1855_s27 + $0x1c0] sm:$0xff] %v262_v56  ;;  %v270_v60 = vld [vmem:[%s1847_s26 + $0x3a0] sm:$0xff]  ;;  %v272_v61 = vld [vmem:[%s1847_s26 + $0x3a8] sm:$0xff] }
  0x32   : > { %265 = vst [vmem:[%s1855_s27 + $0x1c8] sm:$0xff] %v264_v57  ;;  %267 = vst [vmem:[%s1855_s27 + $0x1d0] sm:$0xff] %v266_v58  ;;  %v274_v62 = vld [vmem:[%s1847_s26 + $0x3b0] sm:$0xff]  ;;  %v276_v63 = vld [vmem:[%s1847_s26 + $0x3b8] sm:$0xff] }
  0x33   : > { %269 = vst [vmem:[%s1855_s27 + $0x1d8] sm:$0xff] %v268_v59  ;;  %271 = vst [vmem:[%s1855_s27 + $0x1e0] sm:$0xff] %v270_v60  ;;  %v278_v0 = vld [vmem:[%s1847_s26 + $0x400] sm:$0xff]  ;;  %v280_v1 = vld [vmem:[%s1847_s26 + $0x408] sm:$0xff] }
  0x34   : > { %273 = vst [vmem:[%s1855_s27 + $0x1e8] sm:$0xff] %v272_v61  ;;  %275 = vst [vmem:[%s1855_s27 + $0x1f0] sm:$0xff] %v274_v62  ;;  %v282_v2 = vld [vmem:[%s1847_s26 + $0x410] sm:$0xff]  ;;  %v284_v3 = vld [vmem:[%s1847_s26 + $0x418] sm:$0xff] }
  0x35   : > { %277 = vst [vmem:[%s1855_s27 + $0x1f8] sm:$0xff] %v276_v63  ;;  %279 = vst [vmem:[%s1855_s27 + $0x200] sm:$0xff] %v278_v0  ;;  %v286_v4 = vld [vmem:[%s1847_s26 + $0x420] sm:$0xff]  ;;  %v288_v5 = vld [vmem:[%s1847_s26 + $0x428] sm:$0xff] }
  0x36   : > { %281 = vst [vmem:[%s1855_s27 + $0x208] sm:$0xff] %v280_v1  ;;  %283 = vst [vmem:[%s1855_s27 + $0x210] sm:$0xff] %v282_v2  ;;  %v290_v6 = vld [vmem:[%s1847_s26 + $0x430] sm:$0xff]  ;;  %v292_v7 = vld [vmem:[%s1847_s26 + $0x438] sm:$0xff] }
  0x37   : > { %285 = vst [vmem:[%s1855_s27 + $0x218] sm:$0xff] %v284_v3  ;;  %287 = vst [vmem:[%s1855_s27 + $0x220] sm:$0xff] %v286_v4  ;;  %v294_v8 = vld [vmem:[%s1847_s26 + $0x480] sm:$0xff]  ;;  %v296_v9 = vld [vmem:[%s1847_s26 + $0x488] sm:$0xff] }
  0x38   : > { %289 = vst [vmem:[%s1855_s27 + $0x228] sm:$0xff] %v288_v5  ;;  %291 = vst [vmem:[%s1855_s27 + $0x230] sm:$0xff] %v290_v6  ;;  %v298_v10 = vld [vmem:[%s1847_s26 + $0x490] sm:$0xff]  ;;  %v300_v11 = vld [vmem:[%s1847_s26 + $0x498] sm:$0xff] }
  0x39   : > { %293 = vst [vmem:[%s1855_s27 + $0x238] sm:$0xff] %v292_v7  ;;  %295 = vst [vmem:[%s1855_s27 + $0x240] sm:$0xff] %v294_v8  ;;  %v302_v12 = vld [vmem:[%s1847_s26 + $0x4a0] sm:$0xff]  ;;  %v304_v13 = vld [vmem:[%s1847_s26 + $0x4a8] sm:$0xff] }
  0x3a   : > { %297 = vst [vmem:[%s1855_s27 + $0x248] sm:$0xff] %v296_v9  ;;  %299 = vst [vmem:[%s1855_s27 + $0x250] sm:$0xff] %v298_v10  ;;  %v306_v14 = vld [vmem:[%s1847_s26 + $0x4b0] sm:$0xff]  ;;  %v308_v15 = vld [vmem:[%s1847_s26 + $0x4b8] sm:$0xff] }
  0x3b   : > { %301 = vst [vmem:[%s1855_s27 + $0x258] sm:$0xff] %v300_v11  ;;  %303 = vst [vmem:[%s1855_s27 + $0x260] sm:$0xff] %v302_v12  ;;  %v310_v16 = vld [vmem:[%s1847_s26 + $0x500] sm:$0xff]  ;;  %v312_v17 = vld [vmem:[%s1847_s26 + $0x508] sm:$0xff] }
  0x3c   : > { %305 = vst [vmem:[%s1855_s27 + $0x268] sm:$0xff] %v304_v13  ;;  %307 = vst [vmem:[%s1855_s27 + $0x270] sm:$0xff] %v306_v14  ;;  %v314_v18 = vld [vmem:[%s1847_s26 + $0x510] sm:$0xff]  ;;  %v316_v19 = vld [vmem:[%s1847_s26 + $0x518] sm:$0xff] }
  0x3d   : > { %309 = vst [vmem:[%s1855_s27 + $0x278] sm:$0xff] %v308_v15  ;;  %311 = vst [vmem:[%s1855_s27 + $0x280] sm:$0xff] %v310_v16  ;;  %v318_v20 = vld [vmem:[%s1847_s26 + $0x520] sm:$0xff]  ;;  %v320_v21 = vld [vmem:[%s1847_s26 + $0x528] sm:$0xff] }
  0x3e   : > { %313 = vst [vmem:[%s1855_s27 + $0x288] sm:$0xff] %v312_v17  ;;  %315 = vst [vmem:[%s1855_s27 + $0x290] sm:$0xff] %v314_v18  ;;  %v322_v22 = vld [vmem:[%s1847_s26 + $0x530] sm:$0xff]  ;;  %v324_v23 = vld [vmem:[%s1847_s26 + $0x538] sm:$0xff] }
  0x3f   : > { %317 = vst [vmem:[%s1855_s27 + $0x298] sm:$0xff] %v316_v19  ;;  %319 = vst [vmem:[%s1855_s27 + $0x2a0] sm:$0xff] %v318_v20 }
  0x40   : > { %321 = vst [vmem:[%s1855_s27 + $0x2a8] sm:$0xff] %v320_v21  ;;  %323 = vst [vmem:[%s1855_s27 + $0x2b0] sm:$0xff] %v322_v22 }
  0x41   : > { %325 = vst [vmem:[%s1855_s27 + $0x2b8] sm:$0xff] %v324_v23 }
  0x42 PF: > { %p1571_p7 = scmp.ge.s32.totalorder %s1784_s14, 1  ;;  %p330_p8 = scmp.lt.s32.totalorder %s1784_s14, 3 }
  0x44   : > { %p331_p9 = pnand %p1571_p7, %p330_p8 }
  0x45   : > { %s337_s28 = sand.u32 (!%p331_p9), 1, %s1776_s12   ;;  %v1786_v24 = vmov (!%p331_p9), 0   ;;  %v452_v25 = vld [vmem:[%s2280_s2] sm:$0xff] (!%p331_p9)  ;;  %v453_v26 = vld [vmem:[%s2280_s2 + $0x8] sm:$0xff] (!%p331_p9)  ;;  %vm913_vm0 = vcmask (!%p331_p9), 1040384   ;;  %vm909_vm1 = vcmask (!%p331_p9), 662528  }
  0x46   : > { %334 = sbr.rel (%p331_p9) target bundleno = 404 (0x194), region = 51  ;;  %996 = vmatprep.mubr.bf16.mxu0 (!%p331_p9), %v1786_v24  ;;  %1039 = vmatprep.mubr.bf16.mxu1 (!%p331_p9), %v1786_v24  ;;  %v2066_v4 = vsel (!%p331_p9), %vm913_vm0, 65535, %v1786_v24  ;;  %v2081_v22 = vld [vmem:[%s2279_s1] sm:$0xff] (!%p331_p9)   ;;  %s1572_s10 = sshll.u32 (!%p331_p9), %s337_s28, 7 }
  0x47   : > { %s1718_s29 = smul.u32 (!%p331_p9), 704, %s337_s28  ;;  %1744 = vset.pattern.permute.xlu0 (!%p331_p9), %v1786_v24  ;;  %s2203_s11 = scalar_lea.vmem (!%p331_p9), [#allocation3], %s1572_s10 }
  0x48   : > { %456 = vperm.xlu0 (!%p331_p9), %1744, %v452_v25  }
  0x49   : > { %s2041_s7 = scalar_lea.vmem (!%p331_p9), [#allocation2], %s1718_s29 }
  0x4a   : > { %v364_v27 = vld [vmem:[%s2041_s7] sm:$0xff] (!%p331_p9)  ;;  %v365_v29 = vld [vmem:[%s2041_s7 + $0x8] sm:$0xff] (!%p331_p9)  ;;  %v366_v12 = vld [vmem:[%s2041_s7 + $0x10] sm:$0xff] (!%p331_p9) }
  0x4b   : > { %v372_v28 = vld [vmem:[%s2041_s7 + $0x40] sm:$0xff] (!%p331_p9)  ;;  %v373_v31 = vld [vmem:[%s2041_s7 + $0x48] sm:$0xff] (!%p331_p9)  ;;  %v374_v13 = vld [vmem:[%s2041_s7 + $0x50] sm:$0xff] (!%p331_p9) }
  0x4c   : > { %v1575_v30 = vcombine.high (!%p331_p9), %v364_v27, %v372_v28  ;;  %v1574_v32 = vcombine.low (!%p331_p9), %v364_v27, %v372_v28  ;;  %v380_v33 = vld [vmem:[%s2041_s7 + $0x80] sm:$0xff] (!%p331_p9)  ;;  %v1577_v35 = vcombine.high (!%p331_p9), %v365_v29, %v373_v31  ;;  %v1576_v36 = vcombine.low (!%p331_p9), %v365_v29, %v373_v31  ;;  %v381_v38 = vld [vmem:[%s2041_s7 + $0x88] sm:$0xff] (!%p331_p9)  ;;  %461 = vperm.xlu0 (!%p331_p9), %1744, %v453_v26   ;;  %v367_v14 = vld [vmem:[%s2041_s7 + $0x18] sm:$0xff] (!%p331_p9) }
  0x4d   : > { %v388_v34 = vld [vmem:[%s2041_s7 + $0xc0] sm:$0xff]  ;;  %v389_v39 = vld [vmem:[%s2041_s7 + $0xc8] sm:$0xff]  ;;  %v375_v15 = vld [vmem:[%s2041_s7 + $0x58] sm:$0xff]  ;;  %v1579_v18 = vcombine.high %v366_v12, %v374_v13  ;;  %v1578_v26 = vcombine.low %v366_v12, %v374_v13  ;;  %s1716_s12 = sshll.u32 (%p1837_p5), %s1565_s15, 6 }
  0x4e   : > { %v1591_v37 = vcombine.high %v380_v33, %v388_v34  ;;  %v396_v40 = vld [vmem:[%s2041_s7 + $0x100] sm:$0xff]  ;;  %964 = vmatprep.subr.bf16.mxu0 %v1575_v30  ;;  %v1593_v41 = vcombine.high %v381_v38, %v389_v39  ;;  %v397_v43 = vld [vmem:[%s2041_s7 + $0x108] sm:$0xff]  ;;  %1007 = vmatprep.subr.bf16.mxu1 %v1577_v35  ;;  %v1590_v45 = vcombine.low %v380_v33, %v388_v34  ;;  %v382_v20 = vld [vmem:[%s2041_s7 + $0x90] sm:$0xff]  ;;  %s1461_s20 = scalar_lea.vmem (%p1837_p5), %s2281_s3, %s1716_s12 }
  0x4f   : > { %v404_v42 = vld [vmem:[%s2041_s7 + $0x140] sm:$0xff]  ;;  %v405_v44 = vld [vmem:[%s2041_s7 + $0x148] sm:$0xff]  ;;  %965 = vmatpush1.bf16.msra.mxu0 %v1574_v32  ;;  %1008 = vmatpush1.bf16.msra.mxu1 %v1576_v36  ;;  %v1592_v46 = vcombine.low %v381_v38, %v389_v39  ;;  %v1581_v19 = vcombine.high %v367_v14, %v375_v15  ;;  %v390_v21 = vld [vmem:[%s2041_s7 + $0xd0] sm:$0xff]  ;;  %v1580_v27 = vcombine.low %v367_v14, %v375_v15 }
  0x50   : > { %966 = vmatprep.subr.bf16.mxu0 %v1591_v37  ;;  %v1607_v47 = vcombine.high %v396_v40, %v404_v42  ;;  %1009 = vmatprep.subr.bf16.mxu1 %v1593_v41  ;;  %v1609_v48 = vcombine.high %v397_v43, %v405_v44  ;;  %v412_v49 = vld [vmem:[%s2041_s7 + $0x180] sm:$0xff]  ;;  %v413_v51 = vld [vmem:[%s2041_s7 + $0x188] sm:$0xff]  ;;  %v1606_v53 = vcombine.low %v396_v40, %v404_v42  ;;  %v383_v23 = vld [vmem:[%s2041_s7 + $0x98] sm:$0xff] }
  0x51   : > { %v420_v50 = vld [vmem:[%s2041_s7 + $0x1c0] sm:$0xff]  ;;  %v421_v52 = vld [vmem:[%s2041_s7 + $0x1c8] sm:$0xff]  ;;  %v1608_v54 = vcombine.low %v397_v43, %v405_v44  ;;  %v391_v25 = vld [vmem:[%s2041_s7 + $0xd8] sm:$0xff]  ;;  %v1595_v28 = vcombine.high %v382_v20, %v390_v21  ;;  %v1594_v34 = vcombine.low %v382_v20, %v390_v21 }
  0x52   : > { %v1623_v55 = vcombine.high %v412_v49, %v420_v50  ;;  %v1625_v56 = vcombine.high %v413_v51, %v421_v52  ;;  %v428_v57 = vld [vmem:[%s2041_s7 + $0x200] sm:$0xff]  ;;  %v429_v60 = vld [vmem:[%s2041_s7 + $0x208] sm:$0xff]  ;;  %v1622_v63 = vcombine.low %v412_v49, %v420_v50  ;;  %v1624_v0 = vcombine.low %v413_v51, %v421_v52  ;;  %v398_v30 = vld [vmem:[%s2041_s7 + $0x110] sm:$0xff] }
  0x53   : > { %967 = vmatpush1.bf16.msra.mxu0 %v1590_v45  ;;  %1010 = vmatpush1.bf16.msra.mxu1 %v1592_v46  ;;  %v436_v58 = vld [vmem:[%s2041_s7 + $0x240] sm:$0xff]  ;;  %v437_v61 = vld [vmem:[%s2041_s7 + $0x248] sm:$0xff]  ;;  %v1597_v29 = vcombine.high %v383_v23, %v391_v25  ;;  %v406_v31 = vld [vmem:[%s2041_s7 + $0x150] sm:$0xff]  ;;  %v1596_v36 = vcombine.low %v383_v23, %v391_v25 }
  0x54   : > { %968 = vmatprep.subr.bf16.mxu0 %v1607_v47  ;;  %1011 = vmatprep.subr.bf16.mxu1 %v1609_v48  ;;  %v444_v59 = vld [vmem:[%s2041_s7 + $0x280] sm:$0x11]  ;;  %v445_v62 = vld [vmem:[%s2041_s7 + $0x288] sm:$0x11]  ;;  %v1639_v1 = vcombine.high %v428_v57, %v436_v58  ;;  %v1641_v3 = vcombine.high %v429_v60, %v437_v61  ;;  %v1638_v6 = vcombine.low %v428_v57, %v436_v58  ;;  %v399_v32 = vld [vmem:[%s2041_s7 + $0x118] sm:$0xff] }
  0x55   : > { %v1655_v2 = vcombine.high %v444_v59, %v444_v59  ;;  %v1657_v5 = vcombine.high %v445_v62, %v445_v62  ;;  %v1654_v7 = vcombine.low %v444_v59, %v444_v59  ;;  %v1640_v8 = vcombine.low %v429_v60, %v437_v61  ;;  %v407_v33 = vld [vmem:[%s2041_s7 + $0x158] sm:$0xff]  ;;  %v450_v35 = vld [vmem:[%s2041_s7 + $0x2b0] sm:$0x11]  ;;  %v376_v12 = vld [vmem:[%s2041_s7 + $0x60] sm:$0xff] }
  0x56   : > { %v1656_v10 = vcombine.low %v445_v62, %v445_v62  ;;  %v1611_v37 = vcombine.high %v398_v30, %v406_v31  ;;  %v451_v38 = vld [vmem:[%s2041_s7 + $0x2b8] sm:$0x11]  ;;  %v1613_v39 = vcombine.high %v399_v32, %v407_v33  ;;  %v414_v40 = vld [vmem:[%s2041_s7 + $0x190] sm:$0xff]  ;;  %v1666_v42 = vcombine.low %v450_v35, %v450_v35  ;;  %v369_v13 = vld [vmem:[%s2041_s7 + $0x28] sm:$0xff] }
  0x57   : > { %969 = vmatpush1.bf16.msra.mxu0 %v1606_v53  ;;  %1012 = vmatpush1.bf16.msra.mxu1 %v1608_v54  ;;  %v920_v9 = vand.u32 %v1655_v2, %v2066_v4  ;;  %v926_v11 = vand.u32 %v1657_v5, %v2066_v4  ;;  %v917_v16 = vand.u32 %v1654_v7, %v2066_v4  ;;  %v422_v41 = vld [vmem:[%s2041_s7 + $0x1d0] sm:$0xff]  ;;  %v415_v44 = vld [vmem:[%s2041_s7 + $0x198] sm:$0xff]  ;;  %v377_v14 = vld [vmem:[%s2041_s7 + $0x68] sm:$0xff] }
  0x58   : > { %970 = vmatprep.subr.bf16.mxu0 %v1623_v55  ;;  %1013 = vmatprep.subr.bf16.mxu1 %v1625_v56  ;;  %v923_v17 = vand.u32 %v1656_v10, %v2066_v4  ;;  %v1667_v43 = vcombine.high %v450_v35, %v450_v35  ;;  %v423_v45 = vld [vmem:[%s2041_s7 + $0x1d8] sm:$0xff]  ;;  %v1668_v46 = vcombine.low %v451_v38, %v451_v38  ;;  %v430_v56 = vld [vmem:[%s2041_s7 + $0x210] sm:$0xff]  ;;  %v392_v20 = vld [vmem:[%s2041_s7 + $0xe0] sm:$0xff] }
  0x59   : > { %v1669_v47 = vcombine.high %v451_v38, %v451_v38  ;;  %v1610_v48 = vcombine.low %v398_v30, %v406_v31  ;;  %v1612_v49 = vcombine.low %v399_v32, %v407_v33  ;;  %v2105_v51 = vand.u32 %v1666_v42, %v2066_v4  ;;  %v438_v57 = vld [vmem:[%s2041_s7 + $0x250] sm:$0xff]  ;;  %v431_v59 = vld [vmem:[%s2041_s7 + $0x218] sm:$0xff]  ;;  %v385_v21 = vld [vmem:[%s2041_s7 + $0xa8] sm:$0xff] }
  0x5a   : > { %v2102_v50 = vand.u32 %v1667_v43, %v2066_v4  ;;  %v1627_v52 = vcombine.high %v414_v40, %v422_v41  ;;  %v2111_v54 = vand.u32 %v1668_v46, %v2066_v4  ;;  %v1629_v55 = vcombine.high %v415_v44, %v423_v45  ;;  %v446_v58 = vld [vmem:[%s2041_s7 + $0x290] sm:$0x11]  ;;  %v439_v60 = vld [vmem:[%s2041_s7 + $0x258] sm:$0xff]  ;;  %v393_v23 = vld [vmem:[%s2041_s7 + $0xe8] sm:$0xff] }
  0x5b   : > { %971 = vmatpush1.bf16.msra.mxu0 %v1622_v63  ;;  %1014 = vmatpush1.bf16.msra.mxu1 %v1624_v0  ;;  %v2108_v53 = vand.u32 %v1669_v47, %v2066_v4  ;;  %v447_v61 = vld [vmem:[%s2041_s7 + $0x298] sm:$0x11]  ;;  %v1626_v62 = vcombine.low %v414_v40, %v422_v41  ;;  %v1628_v63 = vcombine.low %v415_v44, %v423_v45  ;;  %v408_v30 = vld [vmem:[%s2041_s7 + $0x160] sm:$0xff]  ;;  %v401_v31 = vld [vmem:[%s2041_s7 + $0x128] sm:$0xff] }
  0x5c   : > { %972 = vmatprep.subr.bf16.mxu0 %v1639_v1  ;;  %1015 = vmatprep.subr.bf16.mxu1 %v1641_v3  ;;  %v1643_v0 = vcombine.high %v430_v56, %v438_v57  ;;  %v1659_v1 = vcombine.high %v446_v58, %v446_v58  ;;  %v1645_v2 = vcombine.high %v431_v59, %v439_v60  ;;  %v409_v32 = vld [vmem:[%s2041_s7 + $0x168] sm:$0xff]  ;;  %v424_v38 = vld [vmem:[%s2041_s7 + $0x1e0] sm:$0xff] }
  0x5d   : > { %v1661_v3 = vcombine.high %v447_v61, %v447_v61  ;;  %v1642_v5 = vcombine.low %v430_v56, %v438_v57  ;;  %v1644_v7 = vcombine.low %v431_v59, %v439_v60  ;;  %v425_v40 = vld [vmem:[%s2041_s7 + $0x1e8] sm:$0xff]  ;;  %v1616_v42 = vcombine.low %v401_v31, %v409_v32  ;;  %v432_v45 = vld [vmem:[%s2041_s7 + $0x220] sm:$0xff] }
  0x5e   : > { %v440_v46 = vld [vmem:[%s2041_s7 + $0x260] sm:$0xff] }
  0x5f   : > { %973 = vmatpush1.bf16.msra.mxu0 %v1638_v6  ;;  %1016 = vmatpush1.bf16.msra.mxu1 %v1640_v8  ;;  %v1658_v6 = vcombine.low %v446_v58, %v446_v58  ;;  %v932_v8 = vand.u32 %v1659_v1, %v2066_v4  ;;  %v938_v10 = vand.u32 %v1661_v3, %v2066_v4  ;;  %v448_v47 = vld [vmem:[%s2041_s7 + $0x2a0] sm:$0x11]  ;;  %v370_v3 = vld [vmem:[%s2041_s7 + $0x30] sm:$0xff] }
  0x60   : > { %974 = vmatprep.subr.bf16.mxu0 %v920_v9  ;;  %1017 = vmatprep.subr.bf16.mxu1 %v926_v11  ;;  %v1660_v9 = vcombine.low %v447_v61, %v447_v61  ;;  %v368_v11 = vld [vmem:[%s2041_s7 + $0x20] sm:$0xff]  ;;  %v1647_v57 = vcombine.high %v432_v45, %v440_v46  ;;  %v1663_v58 = vcombine.high %v448_v47, %v448_v47 }
  0x61   : > { %v929_v15 = vand.u32 %v1658_v6, %v2066_v4  ;;  %v1582_v25 = vcombine.low %v368_v11, %v376_v12  ;;  %v1646_v61 = vcombine.low %v432_v45, %v440_v46  ;;  %v371_v6 = vld [vmem:[%s2041_s7 + $0x38] sm:$0xff] }
  0x63   : > { %975 = vmatpush1.bf16.msra.mxu0 %v917_v16  ;;  %1018 = vmatpush1.bf16.msra.mxu1 %v923_v17  ;;  %v935_v16 = vand.u32 %v1660_v9, %v2066_v4  ;;  %v1583_v17 = vcombine.high %v368_v11, %v376_v12  ;;  %v386_v12 = vld [vmem:[%s2041_s7 + $0xb0] sm:$0xff] }
  0x64   : > { %1050 = vmatprep.subr.bf16.mxu0 %v1579_v18  ;;  %1093 = vmatprep.subr.bf16.mxu1 %v1581_v19  ;;  %v1585_v18 = vcombine.high %v369_v13, %v377_v14  ;;  %v384_v19 = vld [vmem:[%s2041_s7 + $0xa0] sm:$0xff] }
  0x65   : > { %v1598_v33 = vcombine.low %v384_v19, %v392_v20 }
  0x66   : > { %1670 = vmatmul.mubr.msk.bf16.vlgmr.msra.gmra.mrb[0].mxu0 %vm909_vm1, %v2081_v22  ;;  %1671 = vmatmul.mubr.msk.bf16.vlgmr.msra.gmra.mrb[0].mxu1 %vm909_vm1, %v2081_v22 }
  0x67   : > { %1051 = vmatpush1.bf16.msra.mxu0 %v1578_v26  ;;  %1094 = vmatpush1.bf16.msra.mxu1 %v1580_v27  ;;  %v1584_v26 = vcombine.low %v369_v13, %v377_v14  ;;  %v1599_v27 = vcombine.high %v384_v19, %v392_v20  ;;  %v394_v13 = vld [vmem:[%s2041_s7 + $0xf0] sm:$0xff]  ;;  %v387_v14 = vld [vmem:[%s2041_s7 + $0xb8] sm:$0xff] }
  0x68   : > { %1052 = vmatprep.subr.bf16.mxu0 %v1595_v28  ;;  %1095 = vmatprep.subr.bf16.mxu1 %v1597_v29  ;;  %v1601_v28 = vcombine.high %v385_v21, %v393_v23  ;;  %v400_v29 = vld [vmem:[%s2041_s7 + $0x120] sm:$0xff]  ;;  %v402_v19 = vld [vmem:[%s2041_s7 + $0x130] sm:$0xff] }
  0x69   : > { %1082 = vmatprep.mubr.bf16.mxu0 %v1786_v24  ;;  %1125 = vmatprep.mubr.bf16.mxu1 %v1786_v24  ;;  %v1615_v35 = vcombine.high %v400_v29, %v408_v30  ;;  %v1614_v41 = vcombine.low %v400_v29, %v408_v30  ;;  %v410_v20 = vld [vmem:[%s2041_s7 + $0x170] sm:$0xff] }
  0x6a   : > { %v418_v29 = vld [vmem:[%s2041_s7 + $0x1b0] sm:$0xff] }
  0x6b   : > { %1053 = vmatpush1.bf16.msra.mxu0 %v1594_v34  ;;  %1096 = vmatpush1.bf16.msra.mxu1 %v1596_v36  ;;  %v1600_v34 = vcombine.low %v385_v21, %v393_v23  ;;  %v1617_v36 = vcombine.high %v401_v31, %v409_v32  ;;  %v403_v21 = vld [vmem:[%s2041_s7 + $0x138] sm:$0xff]  ;;  %v426_v30 = vld [vmem:[%s2041_s7 + $0x1f0] sm:$0xff] }
  0x6c   : > { %1054 = vmatprep.subr.bf16.mxu0 %v1611_v37  ;;  %1097 = vmatprep.subr.bf16.mxu1 %v1613_v39  ;;  %v416_v37 = vld [vmem:[%s2041_s7 + $0x1a0] sm:$0xff]  ;;  %v417_v39 = vld [vmem:[%s2041_s7 + $0x1a8] sm:$0xff]  ;;  %v411_v23 = vld [vmem:[%s2041_s7 + $0x178] sm:$0xff] }
  0x6d   : > { %v1631_v43 = vcombine.high %v416_v37, %v424_v38  ;;  %v1633_v44 = vcombine.high %v417_v39, %v425_v40  ;;  %v1632_v56 = vcombine.low %v417_v39, %v425_v40  ;;  %v419_v31 = vld [vmem:[%s2041_s7 + $0x1b8] sm:$0xff] }
  0x6e   : > { %v427_v32 = vld [vmem:[%s2041_s7 + $0x1f8] sm:$0xff] }
  0x6f   : > { %1055 = vmatpush1.bf16.msra.mxu0 %v1610_v48  ;;  %1098 = vmatpush1.bf16.msra.mxu1 %v1612_v49  ;;  %v433_v48 = vld [vmem:[%s2041_s7 + $0x228] sm:$0xff]  ;;  %v435_v39 = vld [vmem:[%s2041_s7 + $0x238] sm:$0xff] }
  0x70   : > { %1056 = vmatprep.subr.bf16.mxu0 %v1627_v52  ;;  %1099 = vmatprep.subr.bf16.mxu1 %v1629_v55  ;;  %v441_v49 = vld [vmem:[%s2041_s7 + $0x268] sm:$0xff]  ;;  %v1630_v55 = vcombine.low %v416_v37, %v424_v38  ;;  %v434_v37 = vld [vmem:[%s2041_s7 + $0x230] sm:$0xff]  ;;  %v443_v40 = vld [vmem:[%s2041_s7 + $0x278] sm:$0xff] }
  0x71   : > { %v449_v52 = vld [vmem:[%s2041_s7 + $0x2a8] sm:$0x11]  ;;  %v1649_v59 = vcombine.high %v433_v48, %v441_v49  ;;  %v442_v38 = vld [vmem:[%s2041_s7 + $0x270] sm:$0xff]  ;;  %v1652_v45 = vcombine.low %v435_v39, %v443_v40 }
  0x72   : > { %v1665_v60 = vcombine.high %v449_v52, %v449_v52  ;;  %v1664_v1 = vcombine.low %v449_v52, %v449_v52 }
  0x73   : > { %1057 = vmatpush1.bf16.msra.mxu0 %v1626_v62  ;;  %1100 = vmatpush1.bf16.msra.mxu1 %v1628_v63  ;;  %v1662_v62 = vcombine.low %v448_v47, %v448_v47  ;;  %v1648_v63 = vcombine.low %v433_v48, %v441_v49 }
  0x74   : > { %1058 = vmatprep.subr.bf16.mxu0 %v1643_v0  ;;  %1101 = vmatprep.subr.bf16.mxu1 %v1645_v2  ;;  %v944_v0 = vand.u32 %v1663_v58, %v2066_v4  ;;  %v950_v2 = vand.u32 %v1665_v60, %v2066_v4  ;;  %v947_v9 = vand.u32 %v1664_v1, %v2066_v4 }
  0x77   : > { %1059 = vmatpush1.bf16.msra.mxu0 %v1642_v5  ;;  %1102 = vmatpush1.bf16.msra.mxu1 %v1644_v7  ;;  %v378_v5 = vld [vmem:[%s2041_s7 + $0x70] sm:$0xff]  ;;  %v379_v7 = vld [vmem:[%s2041_s7 + $0x78] sm:$0xff] }
  0x78   : > { %1060 = vmatprep.subr.bf16.mxu0 %v932_v8  ;;  %1103 = vmatprep.subr.bf16.mxu1 %v938_v10  ;;  %v941_v8 = vand.u32 %v1662_v62, %v2066_v4  ;;  %v1587_v10 = vcombine.high %v370_v3, %v378_v5  ;;  %v1589_v11 = vcombine.high %v371_v6, %v379_v7 }
  0x7b   : > { %1061 = vmatpush1.bf16.msra.mxu0 %v929_v15  ;;  %1104 = vmatpush1.bf16.msra.mxu1 %v935_v16  ;;  %v395_v15 = vld [vmem:[%s2041_s7 + $0xf8] sm:$0xff]  ;;  %v1586_v16 = vcombine.low %v370_v3, %v378_v5 }
  0x7c   : > { %1136 = vmatprep.subr.bf16.mxu0 %v1583_v17  ;;  %1179 = vmatprep.subr.bf16.mxu1 %v1585_v18  ;;  %v1588_v17 = vcombine.low %v371_v6, %v379_v7  ;;  %v1603_v18 = vcombine.high %v386_v12, %v394_v13  ;;  %v1605_v4 = vcombine.high %v387_v14, %v395_v15 }
  0x7e   : > { %1672 = vmatmul.mubr.msk.bf16.vlgmr.msra.gmra.mrb[4].mxu0 %vm909_vm1, %v2081_v22  ;;  %1673 = vmatmul.mubr.msk.bf16.vlgmr.msra.gmra.mrb[4].mxu1 %vm909_vm1, %v2081_v22 }
  0x7f   : > { %1137 = vmatpush1.bf16.msra.mxu0 %v1582_v25  ;;  %1180 = vmatpush1.bf16.msra.mxu1 %v1584_v26  ;;  %v1602_v25 = vcombine.low %v386_v12, %v394_v13  ;;  %v1604_v26 = vcombine.low %v387_v14, %v395_v15 }
  0x80   : > { %1138 = vmatprep.subr.bf16.mxu0 %v1599_v27  ;;  %1181 = vmatprep.subr.bf16.mxu1 %v1601_v28  ;;  %v1619_v27 = vcombine.high %v402_v19, %v410_v20  ;;  %v1621_v28 = vcombine.high %v403_v21, %v411_v23 }
  0x81   : > { %1168 = vmatprep.mubr.bf16.mxu0 %v1786_v24  ;;  %1211 = vmatprep.mubr.bf16.mxu1 %v1786_v24 }
  0x83   : > { %1139 = vmatpush1.bf16.msra.mxu0 %v1598_v33  ;;  %1182 = vmatpush1.bf16.msra.mxu1 %v1600_v34  ;;  %v1618_v33 = vcombine.low %v402_v19, %v410_v20  ;;  %v1620_v34 = vcombine.low %v403_v21, %v411_v23 }
  0x84   : > { %1140 = vmatprep.subr.bf16.mxu0 %v1615_v35  ;;  %1183 = vmatprep.subr.bf16.mxu1 %v1617_v36  ;;  %v1635_v35 = vcombine.high %v418_v29, %v426_v30  ;;  %v1637_v36 = vcombine.high %v419_v31, %v427_v32 }
  0x87   : > { %1141 = vmatpush1.bf16.msra.mxu0 %v1614_v41  ;;  %1184 = vmatpush1.bf16.msra.mxu1 %v1616_v42  ;;  %v1634_v41 = vcombine.low %v418_v29, %v426_v30  ;;  %v1636_v42 = vcombine.low %v419_v31, %v427_v32 }
  0x88   : > { %1142 = vmatprep.subr.bf16.mxu0 %v1631_v43  ;;  %1185 = vmatprep.subr.bf16.mxu1 %v1633_v44  ;;  %v1651_v43 = vcombine.high %v434_v37, %v442_v38  ;;  %v1650_v44 = vcombine.low %v434_v37, %v442_v38 }
  0x8b   : > { %1143 = vmatpush1.bf16.msra.mxu0 %v1630_v55  ;;  %1186 = vmatpush1.bf16.msra.mxu1 %v1632_v56 }
  0x8c   : > { %1144 = vmatprep.subr.bf16.mxu0 %v1647_v57  ;;  %1187 = vmatprep.subr.bf16.mxu1 %v1649_v59 }
  0x8f   : > { %1145 = vmatpush1.bf16.msra.mxu0 %v1646_v61  ;;  %1188 = vmatpush1.bf16.msra.mxu1 %v1648_v63 }
  0x90   : > { %1146 = vmatprep.subr.bf16.mxu0 %v944_v0  ;;  %1189 = vmatprep.subr.bf16.mxu1 %v950_v2 }
  0x93   : > { %1147 = vmatpush1.bf16.msra.mxu0 %v941_v8  ;;  %1190 = vmatpush1.bf16.msra.mxu1 %v947_v9 }
  0x94   : > { %1222 = vmatprep.subr.bf16.mxu0 %v1587_v10  ;;  %1265 = vmatprep.subr.bf16.mxu1 %v1589_v11 }
  0x96   : > { %1674 = vmatmul.mubr.msk.bf16.vlgmr.msra.gmra.mrb[8].mxu0 %vm909_vm1, %v2081_v22  ;;  %1675 = vmatmul.mubr.msk.bf16.vlgmr.msra.gmra.mrb[8].mxu1 %vm909_vm1, %v2081_v22 }
  0x97   : > { %1223 = vmatpush1.bf16.msra.mxu0 %v1586_v16  ;;  %1266 = vmatpush1.bf16.msra.mxu1 %v1588_v17 }
  0x98   : > { %1224 = vmatprep.subr.bf16.mxu0 %v1603_v18  ;;  %1267 = vmatprep.subr.bf16.mxu1 %v1605_v4 }
  0x99   : > { %1254 = vmatprep.mubr.bf16.mxu0 %v1786_v24  ;;  %1297 = vmatprep.mubr.bf16.mxu1 %v1786_v24  ;;  %v1653_v24 = vcombine.high %v435_v39, %v443_v40 }
  0x9b   : > { %1225 = vmatpush1.bf16.msra.mxu0 %v1602_v25  ;;  %1268 = vmatpush1.bf16.msra.mxu1 %v1604_v26 }
  0x9c   : > { %1226 = vmatprep.subr.bf16.mxu0 %v1619_v27  ;;  %1269 = vmatprep.subr.bf16.mxu1 %v1621_v28 }
  0x9f   : > { %1227 = vmatpush1.bf16.msra.mxu0 %v1618_v33  ;;  %1270 = vmatpush1.bf16.msra.mxu1 %v1620_v34 }
  0xa0   : > { %1228 = vmatprep.subr.bf16.mxu0 %v1635_v35  ;;  %1271 = vmatprep.subr.bf16.mxu1 %v1637_v36 }
  0xa3   : > { %1229 = vmatpush1.bf16.msra.mxu0 %v1634_v41  ;;  %1272 = vmatpush1.bf16.msra.mxu1 %v1636_v42 }
  0xa4   : > { %1230 = vmatprep.subr.bf16.mxu0 %v1651_v43  ;;  %1273 = vmatprep.subr.bf16.mxu1 %v1653_v24 }
  0xa7   : > { %1231 = vmatpush1.bf16.msra.mxu0 %v1650_v44  ;;  %1274 = vmatpush1.bf16.msra.mxu1 %v1652_v45 }
  0xa8   : > { %1232 = vmatprep.subr.bf16.mxu0 %v2102_v50  ;;  %1275 = vmatprep.subr.bf16.mxu1 %v2108_v53 }
  0xab   : > { %1233 = vmatpush1.bf16.msra.mxu0 %v2105_v51  ;;  %1276 = vmatpush1.bf16.msra.mxu1 %v2111_v54 }
  0xae   : > { %1676 = vmatmul.mubr.msk.bf16.vlgmr.msra.gmra.mrb[12].mxu0 %vm909_vm1, %v2081_v22  ;;  %1677 = vmatmul.mubr.msk.bf16.vlgmr.msra.gmra.mrb[12].mxu1 %vm909_vm1, %v2081_v22 }
  0xc7   : > { %v2189_v46 = vpop.permute.xlu0 %456 }
  0xcb   : > { %v2191_v48 = vpop.permute.xlu0 %461 }
 0x139   : > { %v998_v47 = vpop.f32.mrb[0].mxu0  ;;  %v1041_v50 = vpop.f32.mrb[0].mxu1 }
 0x13a   : > { %v999_v49 = vadd.f32 %v998_v47, %v2189_v46  ;;  %v1000_v52 = vpop.f32.mrb[1].mxu0  ;;  %v1042_v53 = vadd.f32 %v1041_v50, %v2189_v46  ;;  %v1043_v54 = vpop.f32.mrb[1].mxu1 }
 0x13b   : > { %v1001_v51 = vadd.f32 %v1000_v52, %v2189_v46  ;;  %v1002_v55 = vpop.f32.mrb[2].mxu0  ;;  %v1044_v22 = vadd.f32 %v1043_v54, %v2189_v46  ;;  %v1045_v58 = vpop.f32.mrb[2].mxu1 }
 0x13c   : > { %v1308_v56 = vmax.f32 %v999_v49, 0.0  ;;  %v1003_v57 = vadd.f32 %v1002_v55, %v2191_v48  ;;  %v1004_v59 = vpop.f32.mrb[3].mxu0  ;;  %v1310_v60 = vmax.f32 %v1042_v53, 0.0  ;;  %v1046_v62 = vadd.f32 %v1045_v58, %v2191_v48  ;;  %v1047_v0 = vpop.f32.mrb[3].mxu1 }
 0x13d   : > { %v1309_v61 = vmax.f32 %v1001_v51, 0.0  ;;  %v1005_v63 = vadd.f32 %v1004_v59, %v2191_v48  ;;  %v1311_v1 = vmax.f32 %v1044_v22, 0.0  ;;  %v1048_v3 = vadd.f32 %v1047_v0, %v2191_v48 }
 0x13e   : > { %v1324_v2 = vmax.f32 %v1003_v57, 0.0  ;;  %v1326_v6 = vmax.f32 %v1046_v62, 0.0 }
 0x13f   : > { %v1700_v5 = vpack.c.bf16 %v1309_v61, %v1308_v56  ;;  %v1325_v7 = vmax.f32 %v1005_v63, 0.0  ;;  %v1701_v8 = vpack.c.bf16 %v1311_v1, %v1310_v60  ;;  %v1327_v9 = vmax.f32 %v1048_v3, 0.0 }
 0x141   : > { %1436 = vst [vmem:[%s2203_s11] sm:$0xff] %v1700_v5  ;;  %v1708_v10 = vpack.c.bf16 %v1325_v7, %v1324_v2  ;;  %1437 = vst [vmem:[%s2203_s11 + $0x8] sm:$0xff] %v1701_v8  ;;  %v1709_v11 = vpack.c.bf16 %v1327_v9, %v1326_v6 }
 0x143   : > { %1444 = vst [vmem:[%s2203_s11 + $0x40] sm:$0xff] %v1708_v10  ;;  %1445 = vst [vmem:[%s2203_s11 + $0x48] sm:$0xff] %v1709_v11 }
 0x151   : > { %v1084_v12 = vpop.f32.mrb[4].mxu0  ;;  %v1127_v14 = vpop.f32.mrb[4].mxu1 }
 0x152   : > { %v1085_v13 = vadd.f32 %v1084_v12, %v2189_v46  ;;  %v1086_v15 = vpop.f32.mrb[5].mxu0  ;;  %v1128_v16 = vadd.f32 %v1127_v14, %v2189_v46  ;;  %v1129_v18 = vpop.f32.mrb[5].mxu1 }
 0x153   : > { %v1087_v17 = vadd.f32 %v1086_v15, %v2189_v46  ;;  %v1088_v4 = vpop.f32.mrb[6].mxu0  ;;  %v1130_v20 = vadd.f32 %v1129_v18, %v2189_v46  ;;  %v1131_v23 = vpop.f32.mrb[6].mxu1 }
 0x154   : > { %v1312_v19 = vmax.f32 %v1085_v13, 0.0  ;;  %v1089_v21 = vadd.f32 %v1088_v4, %v2191_v48  ;;  %v1090_v25 = vpop.f32.mrb[7].mxu0  ;;  %v1314_v26 = vmax.f32 %v1128_v16, 0.0  ;;  %v1132_v28 = vadd.f32 %v1131_v23, %v2191_v48  ;;  %v1133_v30 = vpop.f32.mrb[7].mxu1 }
 0x155   : > { %v1313_v27 = vmax.f32 %v1087_v17, 0.0  ;;  %v1091_v29 = vadd.f32 %v1090_v25, %v2191_v48  ;;  %v1315_v31 = vmax.f32 %v1130_v20, 0.0  ;;  %v1134_v33 = vadd.f32 %v1133_v30, %v2191_v48 }
 0x156   : > { %v1328_v32 = vmax.f32 %v1089_v21, 0.0  ;;  %v1330_v35 = vmax.f32 %v1132_v28, 0.0 }
 0x157   : > { %v1702_v34 = vpack.c.bf16 %v1313_v27, %v1312_v19  ;;  %v1329_v36 = vmax.f32 %v1091_v29, 0.0  ;;  %v1703_v37 = vpack.c.bf16 %v1315_v31, %v1314_v26  ;;  %v1331_v38 = vmax.f32 %v1134_v33, 0.0 }
 0x159   : > { %1438 = vst [vmem:[%s2203_s11 + $0x10] sm:$0xff] %v1702_v34  ;;  %v1710_v39 = vpack.c.bf16 %v1329_v36, %v1328_v32  ;;  %1439 = vst [vmem:[%s2203_s11 + $0x18] sm:$0xff] %v1703_v37  ;;  %v1711_v40 = vpack.c.bf16 %v1331_v38, %v1330_v35  ;;  %v1476_v34 = vld [vmem:[%s2203_s11 + $0x8] sm:$0xff] (%p1837_p5) }
 0x15a   : > { %1477 = vst [vmem:[%s1461_s20 + $0x8] sm:$0xff] (%p1837_p5), %v1476_v34 }
 0x15b   : > { %1446 = vst [vmem:[%s2203_s11 + $0x50] sm:$0xff] %v1710_v39  ;;  %1447 = vst [vmem:[%s2203_s11 + $0x58] sm:$0xff] %v1711_v40 }
 0x160   : > { %v1478_v35 = vld [vmem:[%s2203_s11 + $0x10] sm:$0xff] (%p1837_p5)  ;;  %v1480_v36 = vld [vmem:[%s2203_s11 + $0x18] sm:$0xff] (%p1837_p5) }
 0x161   : > { %1479 = vst [vmem:[%s1461_s20 + $0x10] sm:$0xff] (%p1837_p5), %v1478_v35  ;;  %1481 = vst [vmem:[%s1461_s20 + $0x18] sm:$0xff] (%p1837_p5), %v1480_v36 }
 0x169   : > { %v1170_v41 = vpop.f32.mrb[8].mxu0  ;;  %v1213_v43 = vpop.f32.mrb[8].mxu1 }
 0x16a   : > { %v1171_v42 = vadd.f32 %v1170_v41, %v2189_v46  ;;  %v1172_v24 = vpop.f32.mrb[9].mxu0  ;;  %v1214_v44 = vadd.f32 %v1213_v43, %v2189_v46  ;;  %v1215_v47 = vpop.f32.mrb[9].mxu1  ;;  %v1490_v41 = vld [vmem:[%s2203_s11 + $0x40] sm:$0xff] (%p1837_p5)  ;;  %v1494_v43 = vld [vmem:[%s2203_s11 + $0x50] sm:$0xff] (%p1837_p5) }
 0x16b   : > { %v1173_v45 = vadd.f32 %v1172_v24, %v2189_v46  ;;  %v1174_v49 = vpop.f32.mrb[10].mxu0  ;;  %v1216_v52 = vadd.f32 %v1215_v47, %v2189_v46  ;;  %v1217_v51 = vpop.f32.mrb[10].mxu1  ;;  %1491 = vst [vmem:[%s1461_s20 + $0x80] sm:$0xff] (%p1837_p5), %v1490_v41  ;;  %v1496_v24 = vld [vmem:[%s2203_s11 + $0x58] sm:$0xff] (%p1837_p5)  ;;  %1495 = vst [vmem:[%s1461_s20 + $0x90] sm:$0xff] (%p1837_p5), %v1494_v43 }
 0x16c   : > { %v1316_v50 = vmax.f32 %v1171_v42, 0.0  ;;  %v1175_v53 = vadd.f32 %v1174_v49, %v2191_v48  ;;  %v1176_v54 = vpop.f32.mrb[11].mxu0  ;;  %v1318_v55 = vmax.f32 %v1214_v44, 0.0  ;;  %v1218_v22 = vadd.f32 %v1217_v51, %v2191_v48  ;;  %v1219_v58 = vpop.f32.mrb[11].mxu1  ;;  %v1492_v42 = vld [vmem:[%s2203_s11 + $0x48] sm:$0xff] (%p1837_p5)  ;;  %1497 = vst [vmem:[%s1461_s20 + $0x98] sm:$0xff] (%p1837_p5), %v1496_v24 }
 0x16d   : > { %v1317_v56 = vmax.f32 %v1173_v45, 0.0  ;;  %v1177_v57 = vadd.f32 %v1176_v54, %v2191_v48  ;;  %v1319_v59 = vmax.f32 %v1216_v52, 0.0  ;;  %v1220_v61 = vadd.f32 %v1219_v58, %v2191_v48  ;;  %1493 = vst [vmem:[%s1461_s20 + $0x88] sm:$0xff] (%p1837_p5), %v1492_v42 }
 0x16e   : > { %v1332_v60 = vmax.f32 %v1175_v53, 0.0  ;;  %v1334_v63 = vmax.f32 %v1218_v22, 0.0 }
 0x16f   : > { %v1704_v62 = vpack.c.bf16 %v1317_v56, %v1316_v50  ;;  %v1333_v0 = vmax.f32 %v1177_v57, 0.0  ;;  %v1705_v1 = vpack.c.bf16 %v1319_v59, %v1318_v55  ;;  %v1335_v2 = vmax.f32 %v1220_v61, 0.0 }
 0x171   : > { %1440 = vst [vmem:[%s2203_s11 + $0x20] sm:$0xff] %v1704_v62  ;;  %v1712_v3 = vpack.c.bf16 %v1333_v0, %v1332_v60  ;;  %1441 = vst [vmem:[%s2203_s11 + $0x28] sm:$0xff] %v1705_v1  ;;  %v1713_v5 = vpack.c.bf16 %v1335_v2, %v1334_v63 }
 0x173   : > { %1448 = vst [vmem:[%s2203_s11 + $0x60] sm:$0xff] %v1712_v3  ;;  %1449 = vst [vmem:[%s2203_s11 + $0x68] sm:$0xff] %v1713_v5 }
 0x178   : > { %v1482_v37 = vld [vmem:[%s2203_s11 + $0x20] sm:$0xff] (%p1837_p5)  ;;  %v1484_v38 = vld [vmem:[%s2203_s11 + $0x28] sm:$0xff] (%p1837_p5) }
 0x179   : > { %1483 = vst [vmem:[%s1461_s20 + $0x20] sm:$0xff] (%p1837_p5), %v1482_v37  ;;  %1485 = vst [vmem:[%s1461_s20 + $0x28] sm:$0xff] (%p1837_p5), %v1484_v38 }
 0x17a   : > { %v1498_v44 = vld [vmem:[%s2203_s11 + $0x60] sm:$0xff] (%p1837_p5)  ;;  %v1500_v45 = vld [vmem:[%s2203_s11 + $0x68] sm:$0xff] (%p1837_p5) }
 0x17b   : > { %1499 = vst [vmem:[%s1461_s20 + $0xa0] sm:$0xff] (%p1837_p5), %v1498_v44  ;;  %1501 = vst [vmem:[%s1461_s20 + $0xa8] sm:$0xff] (%p1837_p5), %v1500_v45 }
 0x181   : > { %v1256_v6 = vpop.f32.mrb[12].mxu0  ;;  %v1299_v8 = vpop.f32.mrb[12].mxu1 }
 0x182   : > { %v1257_v7 = vadd.f32 %v1256_v6, %v2189_v46  ;;  %v1258_v9 = vpop.f32.mrb[13].mxu0  ;;  %v1300_v10 = vadd.f32 %v1299_v8, %v2189_v46  ;;  %v1301_v12 = vpop.f32.mrb[13].mxu1 }
 0x183   : > { %v1259_v11 = vadd.f32 %v1258_v9, %v2189_v46  ;;  %v1260_v13 = vpop.f32.mrb[14].mxu0  ;;  %v1302_v15 = vadd.f32 %v1301_v12, %v2189_v46  ;;  %v1303_v17 = vpop.f32.mrb[14].mxu1 }
 0x184   : > { %v1320_v14 = vmax.f32 %v1257_v7, 0.0  ;;  %v1261_v16 = vadd.f32 %v1260_v13, %v2191_v48  ;;  %v1262_v18 = vpop.f32.mrb[15].mxu0  ;;  %v1322_v4 = vmax.f32 %v1300_v10, 0.0  ;;  %v1304_v20 = vadd.f32 %v1303_v17, %v2191_v48  ;;  %v1305_v23 = vpop.f32.mrb[15].mxu1 }
 0x185   : > { %v1321_v19 = vmax.f32 %v1259_v11, 0.0  ;;  %v1263_v21 = vadd.f32 %v1262_v18, %v2191_v48  ;;  %v1323_v25 = vmax.f32 %v1302_v15, 0.0  ;;  %v1306_v27 = vadd.f32 %v1305_v23, %v2191_v48  ;;  %1458 = sbr.rel (!%p1837_p5) target bundleno = 404 (0x194), region = 59  ;;  %v1474_v48 = vld [vmem:[%s2203_s11] sm:$0xff] (%p1837_p5) }
 0x186   : > { %v1336_v26 = vmax.f32 %v1261_v16, 0.0  ;;  %v1338_v28 = vmax.f32 %v1304_v20, 0.0  ;;  %1475 = vst [vmem:[%s1461_s20] sm:$0xff] (%p1837_p5), %v1474_v48 }
 0x187   : > { %v1706_v46 = vpack.c.bf16 %v1321_v19, %v1320_v14  ;;  %v1337_v29 = vmax.f32 %v1263_v21, 0.0  ;;  %v1707_v30 = vpack.c.bf16 %v1323_v25, %v1322_v4  ;;  %v1339_v31 = vmax.f32 %v1306_v27, 0.0 }
 0x189   : > { %1442 = vst [vmem:[%s2203_s11 + $0x30] sm:$0xff] %v1706_v46  ;;  %v1714_v32 = vpack.c.bf16 %v1337_v29, %v1336_v26  ;;  %1443 = vst [vmem:[%s2203_s11 + $0x38] sm:$0xff] %v1707_v30  ;;  %v1715_v33 = vpack.c.bf16 %v1339_v31, %v1338_v28 }
 0x18b   : > { %1450 = vst [vmem:[%s2203_s11 + $0x70] sm:$0xff] %v1714_v32  ;;  %1451 = vst [vmem:[%s2203_s11 + $0x78] sm:$0xff] %v1715_v33 }
 0x190   : > { %v1486_v39 = vld [vmem:[%s2203_s11 + $0x30] sm:$0xff]  ;;  %v1488_v40 = vld [vmem:[%s2203_s11 + $0x38] sm:$0xff] }
 0x191   : > { %1487 = vst [vmem:[%s1461_s20 + $0x30] sm:$0xff] %v1486_v39  ;;  %1489 = vst [vmem:[%s1461_s20 + $0x38] sm:$0xff] %v1488_v40 }
 0x192   : > { %v1502_v47 = vld [vmem:[%s2203_s11 + $0x70] sm:$0xff]  ;;  %v1504_v49 = vld [vmem:[%s2203_s11 + $0x78] sm:$0xff] }
 0x193   : > { %1503 = vst [vmem:[%s1461_s20 + $0xb0] sm:$0xff] %v1502_v47  ;;  %1505 = vst [vmem:[%s1461_s20 + $0xb8] sm:$0xff] %v1504_v49 }
 0x194 PF: > { %p10_p10 = scmp.ge.s32.totalorder %s1824_s16, 4   ;;  %s2283_s12 = smov %s1780_s13 }
 0x195   : > { %s2284_s13 = smov %s1835_s19  ;;  %s2285_s14 = smov %s1824_s16 }
 0x196   :  { %12 = sbr.rel (!%p10_p10) target bundleno = 2 (0x2), region = 113 }

// kernel: _forward_impl.9
= control target key start
LH: loop header
LB: loop body
LE: loop exit
PB: predicated region body
PF: predicated region fallthrough
CT: control target
= control target key end

     0   :  { %s680_s12 = smov 0   ;;  %s682_s13 = smov 0   ;;  %s845_s0 = inlined_call_operand.vmem [shape: bf16[16,2048], index: 0, kind: input, shape index: {}]   ;;  %s846_s1 = inlined_call_operand.vmem [shape: bf16[16,2048], index: 1, kind: input, shape index: {}]   ;;  %s847_s2 = inlined_call_operand.vmem [shape: f32[16,1], index: 2, kind: input, shape index: {}]   ;;  %s848_s3 = inlined_call_operand.vmem [shape: f32[4,8,128], index: 3, kind: output, shape index: {}]  }
   0x1   :  { %s684_s14 = smov 0   ;;  %s686_s15 = smov 0  }
   0x2   :  { %s688_s16 = smov 0  }
   0x3 LB: > { %s25_s17 = sadd.s32 1, %s653_s15  ;;  %p41_p1 = scmp.ne.s32.totalorder %s645_s13, %s641_s12  ;;  %s657_s16 = sphi %s688_s16, %s13_s16   ;;  %s653_s15 = sphi %s686_s15, %s853_s15   ;;  %s649_s14 = sphi %s684_s14, %s852_s14   ;;  %s645_s13 = sphi %s682_s13, %s851_s13   ;;  %s641_s12 = sphi %s680_s12, %s850_s12  }
   0x4   : > { %p27_p0 = scmp.ge.s32.totalorder %s25_s17, 4  ;;  %p42_p2 = scmp.eq.s32.totalorder %s657_s16, 0 }
   0x5   : > { %s34_s20 = sadd.s32 1, %s645_s13  ;;  %p543_p5 = scmp.ge.s32.totalorder %s657_s16, 4 }
   0x6   : > { %s855_s17 = smov (%p27_p0, %s25_s17), 0  ;;  %p711_p3 = por %p42_p2, %p41_p1 }
   0x7   : > { %s31_s19 = ssub.s32 %s653_s15, %s855_s17  ;;  %145 = sbr.rel (%p543_p5) target bundleno = 28 (0x1c), region = 20 }
   0x8   : > { %p32_p4 = scmp.eq.s32.totalorder %s31_s19, 0 }
   0xa   : > { %s719_s21 = scalar_select %p32_p4, %s645_s13, %s34_s20  }
   0xe   : > { %148 = sbr.rel (!%p711_p3) target bundleno = 21 (0x15), region = 24  ;;  %s150_s22 = sand.u32 (%p711_p3), 1, %s645_s13  }
   0xf   : > { %s556_s23 = sshll.u32 (%p711_p3), %s653_s15, 4  ;;  %s544_s24 = sshll.u32 (%p711_p3), %s150_s22, 5 }
  0x10   : > { %s156_s27 = scalar_lea.vmem (%p711_p3), %s845_s0, %s556_s23  ;;  %s152_s28 = scalar_lea.vmem (%p711_p3), [#allocation2], %s544_s24 }
  0x11   : > { %v169_v0 = vld [vmem:[%s156_s27] sm:$0xff] (%p711_p3)  ;;  %v171_v1 = vld [vmem:[%s156_s27 + $0x8] sm:$0xff] (%p711_p3) }
  0x12   : > { %v173_v2 = vld [vmem:[%s156_s27 + $0x40] sm:$0xff] (%p711_p3)  ;;  %170 = vst [vmem:[%s152_s28] sm:$0xff] (%p711_p3), %v169_v0  ;;  %172 = vst [vmem:[%s152_s28 + $0x8] sm:$0xff] (%p711_p3), %v171_v1  ;;  %v175_v3 = vld [vmem:[%s156_s27 + $0x48] sm:$0xff] (%p711_p3) }
  0x13   : > { %174 = vst [vmem:[%s152_s28 + $0x10] sm:$0xff] (%p711_p3), %v173_v2  ;;  %176 = vst [vmem:[%s152_s28 + $0x18] sm:$0xff] (%p711_p3), %v175_v3 }
  0x15 PF: > { %182 = sbr.rel (!%p711_p3) target bundleno = 28 (0x1c), region = 47  ;;  %s184_s29 = sand.u32 (%p711_p3), 1, %s645_s13  }
  0x16   : > { %s557_s30 = sshll.u32 (%p711_p3), %s653_s15, 4  ;;  %s547_s4 = sshll.u32 (%p711_p3), %s184_s29, 5 }
  0x17   : > { %s190_s7 = scalar_lea.vmem (%p711_p3), %s846_s1, %s557_s30  ;;  %s186_s8 = scalar_lea.vmem (%p711_p3), [#allocation3], %s547_s4 }
  0x18   : > { %v203_v4 = vld [vmem:[%s190_s7] sm:$0xff] (%p711_p3)  ;;  %v205_v5 = vld [vmem:[%s190_s7 + $0x8] sm:$0xff] (%p711_p3) }
  0x19   : > { %v207_v6 = vld [vmem:[%s190_s7 + $0x40] sm:$0xff] (%p711_p3)  ;;  %204 = vst [vmem:[%s186_s8] sm:$0xff] (%p711_p3), %v203_v4  ;;  %206 = vst [vmem:[%s186_s8 + $0x8] sm:$0xff] (%p711_p3), %v205_v5  ;;  %v209_v7 = vld [vmem:[%s190_s7 + $0x48] sm:$0xff] (%p711_p3) }
  0x1a   : > { %208 = vst [vmem:[%s186_s8 + $0x10] sm:$0xff] (%p711_p3), %v207_v6  ;;  %210 = vst [vmem:[%s186_s8 + $0x18] sm:$0xff] (%p711_p3), %v209_v7 }
  0x1c PF: > { %p550_p6 = scmp.ge.s32.totalorder %s657_s16, 1  ;;  %p215_p7 = scmp.lt.s32.totalorder %s657_s16, 5 }
  0x1e   : > { %p216_p8 = pnand %p550_p6, %p215_p7 }
  0x1f   : > { %v412_v8 = vld [vmem:[%s847_s2] sm:$0xff] (!%p216_p8)  ;;  %v659_v9 = vmov (!%p216_p8), 0   ;;  %v413_v10 = vld [vmem:[%s847_s2 + $0x8] sm:$0xff] (!%p216_p8)  ;;  %s222_s19 = sand.u32 (!%p216_p8), 1, %s641_s12   ;;  %p259_p9 = scmp.lt.s32.totalorder (!%p216_p8), %s649_s14, 3 }
  0x20   : > { %219 = sbr.rel (%p216_p8) target bundleno = 385 (0x181), region = 70  ;;  %602 = vset.pattern.permute.xlu0 (!%p216_p8), %v659_v9  ;;  %s551_s20 = sshll.u32 (!%p216_p8), %s222_s19, 5 }
  0x21   : > { %416 = vperm.xlu0 (!%p216_p8), %602, %v412_v8   ;;  %s224_s22 = scalar_lea.vmem (!%p216_p8), [#allocation2], %s551_s20  ;;  %s231_s23 = scalar_lea.vmem (!%p216_p8), [#allocation3], %s551_s20 }
  0x22   : > { %v268_v11 = vld [vmem:[%s224_s22] sm:$0xff] (!%p216_p8)  ;;  %v270_v12 = vld [vmem:[%s224_s22 + $0x10] sm:$0xff] (!%p216_p8)  ;;  %v269_v17 = vld [vmem:[%s224_s22 + $0x8] sm:$0xff] (!%p216_p8) }
  0x23   : > { %v280_v13 = vld [vmem:[%s231_s23] sm:$0xff] (!%p216_p8)  ;;  %v282_v14 = vld [vmem:[%s231_s23 + $0x10] sm:$0xff] (!%p216_p8)  ;;  %v745_v15 = vunpack.c.l.bf16 (!%p216_p8), %v268_v11  ;;  %v747_v16 = vunpack.c.l.bf16 (!%p216_p8), %v270_v12  ;;  %v271_v18 = vld [vmem:[%s224_s22 + $0x18] sm:$0xff] (!%p216_p8)  ;;  %v749_v19 = vunpack.c.h.bf16 (!%p216_p8), %v268_v11  ;;  %v751_v20 = vunpack.c.h.bf16 (!%p216_p8), %v270_v12 }
  0x24   : > { %v281_v21 = vld [vmem:[%s231_s23 + $0x8] sm:$0xff] (!%p216_p8)  ;;  %v283_v22 = vld [vmem:[%s231_s23 + $0x18] sm:$0xff] (!%p216_p8)  ;;  %v753_v23 = vunpack.c.l.bf16 (!%p216_p8), %v280_v13  ;;  %v755_v24 = vunpack.c.l.bf16 (!%p216_p8), %v282_v14  ;;  %v757_v25 = vunpack.c.h.bf16 (!%p216_p8), %v280_v13  ;;  %v759_v26 = vunpack.c.h.bf16 (!%p216_p8), %v282_v14 }
  0x25   : > { %421 = vperm.xlu0 (!%p216_p8), %602, %v413_v10   ;;  %v761_v27 = vunpack.c.l.bf16 (!%p216_p8), %v269_v17  ;;  %v763_v28 = vunpack.c.l.bf16 (!%p216_p8), %v271_v18  ;;  %v292_v29 = vmul.f32 (!%p216_p8), %v745_v15, %v745_v15  ;;  %v296_v30 = vmul.f32 (!%p216_p8), %v747_v16, %v747_v16 }
  0x26   : > { %v769_v31 = vunpack.c.l.bf16 (!%p216_p8), %v281_v21  ;;  %v771_v32 = vunpack.c.l.bf16 (!%p216_p8), %v283_v22  ;;  %v293_v33 = vmul.f32 (!%p216_p8), %v749_v19, %v749_v19  ;;  %v297_v34 = vmul.f32 (!%p216_p8), %v751_v20, %v751_v20 }
  0x27   : > { %v777_v35 = vunpack.c.h.bf16 %v269_v17  ;;  %v779_v36 = vunpack.c.h.bf16 %v271_v18  ;;  %v336_v37 = vmul.f32 %v753_v23, %v753_v23  ;;  %v340_v38 = vmul.f32 %v755_v24, %v755_v24  ;;  %s857_s14 = smov (!%p259_p9, %s649_s14), 3 }
  0x28   : > { %v785_v39 = vunpack.c.h.bf16 %v281_v21  ;;  %v787_v40 = vunpack.c.h.bf16 %v283_v22  ;;  %v337_v41 = vmul.f32 %v757_v25, %v757_v25  ;;  %v341_v42 = vmul.f32 %v759_v26, %v759_v26  ;;  %s553_s12 = sshll.u32 %s857_s14, 3 }
  0x29   : > { %v294_v43 = vmul.f32 %v761_v27, %v761_v27  ;;  %v298_v44 = vmul.f32 %v763_v28, %v763_v28  ;;  %v300_v45 = vadd.f32 %v296_v30, %v292_v29  ;;  %v307_v46 = vadd.f32 %v297_v34, %v293_v33  ;;  %s262_s28 = scalar_lea.vmem %s848_s3, %s553_s12 }
  0x2a   : > { %v338_v47 = vmul.f32 %v769_v31, %v769_v31  ;;  %v342_v48 = vmul.f32 %v771_v32, %v771_v32  ;;  %v295_v49 = vmul.f32 %v777_v35, %v777_v35  ;;  %v299_v50 = vmul.f32 %v779_v36, %v779_v36 }
  0x2b   : > { %v344_v51 = vadd.f32 %v340_v38, %v336_v37  ;;  %v339_v52 = vmul.f32 %v785_v39, %v785_v39  ;;  %v343_v53 = vmul.f32 %v787_v40, %v787_v40  ;;  %v351_v54 = vadd.f32 %v341_v42, %v337_v41 }
  0x2c   : > { %v301_v55 = vrot.slane %v300_v45, 4  ;;  %v314_v56 = vadd.f32 %v298_v44, %v294_v43  ;;  %v308_v57 = vrot.slane %v307_v46, 4  ;;  %v358_v58 = vadd.f32 %v342_v48, %v338_v47 }
  0x2d   : > { %v321_v59 = vadd.f32 %v299_v50, %v295_v49  ;;  %v345_v60 = vrot.slane %v344_v51, 4  ;;  %v352_v61 = vrot.slane %v351_v54, 4  ;;  %v365_v62 = vadd.f32 %v343_v53, %v339_v52 }
  0x2e   : > { %v302_v63 = vadd.f32 %v301_v55, %v300_v45  ;;  %v315_v0 = vrot.slane %v314_v56, 4  ;;  %v309_v1 = vadd.f32 %v308_v57, %v307_v46  ;;  %v359_v2 = vrot.slane %v358_v58, 4 }
  0x2f   : > { %v322_v3 = vrot.slane %v321_v59, 4  ;;  %v346_v4 = vadd.f32 %v345_v60, %v344_v51  ;;  %v353_v5 = vadd.f32 %v352_v61, %v351_v54  ;;  %v366_v6 = vrot.slane %v365_v62, 4 }
  0x30   : > { %v303_v7 = vrot.slane %v302_v63, 2  ;;  %v316_v8 = vadd.f32 %v315_v0, %v314_v56  ;;  %v310_v9 = vrot.slane %v309_v1, 2  ;;  %v360_v10 = vadd.f32 %v359_v2, %v358_v58 }
  0x31   : > { %v323_v11 = vadd.f32 %v322_v3, %v321_v59  ;;  %v347_v12 = vrot.slane %v346_v4, 2  ;;  %v354_v13 = vrot.slane %v353_v5, 2  ;;  %v367_v14 = vadd.f32 %v366_v6, %v365_v62 }
  0x32   : > { %v304_v17 = vadd.f32 %v303_v7, %v302_v63  ;;  %v317_v18 = vrot.slane %v316_v8, 2  ;;  %v311_v21 = vadd.f32 %v310_v9, %v309_v1  ;;  %v361_v22 = vrot.slane %v360_v10, 2 }
  0x33   : > { %v324_v29 = vrot.slane %v323_v11, 2  ;;  %v348_v30 = vadd.f32 %v347_v12, %v346_v4  ;;  %v355_v33 = vadd.f32 %v354_v13, %v353_v5  ;;  %v368_v34 = vrot.slane %v367_v14, 2 }
  0x34   : > { %v305_v37 = vrot.slane %v304_v17, 1  ;;  %v318_v38 = vadd.f32 %v317_v18, %v316_v8  ;;  %v312_v41 = vrot.slane %v311_v21, 1  ;;  %v362_v42 = vadd.f32 %v361_v22, %v360_v10 }
  0x35   : > { %v325_v43 = vadd.f32 %v324_v29, %v323_v11  ;;  %v349_v44 = vrot.slane %v348_v30, 1  ;;  %v356_v45 = vrot.slane %v355_v33, 1  ;;  %v369_v46 = vadd.f32 %v368_v34, %v367_v14 }
  0x36   : > { %v306_v47 = vadd.f32 %v305_v37, %v304_v17  ;;  %v319_v48 = vrot.slane %v318_v38, 1  ;;  %v313_v49 = vadd.f32 %v312_v41, %v311_v21  ;;  %v363_v50 = vrot.slane %v362_v42, 1 }
  0x37   : > { %v326_v51 = vrot.slane %v325_v43, 1  ;;  %v350_v52 = vadd.f32 %v349_v44, %v348_v30  ;;  %v357_v53 = vadd.f32 %v356_v45, %v355_v33  ;;  %v370_v54 = vrot.slane %v369_v46, 1 }
  0x38   : > { %v320_v55 = vadd.f32 %v319_v48, %v318_v38  ;;  %v328_v56 = vadd.f32 1e-10, %v306_v47  ;;  %v329_v57 = vadd.f32 1e-10, %v313_v49  ;;  %v364_v58 = vadd.f32 %v363_v50, %v362_v42 }
  0x39   : > { %v327_v59 = vadd.f32 %v326_v51, %v325_v43  ;;  %v372_v60 = vadd.f32 1e-10, %v350_v52  ;;  %v371_v61 = vadd.f32 %v370_v54, %v369_v46  ;;  %v373_v62 = vadd.f32 1e-10, %v357_v53 }
  0x3a   : > { %v330_v63 = vadd.f32 1e-10, %v320_v55  ;;  %603 = vrsqrt.f32 %v328_v56  ;;  %v374_v0 = vadd.f32 1e-10, %v364_v58 }
  0x3b   : > { %605 = vrsqrt.f32 %v329_v57  ;;  %v331_v1 = vadd.f32 1e-10, %v327_v59  ;;  %v375_v2 = vadd.f32 1e-10, %v371_v61 }
  0x3c   : > { %607 = vrsqrt.f32 %v372_v60 }
  0x3d   : > { %609 = vrsqrt.f32 %v373_v62 }
  0x3e   : > { %611 = vrsqrt.f32 %v330_v63 }
  0x3f   : > { %613 = vrsqrt.f32 %v374_v0 }
  0x40   : > { %615 = vrsqrt.f32 %v331_v1 }
  0x41   : > { %617 = vrsqrt.f32 %v375_v2 }
  0x44   : > { %v604_v3 = vpop.eup %603 }
  0x45   : > { %v606_v4 = vpop.eup %605  ;;  %v388_v12 = vmul.f32 %v604_v3, %v745_v15 }
  0x46   : > { %v608_v5 = vpop.eup %607  ;;  %v389_v13 = vmul.f32 %v606_v4, %v749_v19  ;;  %v393_v19 = vmul.f32 %v606_v4, %v751_v20 }
  0x47   : > { %v610_v6 = vpop.eup %609  ;;  %v380_v10 = vmul.f32 %v608_v5, %v753_v23  ;;  %v384_v23 = vmul.f32 %v608_v5, %v755_v24 }
  0x48   : > { %v612_v7 = vpop.eup %611  ;;  %v381_v11 = vmul.f32 %v610_v6, %v757_v25  ;;  %v392_v25 = vmul.f32 %v604_v3, %v747_v16  ;;  %v385_v15 = vmul.f32 %v610_v6, %v759_v26 }
  0x49   : > { %v614_v8 = vpop.eup %613  ;;  %v390_v18 = vmul.f32 %v612_v7, %v761_v27  ;;  %v396_v29 = vsub.f32 %v380_v10, %v388_v12 }
  0x4a   : > { %v616_v9 = vpop.eup %615  ;;  %v382_v17 = vmul.f32 %v614_v8, %v769_v31  ;;  %v397_v30 = vsub.f32 %v381_v11, %v389_v13  ;;  %v386_v27 = vmul.f32 %v614_v8, %v771_v32  ;;  %v401_v42 = vsub.f32 %v385_v15, %v393_v19 }
  0x4b   : > { %v618_v14 = vpop.eup %617  ;;  %v391_v22 = vmul.f32 %v616_v9, %v777_v35  ;;  %v404_v37 = vmul.f32 %v396_v29, %v396_v29  ;;  %v400_v35 = vsub.f32 %v384_v23, %v392_v25  ;;  %v395_v43 = vmul.f32 %v616_v9, %v779_v36 }
  0x4c   : > { %v383_v21 = vmul.f32 %v618_v14, %v785_v39  ;;  %v398_v33 = vsub.f32 %v382_v17, %v390_v18  ;;  %v405_v31 = vmul.f32 %v397_v30, %v397_v30  ;;  %v394_v39 = vmul.f32 %v612_v7, %v763_v28 }
  0x4d   : > { %v387_v26 = vmul.f32 %v618_v14, %v787_v40  ;;  %v408_v47 = vmul.f32 %v400_v35, %v400_v35  ;;  %v409_v32 = vmul.f32 %v401_v42, %v401_v42 }
  0x4e   : > { %v399_v34 = vsub.f32 %v383_v21, %v391_v22  ;;  %v406_v38 = vmul.f32 %v398_v33, %v398_v33  ;;  %v402_v46 = vsub.f32 %v386_v27, %v394_v39 }
  0x4f   : > { %v403_v51 = vsub.f32 %v387_v26, %v395_v43 }
  0x50   : > { %v407_v24 = vmul.f32 %v399_v34, %v399_v34  ;;  %v410_v28 = vmul.f32 %v402_v46, %v402_v46 }
  0x51   : > { %v411_v36 = vmul.f32 %v403_v51, %v403_v51 }
  0xa0   : > { %v417_v41 = vpop.permute.xlu0 %416 }
  0xa1   : > { %v424_v44 = vmul.f32 %v417_v41, %v404_v37  ;;  %v425_v16 = vmul.f32 %v417_v41, %v405_v31  ;;  %v426_v45 = vmul.f32 %v417_v41, %v406_v38  ;;  %v427_v49 = vmul.f32 %v417_v41, %v407_v24 }
  0xa3   : > { %v432_v20 = vadd.f32 %v425_v16, %v424_v44 }
  0xa4   : > { %v422_v48 = vpop.permute.xlu0 %421 }
  0xa5   : > { %v433_v50 = vadd.f32 %v432_v20, %v426_v45  ;;  %v428_v52 = vmul.f32 %v422_v48, %v408_v47  ;;  %v429_v54 = vmul.f32 %v422_v48, %v409_v32  ;;  %v430_v56 = vmul.f32 %v422_v48, %v410_v28 }
  0xa6   : > { %v431_v40 = vmul.f32 %v422_v48, %v411_v36 }
  0xa7   : > { %v434_v53 = vadd.f32 %v433_v50, %v427_v49 }
  0xa9   : > { %v435_v55 = vadd.f32 %v434_v53, %v428_v52 }
  0xab   : > { %v436_v57 = vadd.f32 %v435_v55, %v429_v54 }
  0xad   : > { %v437_v58 = vadd.f32 %v436_v57, %v430_v56 }
  0xaf   : > { %v438_v59 = vadd.f32 %v437_v58, %v431_v40 }
  0xb1   : > { %439 = vadd.xlane.f32.xlu1 %v438_v59 }
 0x13e   : > { %v440_v60 = vpop.xlane.xlu1 %439 }
 0x13f   : > { %v441_v61 = vrot.slane %v440_v60, 4 }
 0x141   : > { %v442_v62 = vadd.f32 %v441_v61, %v440_v60 }
 0x143   : > { %v443_v63 = vrot.slane %v442_v62, 2 }
 0x145   : > { %v444_v0 = vadd.f32 %v443_v63, %v442_v62 }
 0x147   : > { %v445_v1 = vrot.slane %v444_v0, 1 }
 0x149   : > { %v446_v2 = vadd.f32 %v445_v1, %v444_v0 }
 0x14b   : > { %558 = vpush %v446_v2 }
 0x17c   : > { %s559_s24 = spop %558 }
 0x17d   : > { %s448_s25 = smul.f32 0.001953125, %s559_s24 }
 0x17f   : > { %v450_v3 = vstv %s448_s25 }
 0x180   : > { %452 = vst [vmem:[%s262_s28] sm:$0xff] %v450_v3 }
 0x181 PF: > { %s13_s16 = sadd.s32 1, %s657_s16   ;;  %s850_s12 = smov %s645_s13 }
 0x182   : > { %p10_p10 = scmp.ge.s32.totalorder %s13_s16, 6   ;;  %s851_s13 = smov %s719_s21 }
 0x183   : > { %s852_s14 = smov %s653_s15  ;;  %s853_s15 = smov %s855_s17 }
 0x184   :  { %12 = sbr.rel (!%p10_p10) target bundleno = 3 (0x3), region = 125 }

// kernel: _forward_impl.7
= control target key start
LH: loop header
LB: loop body
LE: loop exit
PB: predicated region body
PF: predicated region fallthrough
CT: control target
= control target key end

     0   :  { %v1373_v1 = vmov 0   ;;  %vm733_vm0 = vcmask 392192   ;;  %s1782_s0 = inlined_call_operand.vmem [shape: bf16[432,512], index: 0, kind: input, shape index: {}]   ;;  %s1783_s1 = inlined_call_operand.vmem [shape: bf16[32,432], index: 1, kind: input, shape index: {}]   ;;  %s1784_s2 = inlined_call_operand.vmem [shape: f32[32,1], index: 2, kind: input, shape index: {}]   ;;  %s1785_s3 = inlined_call_operand.vmem [shape: bf16[32,512], index: 3, kind: output, shape index: {}]  }
   0x1   :  { %v1199_v0 = vld [vmem:[%s1782_s0 + $0x4] ss:$16 sps:$4 sm:$0xff]   ;;  %1197 = vset.pattern.permute.xlu0 %v1373_v1  ;;  %1198 = vset.pattern.permute.xlu1 %v1373_v1  ;;  %v1201_v2 = vld [vmem:[%s1782_s0 + $0xc] ss:$16 sps:$4 sm:$0xff]   ;;  %v1203_v3 = vld [vmem:[%s1782_s0] ss:$16 sps:$4 sm:$0xff]  }
   0x2   :  { %740 = vmatprep.subr.bf16.mxu0 %v1199_v0  ;;  %v1204_v4 = vld [vmem:[%s1782_s0 + $0x8] ss:$16 sps:$4 sm:$0xff]   ;;  %846 = vmatprep.subr.bf16.mxu1 %v1201_v2  ;;  %v1205_v5 = vld [vmem:[%s1782_s0 + $0x24] ss:$16 sps:$4 sm:$0xff]   ;;  %v1207_v6 = vld [vmem:[%s1782_s0 + $0x2c] ss:$16 sps:$4 sm:$0xff]  }
   0x3   :  { %741 = vmatpush1.bf16.msra.mxu0 %v1203_v3  ;;  %847 = vmatpush1.bf16.msra.mxu1 %v1204_v4  ;;  %v1209_v7 = vld [vmem:[%s1782_s0 + $0x20] ss:$16 sps:$4 sm:$0xff]   ;;  %v1210_v8 = vld [vmem:[%s1782_s0 + $0x28] ss:$16 sps:$4 sm:$0xff]   ;;  %v1211_v9 = vld [vmem:[%s1782_s0 + $0x44] ss:$16 sps:$4 sm:$0xff]  }
   0x4   :  { %742 = vmatprep.subr.bf16.mxu0 %v1205_v5  ;;  %848 = vmatprep.subr.bf16.mxu1 %v1207_v6  ;;  %v1213_v10 = vld [vmem:[%s1782_s0 + $0x4c] ss:$16 sps:$4 sm:$0xff]   ;;  %v1215_v11 = vld [vmem:[%s1782_s0 + $0x40] ss:$16 sps:$4 sm:$0xff]   ;;  %v1216_v12 = vld [vmem:[%s1782_s0 + $0x48] ss:$16 sps:$4 sm:$0xff]  }
   0x5   :  { %v1217_v13 = vld [vmem:[%s1782_s0 + $0x64] ss:$16 sps:$4 sm:$0xff]   ;;  %v1219_v14 = vld [vmem:[%s1782_s0 + $0x6c] ss:$16 sps:$4 sm:$0xff]   ;;  %v1221_v15 = vld [vmem:[%s1782_s0 + $0x60] ss:$16 sps:$4 sm:$0xff]  }
   0x6   :  { %v1222_v16 = vld [vmem:[%s1782_s0 + $0x68] ss:$16 sps:$4 sm:$0xff]   ;;  %v1223_v17 = vld [vmem:[%s1782_s0 + $0x84] ss:$16 sps:$4 sm:$0xff]   ;;  %v1225_v18 = vld [vmem:[%s1782_s0 + $0x8c] ss:$16 sps:$4 sm:$0xff]  }
   0x7   :  { %743 = vmatpush1.bf16.msra.mxu0 %v1209_v7  ;;  %849 = vmatpush1.bf16.msra.mxu1 %v1210_v8  ;;  %v1227_v19 = vld [vmem:[%s1782_s0 + $0x80] ss:$16 sps:$4 sm:$0xff]   ;;  %v1228_v20 = vld [vmem:[%s1782_s0 + $0x88] ss:$16 sps:$4 sm:$0xff]   ;;  %v1229_v21 = vld [vmem:[%s1782_s0 + $0xa4] ss:$16 sps:$4 sm:$0xff]  }
   0x8   :  { %744 = vmatprep.subr.bf16.mxu0 %v1211_v9  ;;  %850 = vmatprep.subr.bf16.mxu1 %v1213_v10  ;;  %v1231_v22 = vld [vmem:[%s1782_s0 + $0xac] ss:$16 sps:$4 sm:$0xff]   ;;  %v1233_v23 = vld [vmem:[%s1782_s0 + $0xa0] ss:$16 sps:$4 sm:$0xff]   ;;  %v1234_v24 = vld [vmem:[%s1782_s0 + $0xa8] ss:$16 sps:$4 sm:$0xff]  }
   0x9   :  { %v1235_v25 = vld [vmem:[%s1782_s0 + $0xc4] ss:$16 sps:$4 sm:$0xff]   ;;  %v1237_v26 = vld [vmem:[%s1782_s0 + $0xcc] ss:$16 sps:$4 sm:$0xff]   ;;  %v1239_v27 = vld [vmem:[%s1782_s0 + $0xc0] ss:$16 sps:$4 sm:$0xff]  }
   0xa   :  { %v1240_v28 = vld [vmem:[%s1782_s0 + $0xc8] ss:$16 sps:$4 sm:$0xff]   ;;  %v1241_v29 = vld [vmem:[%s1782_s0 + $0xe4] ss:$16 sps:$4 sm:$0xff]   ;;  %v1243_v30 = vld [vmem:[%s1782_s0 + $0xec] ss:$16 sps:$4 sm:$0xff]  }
   0xb   :  { %745 = vmatpush1.bf16.msra.mxu0 %v1215_v11  ;;  %851 = vmatpush1.bf16.msra.mxu1 %v1216_v12  ;;  %v1245_v31 = vld [vmem:[%s1782_s0 + $0xe0] ss:$16 sps:$4 sm:$0xff]   ;;  %v1246_v32 = vld [vmem:[%s1782_s0 + $0xe8] ss:$16 sps:$4 sm:$0xff]   ;;  %v1247_v33 = vld [vmem:[%s1782_s0 + $0x104] ss:$16 sps:$4 sm:$0xff]  }
   0xc   :  { %746 = vmatprep.subr.bf16.mxu0 %v1217_v13  ;;  %852 = vmatprep.subr.bf16.mxu1 %v1219_v14  ;;  %v1249_v34 = vld [vmem:[%s1782_s0 + $0x10c] ss:$16 sps:$4 sm:$0xff]   ;;  %v1251_v35 = vld [vmem:[%s1782_s0 + $0x100] ss:$16 sps:$4 sm:$0xff]   ;;  %v1252_v36 = vld [vmem:[%s1782_s0 + $0x108] ss:$16 sps:$4 sm:$0xff]  }
   0xd   :  { %v1253_v37 = vld [vmem:[%s1782_s0 + $0x124] ss:$16 sps:$4 sm:$0xff]   ;;  %v1255_v38 = vld [vmem:[%s1782_s0 + $0x12c] ss:$16 sps:$4 sm:$0xff]   ;;  %v1257_v39 = vld [vmem:[%s1782_s0 + $0x120] ss:$16 sps:$4 sm:$0xff]  }
   0xe   :  { %v1258_v40 = vld [vmem:[%s1782_s0 + $0x128] ss:$16 sps:$4 sm:$0xff]   ;;  %v1259_v41 = vld [vmem:[%s1782_s0 + $0x144] ss:$16 sps:$4 sm:$0xff]   ;;  %v1261_v42 = vld [vmem:[%s1782_s0 + $0x14c] ss:$16 sps:$4 sm:$0xff]  }
   0xf   :  { %747 = vmatpush1.bf16.msra.mxu0 %v1221_v15  ;;  %853 = vmatpush1.bf16.msra.mxu1 %v1222_v16  ;;  %v1263_v43 = vld [vmem:[%s1782_s0 + $0x140] ss:$16 sps:$4 sm:$0xff]   ;;  %v1264_v44 = vld [vmem:[%s1782_s0 + $0x148] ss:$16 sps:$4 sm:$0xff]   ;;  %v1265_v45 = vld [vmem:[%s1782_s0 + $0x164] ss:$16 sps:$4 sm:$0xff]  }
  0x10   :  { %748 = vmatprep.subr.bf16.mxu0 %v1223_v17  ;;  %854 = vmatprep.subr.bf16.mxu1 %v1225_v18  ;;  %v1267_v46 = vld [vmem:[%s1782_s0 + $0x16c] ss:$16 sps:$4 sm:$0xff]   ;;  %v1269_v47 = vld [vmem:[%s1782_s0 + $0x160] ss:$16 sps:$4 sm:$0xff]   ;;  %v1270_v48 = vld [vmem:[%s1782_s0 + $0x168] ss:$16 sps:$4 sm:$0xff]  }
  0x11   :  { %v1297_v49 = vld [vmem:[%s1783_s1 + $0x4] ss:$16 sps:$4 sm:$0xff]   ;;  %v1273_v51 = vld [vmem:[%s1782_s0 + $0x18c] ss:$16 sps:$4 sm:$0xff]   ;;  %v1275_v52 = vld [vmem:[%s1782_s0 + $0x180] ss:$16 sps:$4 sm:$0xff]  }
  0x12   :  { %v1271_v50 = vld [vmem:[%s1782_s0 + $0x184] ss:$16 sps:$4 sm:$0xff]   ;;  %772 = vmatprep.mubr.bf16.mxu0 %v1297_v49  ;;  %878 = vmatprep.mubr.bf16.mxu1 %v1297_v49  ;;  %v1276_v53 = vld [vmem:[%s1782_s0 + $0x188] ss:$16 sps:$4 sm:$0xff]   ;;  %v1279_v55 = vld [vmem:[%s1782_s0 + $0x1ac] ss:$16 sps:$4 sm:$0xff]  }
  0x13   :  { %749 = vmatpush1.bf16.msra.mxu0 %v1227_v19  ;;  %855 = vmatpush1.bf16.msra.mxu1 %v1228_v20  ;;  %v1277_v54 = vld [vmem:[%s1782_s0 + $0x1a4] ss:$16 sps:$4 sm:$0xff]   ;;  %v1281_v56 = vld [vmem:[%s1782_s0 + $0x1a0] ss:$16 sps:$4 sm:$0xff]   ;;  %v1282_v57 = vld [vmem:[%s1782_s0 + $0x1a8] ss:$16 sps:$4 sm:$0xff]  }
  0x14   :  { %750 = vmatprep.subr.bf16.mxu0 %v1229_v21  ;;  %856 = vmatprep.subr.bf16.mxu1 %v1231_v22  ;;  %v1283_v58 = vld [vmem:[%s1782_s0 + $0x1c4] ss:$16 sps:$4 sm:$0xff]   ;;  %v1285_v59 = vld [vmem:[%s1782_s0 + $0x1cc] ss:$16 sps:$4 sm:$0xff]   ;;  %v1287_v60 = vld [vmem:[%s1782_s0 + $0x1c0] ss:$16 sps:$4 sm:$0xff]  }
  0x15   :  { %v1288_v61 = vld [vmem:[%s1782_s0 + $0x1c8] ss:$16 sps:$4 sm:$0xff]   ;;  %v1289_v62 = vld [vmem:[%s1782_s0 + $0x1e4] ss:$16 sps:$4 sm:$0xff]   ;;  %v1291_v63 = vld [vmem:[%s1782_s0 + $0x1ec] ss:$16 sps:$4 sm:$0xff]  }
  0x16   :  { %v1293_v0 = vld [vmem:[%s1782_s0 + $0x1e0] ss:$16 sps:$4 sm:$0xff]   ;;  %v1294_v1 = vld [vmem:[%s1782_s0 + $0x1e8] ss:$16 sps:$4 sm:$0xff]   ;;  %v1300_v2 = vld [vmem:[%s1782_s0 + $0x204] ss:$16 sps:$4 sm:$0xff]  }
  0x17   :  { %751 = vmatpush1.bf16.msra.mxu0 %v1233_v23  ;;  %857 = vmatpush1.bf16.msra.mxu1 %v1234_v24  ;;  %v1303_v3 = vld [vmem:[%s1782_s0 + $0x20c] ss:$16 sps:$4 sm:$0xff]   ;;  %v1295_v4 = vld [vmem:[%s1783_s1] ss:$16 sps:$4 sm:$0xff]   ;;  %v1301_v6 = vld [vmem:[%s1782_s0 + $0x208] ss:$16 sps:$4 sm:$0xff]  }
  0x18   :  { %752 = vmatprep.subr.bf16.mxu0 %v1235_v25  ;;  %858 = vmatprep.subr.bf16.mxu1 %v1237_v26  ;;  %v1298_v5 = vld [vmem:[%s1782_s0 + $0x200] ss:$16 sps:$4 sm:$0xff]   ;;  %v1306_v7 = vld [vmem:[%s1782_s0 + $0x224] ss:$16 sps:$4 sm:$0xff]   ;;  %v1309_v8 = vld [vmem:[%s1782_s0 + $0x22c] ss:$16 sps:$4 sm:$0xff]  }
  0x19   :  { %v1304_v9 = vld [vmem:[%s1782_s0 + $0x220] ss:$16 sps:$4 sm:$0xff]   ;;  %v1307_v10 = vld [vmem:[%s1782_s0 + $0x228] ss:$16 sps:$4 sm:$0xff]   ;;  %v1312_v11 = vld [vmem:[%s1782_s0 + $0x244] ss:$16 sps:$4 sm:$0xff]  }
  0x1a   :  { %v1352_v12 = vld [vmem:[%s1783_s1 + $0x24] ss:$16 sps:$4 sm:$0xff]   ;;  %v1315_v13 = vld [vmem:[%s1782_s0 + $0x24c] ss:$16 sps:$4 sm:$0xff]   ;;  %v1310_v14 = vld [vmem:[%s1782_s0 + $0x240] ss:$16 sps:$4 sm:$0xff]  }
  0x1b   :  { %753 = vmatpush1.bf16.msra.mxu0 %v1239_v27  ;;  %859 = vmatpush1.bf16.msra.mxu1 %v1240_v28  ;;  %v1313_v15 = vld [vmem:[%s1782_s0 + $0x248] ss:$16 sps:$4 sm:$0xff]   ;;  %v1354_v16 = vld [vmem:[%s1783_s1 + $0x20] ss:$16 sps:$4 sm:$0xff]   ;;  %v1318_v17 = vld [vmem:[%s1782_s0 + $0x264] ss:$16 sps:$4 sm:$0xff]  }
  0x1c   :  { %754 = vmatprep.subr.bf16.mxu0 %v1241_v29  ;;  %860 = vmatprep.subr.bf16.mxu1 %v1243_v30  ;;  %v1321_v18 = vld [vmem:[%s1782_s0 + $0x26c] ss:$16 sps:$4 sm:$0xff]   ;;  %v1316_v19 = vld [vmem:[%s1782_s0 + $0x260] ss:$16 sps:$4 sm:$0xff]   ;;  %v1319_v21 = vld [vmem:[%s1782_s0 + $0x268] ss:$16 sps:$4 sm:$0xff]  }
  0x1d   :  { %v1369_v20 = vld [vmem:[%s1783_s1 + $0xc] ss:$16 sps:$4 sm:$0xff]   ;;  %v1324_v22 = vld [vmem:[%s1782_s0 + $0x284] ss:$16 sps:$4 sm:$0xff]   ;;  %v1322_v26 = vld [vmem:[%s1782_s0 + $0x280] ss:$16 sps:$4 sm:$0xff]  }
  0x1e   :  { %v1327_v23 = vld [vmem:[%s1782_s0 + $0x28c] ss:$16 sps:$4 sm:$0xff]   ;;  %v131_v24 = vld [vmem:[%s1784_s2] sm:$0xff]  ;;  %v133_v25 = vld [vmem:[%s1784_s2 + $0x10] sm:$0xff] }
  0x1f   :  { %755 = vmatpush1.bf16.msra.mxu0 %v1245_v31  ;;  %861 = vmatpush1.bf16.msra.mxu1 %v1246_v32  ;;  %v1325_v27 = vld [vmem:[%s1782_s0 + $0x288] ss:$16 sps:$4 sm:$0xff]   ;;  %v1330_v30 = vld [vmem:[%s1782_s0 + $0x2a4] ss:$16 sps:$4 sm:$0xff]   ;;  %v1333_v31 = vld [vmem:[%s1782_s0 + $0x2ac] ss:$16 sps:$4 sm:$0xff]  }
  0x20   :  { %756 = vmatprep.subr.bf16.mxu0 %v1247_v33  ;;  %862 = vmatprep.subr.bf16.mxu1 %v1249_v34  ;;  %v132_v28 = vld [vmem:[%s1784_s2 + $0x8] sm:$0xff]  ;;  %v134_v29 = vld [vmem:[%s1784_s2 + $0x18] sm:$0xff]  ;;  %v1328_v32 = vld [vmem:[%s1782_s0 + $0x2a0] ss:$16 sps:$4 sm:$0xff]  }
  0x21   :  { %137 = vperm.xlu0 %1197, %v131_v24   ;;  %147 = vperm.xlu1 %1198, %v133_v25   ;;  %v1331_v33 = vld [vmem:[%s1782_s0 + $0x2a8] ss:$16 sps:$4 sm:$0xff]   ;;  %v1336_v34 = vld [vmem:[%s1782_s0 + $0x2c4] ss:$16 sps:$4 sm:$0xff]  }
  0x22   :  { %v1358_v49 = vld [vmem:[%s1782_s0 + $0x328] ss:$16 sps:$4 sm:$0xff]  }
  0x23   :  { %757 = vmatpush1.bf16.msra.mxu0 %v1251_v35  ;;  %863 = vmatpush1.bf16.msra.mxu1 %v1252_v36  ;;  %v1339_v35 = vld [vmem:[%s1782_s0 + $0x2cc] ss:$16 sps:$4 sm:$0xff]   ;;  %v1334_v36 = vld [vmem:[%s1782_s0 + $0x2c0] ss:$16 sps:$4 sm:$0xff]  }
  0x24   :  { %758 = vmatprep.subr.bf16.mxu0 %v1253_v37  ;;  %864 = vmatprep.subr.bf16.mxu1 %v1255_v38  ;;  %v1337_v37 = vld [vmem:[%s1782_s0 + $0x2c8] ss:$16 sps:$4 sm:$0xff]   ;;  %v1342_v38 = vld [vmem:[%s1782_s0 + $0x2e4] ss:$16 sps:$4 sm:$0xff]  }
  0x25   :  { %142 = vperm.xlu0 %1197, %v132_v28   ;;  %152 = vperm.xlu1 %1198, %v134_v29  }
  0x27   :  { %759 = vmatpush1.bf16.msra.mxu0 %v1257_v39  ;;  %865 = vmatpush1.bf16.msra.mxu1 %v1258_v40  ;;  %v1345_v39 = vld [vmem:[%s1782_s0 + $0x2ec] ss:$16 sps:$4 sm:$0xff]   ;;  %v1340_v40 = vld [vmem:[%s1782_s0 + $0x2e0] ss:$16 sps:$4 sm:$0xff]  }
  0x28   :  { %760 = vmatprep.subr.bf16.mxu0 %v1259_v41  ;;  %866 = vmatprep.subr.bf16.mxu1 %v1261_v42  ;;  %v1343_v41 = vld [vmem:[%s1782_s0 + $0x2e8] ss:$16 sps:$4 sm:$0xff]   ;;  %v1348_v42 = vld [vmem:[%s1782_s0 + $0x304] ss:$16 sps:$4 sm:$0xff]  }
  0x2b   :  { %761 = vmatpush1.bf16.msra.mxu0 %v1263_v43  ;;  %867 = vmatpush1.bf16.msra.mxu1 %v1264_v44  ;;  %v1351_v43 = vld [vmem:[%s1782_s0 + $0x30c] ss:$16 sps:$4 sm:$0xff]   ;;  %v1346_v44 = vld [vmem:[%s1782_s0 + $0x300] ss:$16 sps:$4 sm:$0xff]  }
  0x2c   :  { %762 = vmatprep.subr.bf16.mxu0 %v1265_v45  ;;  %868 = vmatprep.subr.bf16.mxu1 %v1267_v46  ;;  %v1349_v45 = vld [vmem:[%s1782_s0 + $0x308] ss:$16 sps:$4 sm:$0xff]   ;;  %v1357_v46 = vld [vmem:[%s1782_s0 + $0x324] ss:$16 sps:$4 sm:$0xff]  }
  0x2f   :  { %763 = vmatpush1.bf16.msra.mxu0 %v1269_v47  ;;  %869 = vmatpush1.bf16.msra.mxu1 %v1270_v48  ;;  %v1360_v47 = vld [vmem:[%s1782_s0 + $0x32c] ss:$16 sps:$4 sm:$0xff]   ;;  %v1355_v48 = vld [vmem:[%s1782_s0 + $0x320] ss:$16 sps:$4 sm:$0xff]  }
  0x30   :  { %764 = vmatprep.subr.bf16.mxu0 %v1271_v50  ;;  %870 = vmatprep.subr.bf16.mxu1 %v1273_v51  ;;  %v1363_v50 = vld [vmem:[%s1782_s0 + $0x344] ss:$16 sps:$4 sm:$0xff]   ;;  %v1366_v51 = vld [vmem:[%s1782_s0 + $0x34c] ss:$16 sps:$4 sm:$0xff]  }
  0x33   :  { %765 = vmatpush1.bf16.msra.mxu0 %v1275_v52  ;;  %871 = vmatpush1.bf16.msra.mxu1 %v1276_v53  ;;  %v1361_v52 = vld [vmem:[%s1782_s0 + $0x340] ss:$16 sps:$4 sm:$0xff]   ;;  %v1364_v53 = vld [vmem:[%s1782_s0 + $0x348] ss:$16 sps:$4 sm:$0xff]  }
  0x34   :  { %766 = vmatprep.subr.bf16.mxu0 %v1277_v54  ;;  %872 = vmatprep.subr.bf16.mxu1 %v1279_v55  ;;  %v1367_v54 = vld [vmem:[%s1783_s1 + $0x8] ss:$16 sps:$4 sm:$0xff]   ;;  %v1370_v55 = vld [vmem:[%s1783_s1 + $0x2c] ss:$16 sps:$4 sm:$0xff]  }
  0x37   :  { %767 = vmatpush1.bf16.msra.mxu0 %v1281_v56  ;;  %873 = vmatpush1.bf16.msra.mxu1 %v1282_v57  ;;  %v1372_v56 = vld [vmem:[%s1783_s1 + $0x28] ss:$16 sps:$4 sm:$0xff]  }
  0x38   :  { %768 = vmatprep.subr.bf16.mxu0 %v1283_v58  ;;  %874 = vmatprep.subr.bf16.mxu1 %v1285_v59 }
  0x3b   :  { %769 = vmatpush1.bf16.msra.mxu0 %v1287_v60  ;;  %875 = vmatpush1.bf16.msra.mxu1 %v1288_v61 }
  0x3c   :  { %770 = vmatprep.subr.bf16.mxu0 %v1289_v62  ;;  %876 = vmatprep.subr.bf16.mxu1 %v1291_v63 }
  0x3f   :  { %771 = vmatpush1.bf16.msra.mxu0 %v1293_v0  ;;  %877 = vmatpush1.bf16.msra.mxu1 %v1294_v1 }
  0x40   :  { %793 = vmatprep.subr.bf16.mxu0 %v1300_v2  ;;  %899 = vmatprep.subr.bf16.mxu1 %v1303_v3 }
  0x42   :  { %773 = vmatmul.mubr.bf16.vlgmr.msra.gmra.mrb[0].mxu0 %v1295_v4  ;;  %879 = vmatmul.mubr.bf16.vlgmr.msra.gmra.mrb[0].mxu1 %v1295_v4 }
  0x43   :  { %794 = vmatpush1.bf16.msra.mxu0 %v1298_v5  ;;  %900 = vmatpush1.bf16.msra.mxu1 %v1301_v6 }
  0x44   :  { %795 = vmatprep.subr.bf16.mxu0 %v1306_v7  ;;  %901 = vmatprep.subr.bf16.mxu1 %v1309_v8 }
  0x45   :  { %782 = vmatprep.mubr.bf16.mxu0 %v1352_v12  ;;  %888 = vmatprep.mubr.bf16.mxu1 %v1352_v12 }
  0x47   :  { %796 = vmatpush1.bf16.msra.mxu0 %v1304_v9  ;;  %902 = vmatpush1.bf16.msra.mxu1 %v1307_v10 }
  0x48   :  { %797 = vmatprep.subr.bf16.mxu0 %v1312_v11  ;;  %903 = vmatprep.subr.bf16.mxu1 %v1315_v13 }
  0x4a   :  { %783 = vmatmul.mubr.bf16.gmra.mrb[4].mxu0 %v1354_v16  ;;  %889 = vmatmul.mubr.bf16.gmra.mrb[4].mxu1 %v1354_v16 }
  0x4b   :  { %798 = vmatpush1.bf16.msra.mxu0 %v1310_v14  ;;  %904 = vmatpush1.bf16.msra.mxu1 %v1313_v15 }
  0x4c   :  { %799 = vmatprep.subr.bf16.mxu0 %v1318_v17  ;;  %905 = vmatprep.subr.bf16.mxu1 %v1321_v18 }
  0x4d   :  { %1144 = vmatprep.mubr.msk.bf16.mxu0 %vm733_vm0, %v1369_v20  ;;  %1146 = vmatprep.mubr.msk.bf16.mxu1 %vm733_vm0, %v1369_v20 }
  0x4f   :  { %800 = vmatpush1.bf16.msra.mxu0 %v1316_v19  ;;  %906 = vmatpush1.bf16.msra.mxu1 %v1319_v21 }
  0x50   :  { %801 = vmatprep.subr.bf16.mxu0 %v1324_v22  ;;  %907 = vmatprep.subr.bf16.mxu1 %v1327_v23 }
  0x53   :  { %802 = vmatpush1.bf16.msra.mxu0 %v1322_v26  ;;  %908 = vmatpush1.bf16.msra.mxu1 %v1325_v27 }
  0x54   :  { %803 = vmatprep.subr.bf16.mxu0 %v1330_v30  ;;  %909 = vmatprep.subr.bf16.mxu1 %v1333_v31 }
  0x57   :  { %804 = vmatpush1.bf16.msra.mxu0 %v1328_v32  ;;  %910 = vmatpush1.bf16.msra.mxu1 %v1331_v33 }
  0x58   :  { %805 = vmatprep.subr.bf16.mxu0 %v1336_v34  ;;  %911 = vmatprep.subr.bf16.mxu1 %v1339_v35 }
  0x5b   :  { %806 = vmatpush1.bf16.msra.mxu0 %v1334_v36  ;;  %912 = vmatpush1.bf16.msra.mxu1 %v1337_v37 }
  0x5c   :  { %807 = vmatprep.subr.bf16.mxu0 %v1342_v38  ;;  %913 = vmatprep.subr.bf16.mxu1 %v1345_v39 }
  0x5f   :  { %808 = vmatpush1.bf16.msra.mxu0 %v1340_v40  ;;  %914 = vmatpush1.bf16.msra.mxu1 %v1343_v41 }
  0x60   :  { %809 = vmatprep.subr.bf16.mxu0 %v1348_v42  ;;  %915 = vmatprep.subr.bf16.mxu1 %v1351_v43 }
  0x63   :  { %810 = vmatpush1.bf16.msra.mxu0 %v1346_v44  ;;  %916 = vmatpush1.bf16.msra.mxu1 %v1349_v45 }
  0x64   :  { %811 = vmatprep.subr.bf16.mxu0 %v1357_v46  ;;  %917 = vmatprep.subr.bf16.mxu1 %v1360_v47 }
  0x67   :  { %812 = vmatpush1.bf16.msra.mxu0 %v1355_v48  ;;  %918 = vmatpush1.bf16.msra.mxu1 %v1358_v49 }
  0x68   :  { %813 = vmatprep.subr.bf16.mxu0 %v1363_v50  ;;  %919 = vmatprep.subr.bf16.mxu1 %v1366_v51 }
  0x6b   :  { %814 = vmatpush1.bf16.msra.mxu0 %v1361_v52  ;;  %920 = vmatpush1.bf16.msra.mxu1 %v1364_v53 }
  0x6e   :  { %826 = vmatmul.mubr.bf16.vlgmr.msra.gmra.mrb[0].mxu0 %v1367_v54  ;;  %932 = vmatmul.mubr.bf16.vlgmr.msra.gmra.mrb[0].mxu1 %v1367_v54 }
  0x6f   :  { %1145 = vmatprep.mubr.msk.bf16.mxu0 %vm733_vm0, %v1370_v55  ;;  %1147 = vmatprep.mubr.msk.bf16.mxu1 %vm733_vm0, %v1370_v55 }
  0x76   :  { %836 = vmatmul.mubr.bf16.gmra.mrb[4].mxu0 %v1372_v56  ;;  %942 = vmatmul.mubr.bf16.gmra.mrb[4].mxu1 %v1372_v56 }
  0xa0   :  { %v138_v57 = vpop.permute.xlu0 %137  ;;  %v148_v59 = vpop.permute.xlu1 %147 }
  0xa4   :  { %v143_v58 = vpop.permute.xlu0 %142  ;;  %v153_v22 = vpop.permute.xlu1 %152 }
 0x141   :  { %v827_v60 = vpop.f32.mrb[0].mxu0  ;;  %v933_v61 = vpop.f32.mrb[0].mxu1 }
 0x142   :  { %v1164_v62 = vadd.f32 %v827_v60, %v138_v57  ;;  %v1172_v63 = vadd.f32 %v933_v61, %v138_v57  ;;  %v829_v0 = vpop.f32.mrb[1].mxu0  ;;  %v935_v1 = vpop.f32.mrb[1].mxu1 }
 0x143   :  { %v1165_v2 = vadd.f32 %v829_v0, %v138_v57  ;;  %v1173_v3 = vadd.f32 %v935_v1, %v138_v57  ;;  %v831_v4 = vpop.f32.mrb[2].mxu0  ;;  %v937_v5 = vpop.f32.mrb[2].mxu1 }
 0x144   :  { %v952_v6 = vmax.f32 %v1164_v62, 0.0  ;;  %v954_v7 = vmax.f32 %v1172_v63, 0.0  ;;  %v1166_v8 = vadd.f32 %v831_v4, %v143_v58  ;;  %v1174_v9 = vadd.f32 %v937_v5, %v143_v58  ;;  %v833_v10 = vpop.f32.mrb[3].mxu0  ;;  %v939_v11 = vpop.f32.mrb[3].mxu1 }
 0x145   :  { %v953_v12 = vmax.f32 %v1165_v2, 0.0  ;;  %v955_v13 = vmax.f32 %v1173_v3, 0.0  ;;  %v1167_v14 = vadd.f32 %v833_v10, %v143_v58  ;;  %v1175_v15 = vadd.f32 %v939_v11, %v143_v58 }
 0x146   :  { %v956_v16 = vmax.f32 %v1166_v8, 0.0  ;;  %v958_v17 = vmax.f32 %v1174_v9, 0.0 }
 0x147   :  { %v1156_v18 = vpack.c.bf16 %v953_v12, %v952_v6  ;;  %v1157_v19 = vpack.c.bf16 %v955_v13, %v954_v7  ;;  %v957_v20 = vmax.f32 %v1167_v14, 0.0  ;;  %v959_v21 = vmax.f32 %v1175_v15, 0.0 }
 0x149   :  { %1016 = vst [vmem:[%s1785_s3] sm:$0xff] %v1156_v18  ;;  %1017 = vst [vmem:[%s1785_s3 + $0x8] sm:$0xff] %v1157_v19  ;;  %v1158_v23 = vpack.c.bf16 %v957_v20, %v956_v16  ;;  %v1159_v24 = vpack.c.bf16 %v959_v21, %v958_v17  ;;  %v837_v25 = vpop.f32.mrb[4].mxu0  ;;  %v943_v26 = vpop.f32.mrb[4].mxu1 }
 0x14a   :  { %v1168_v27 = vadd.f32 %v837_v25, %v148_v59  ;;  %v1176_v28 = vadd.f32 %v943_v26, %v148_v59  ;;  %v839_v29 = vpop.f32.mrb[5].mxu0  ;;  %v945_v30 = vpop.f32.mrb[5].mxu1 }
 0x14b   :  { %1018 = vst [vmem:[%s1785_s3 + $0x10] sm:$0xff] %v1158_v23  ;;  %1019 = vst [vmem:[%s1785_s3 + $0x18] sm:$0xff] %v1159_v24  ;;  %v1169_v31 = vadd.f32 %v839_v29, %v148_v59  ;;  %v1177_v32 = vadd.f32 %v945_v30, %v148_v59  ;;  %v841_v33 = vpop.f32.mrb[6].mxu0  ;;  %v947_v34 = vpop.f32.mrb[6].mxu1 }
 0x14c   :  { %v960_v35 = vmax.f32 %v1168_v27, 0.0  ;;  %v962_v36 = vmax.f32 %v1176_v28, 0.0  ;;  %v1170_v37 = vadd.f32 %v841_v33, %v153_v22  ;;  %v1178_v38 = vadd.f32 %v947_v34, %v153_v22  ;;  %v843_v39 = vpop.f32.mrb[7].mxu0  ;;  %v949_v40 = vpop.f32.mrb[7].mxu1 }
 0x14d   :  { %v961_v41 = vmax.f32 %v1169_v31, 0.0  ;;  %v963_v42 = vmax.f32 %v1177_v32, 0.0  ;;  %v1171_v43 = vadd.f32 %v843_v39, %v153_v22  ;;  %v1179_v44 = vadd.f32 %v949_v40, %v153_v22 }
 0x14e   :  { %v964_v45 = vmax.f32 %v1170_v37, 0.0  ;;  %v966_v46 = vmax.f32 %v1178_v38, 0.0 }
 0x14f   :  { %v1160_v47 = vpack.c.bf16 %v961_v41, %v960_v35  ;;  %v1161_v48 = vpack.c.bf16 %v963_v42, %v962_v36  ;;  %v965_v49 = vmax.f32 %v1171_v43, 0.0  ;;  %v967_v50 = vmax.f32 %v1179_v44, 0.0 }
 0x151   :  { %1020 = vst [vmem:[%s1785_s3 + $0x20] sm:$0xff] %v1160_v47  ;;  %1021 = vst [vmem:[%s1785_s3 + $0x28] sm:$0xff] %v1161_v48  ;;  %v1162_v51 = vpack.c.bf16 %v965_v49, %v964_v45  ;;  %v1163_v52 = vpack.c.bf16 %v967_v50, %v966_v46 }
 0x153   :  { %1022 = vst [vmem:[%s1785_s3 + $0x30] sm:$0xff] %v1162_v51  ;;  %1023 = vst [vmem:[%s1785_s3 + $0x38] sm:$0xff] %v1163_v52 }

// kernel: _forward_impl.10
= control target key start
LH: loop header
LB: loop body
LE: loop exit
PB: predicated region body
PF: predicated region fallthrough
CT: control target
= control target key end

     0   :  { %s657_s12 = smov 0   ;;  %s659_s13 = smov 0   ;;  %s748_s0 = inlined_call_operand.vmem [shape: bf16[32,512], index: 0, kind: input, shape index: {}]   ;;  %s749_s1 = inlined_call_operand.vmem [shape: bf16[32,512], index: 1, kind: input, shape index: {}]   ;;  %s750_s2 = inlined_call_operand.vmem [shape: f32[32,1], index: 2, kind: input, shape index: {}]   ;;  %s751_s3 = inlined_call_operand.vmem [shape: f32[4,8,128], index: 3, kind: output, shape index: {}]  }
   0x1   :  { %s661_s14 = smov 0   ;;  %s663_s15 = smov 0  }
   0x2   :  { %s665_s16 = smov 0  }
   0x3 LB: > { %s25_s17 = sadd.s32 1, %s630_s15  ;;  %p41_p1 = scmp.ne.s32.totalorder %s622_s13, %s618_s12  ;;  %s634_s16 = sphi %s665_s16, %s13_s16   ;;  %s630_s15 = sphi %s663_s15, %s756_s15   ;;  %s626_s14 = sphi %s661_s14, %s755_s14   ;;  %s622_s13 = sphi %s659_s13, %s754_s13   ;;  %s618_s12 = sphi %s657_s12, %s753_s12  }
   0x4   : > { %p27_p0 = scmp.ge.s32.totalorder %s25_s17, 4  ;;  %p42_p2 = scmp.eq.s32.totalorder %s634_s16, 0 }
   0x5   : > { %s34_s20 = sadd.s32 1, %s622_s13  ;;  %p517_p5 = scmp.ge.s32.totalorder %s634_s16, 4 }
   0x6   : > { %s758_s17 = smov (%p27_p0, %s25_s17), 0  ;;  %p688_p3 = por %p42_p2, %p41_p1 }
   0x7   : > { %s31_s19 = ssub.s32 %s630_s15, %s758_s17  ;;  %145 = sbr.rel (%p517_p5) target bundleno = 28 (0x1c), region = 20 }
   0x8   : > { %p32_p4 = scmp.eq.s32.totalorder %s31_s19, 0 }
   0xa   : > { %s696_s21 = scalar_select %p32_p4, %s622_s13, %s34_s20  }
   0xe   : > { %148 = sbr.rel (!%p688_p3) target bundleno = 21 (0x15), region = 24  ;;  %s150_s22 = sand.u32 (%p688_p3), 1, %s622_s13  }
   0xf   : > { %s519_s23 = sshll.u32 (%p688_p3), %s630_s15, 2  ;;  %s518_s24 = sshll.u32 (%p688_p3), %s150_s22, 4 }
  0x10   : > { %s155_s27 = scalar_lea.vmem (%p688_p3), %s748_s0, %s519_s23  ;;  %s152_s28 = scalar_lea.vmem (%p688_p3), [#allocation2], %s518_s24 }
  0x11   : > { %v171_v0 = vld [vmem:[%s155_s27] sm:$0xf] (%p688_p3)  ;;  %v173_v1 = vld [vmem:[%s155_s27 + $0x10] sm:$0xf] (%p688_p3) }
  0x12   : > { %172 = vst [vmem:[%s152_s28] sm:$0xf] (%p688_p3), %v171_v0  ;;  %174 = vst [vmem:[%s152_s28 + $0x4] sm:$0xf] (%p688_p3), %v173_v1  ;;  %v175_v2 = vld [vmem:[%s155_s27 + $0x20] sm:$0xf] (%p688_p3) }
  0x13   : > { %v177_v3 = vld [vmem:[%s155_s27 + $0x30] sm:$0xf] (%p688_p3)  ;;  %176 = vst [vmem:[%s152_s28 + $0x8] sm:$0xf] (%p688_p3), %v175_v2 }
  0x14   : > { %178 = vst [vmem:[%s152_s28 + $0xc] sm:$0xf] (%p688_p3), %v177_v3 }
  0x15 PF: > { %209 = sbr.rel (!%p688_p3) target bundleno = 28 (0x1c), region = 65  ;;  %s211_s29 = sand.u32 (%p688_p3), 1, %s622_s13  }
  0x16   : > { %s521_s30 = sshll.u32 (%p688_p3), %s630_s15, 2  ;;  %s520_s4 = sshll.u32 (%p688_p3), %s211_s29, 4 }
  0x17   : > { %s216_s7 = scalar_lea.vmem (%p688_p3), %s749_s1, %s521_s30  ;;  %s213_s8 = scalar_lea.vmem (%p688_p3), [#allocation3], %s520_s4 }
  0x18   : > { %v232_v4 = vld [vmem:[%s216_s7] sm:$0xf] (%p688_p3)  ;;  %v234_v5 = vld [vmem:[%s216_s7 + $0x10] sm:$0xf] (%p688_p3) }
  0x19   : > { %233 = vst [vmem:[%s213_s8] sm:$0xf] (%p688_p3), %v232_v4  ;;  %235 = vst [vmem:[%s213_s8 + $0x4] sm:$0xf] (%p688_p3), %v234_v5  ;;  %v236_v6 = vld [vmem:[%s216_s7 + $0x20] sm:$0xf] (%p688_p3) }
  0x1a   : > { %v238_v7 = vld [vmem:[%s216_s7 + $0x30] sm:$0xf] (%p688_p3)  ;;  %237 = vst [vmem:[%s213_s8 + $0x8] sm:$0xf] (%p688_p3), %v236_v6 }
  0x1b   : > { %239 = vst [vmem:[%s213_s8 + $0xc] sm:$0xf] (%p688_p3), %v238_v7 }
  0x1c PF: > { %p522_p6 = scmp.ge.s32.totalorder %s634_s16, 1  ;;  %p269_p7 = scmp.lt.s32.totalorder %s634_s16, 5 }
  0x1e   : > { %p270_p8 = pnand %p522_p6, %p269_p7 }
  0x1f   : > { %v384_v8 = vld [vmem:[%s750_s2 + $0x10] sm:$0xff] (!%p270_p8)  ;;  %v382_v9 = vld [vmem:[%s750_s2] sm:$0xff] (!%p270_p8)  ;;  %v636_v10 = vmov (!%p270_p8), 0   ;;  %v385_v11 = vld [vmem:[%s750_s2 + $0x18] sm:$0xff] (!%p270_p8)  ;;  %s276_s24 = sand.u32 (!%p270_p8), 1, %s618_s12   ;;  %p311_p9 = scmp.lt.s32.totalorder (!%p270_p8), %s626_s14, 3 }
  0x20   : > { %273 = sbr.rel (%p270_p8) target bundleno = 381 (0x17d), region = 106  ;;  %591 = vset.pattern.permute.xlu1 (!%p270_p8), %v636_v10  ;;  %590 = vset.pattern.permute.xlu0 (!%p270_p8), %v636_v10  ;;  %v383_v12 = vld [vmem:[%s750_s2 + $0x8] sm:$0xff] (!%p270_p8)  ;;  %s523_s25 = sshll.u32 (!%p270_p8), %s276_s24, 4 }
  0x21   : > { %398 = vperm.xlu1 (!%p270_p8), %591, %v384_v8   ;;  %388 = vperm.xlu0 (!%p270_p8), %590, %v382_v9   ;;  %s278_s26 = scalar_lea.vmem (!%p270_p8), [#allocation2], %s523_s25  ;;  %s285_s27 = scalar_lea.vmem (!%p270_p8), [#allocation3], %s523_s25 }
  0x22   : > { %v529_v13 = vld [vmem:[%s278_s26] sm:$0xff] (!%p270_p8)   ;;  %v544_v17 = vld [vmem:[%s278_s26 + $0x8] sm:$0xff] (!%p270_p8)  }
  0x23   : > { %v537_v14 = vld [vmem:[%s285_s27] sm:$0xff] (!%p270_p8)   ;;  %v530_v15 = vunpack.c.l.bf16 (!%p270_p8), %v529_v13  ;;  %v531_v16 = vunpack.c.h.bf16 (!%p270_p8), %v529_v13  ;;  %v545_v20 = vld [vmem:[%s285_s27 + $0x8] sm:$0xff] (!%p270_p8)   ;;  %v534_v21 = vunpack.c.l.bf16 (!%p270_p8), %v544_v17  ;;  %v535_v27 = vunpack.c.h.bf16 (!%p270_p8), %v544_v17 }
  0x24   : > { %v538_v18 = vunpack.c.l.bf16 (!%p270_p8), %v537_v14  ;;  %v539_v19 = vunpack.c.h.bf16 (!%p270_p8), %v537_v14  ;;  %v542_v24 = vunpack.c.l.bf16 (!%p270_p8), %v545_v20  ;;  %v543_v30 = vunpack.c.h.bf16 (!%p270_p8), %v545_v20 }
  0x25   : > { %403 = vperm.xlu1 (!%p270_p8), %591, %v385_v11   ;;  %393 = vperm.xlu0 (!%p270_p8), %590, %v383_v12   ;;  %v336_v22 = vmul.f32 (!%p270_p8), %v530_v15, %v530_v15  ;;  %v337_v23 = vmul.f32 (!%p270_p8), %v531_v16, %v531_v16  ;;  %v338_v28 = vmul.f32 (!%p270_p8), %v534_v21, %v534_v21 }
  0x26   : > { %v351_v25 = vmul.f32 (!%p270_p8), %v538_v18, %v538_v18  ;;  %v352_v26 = vmul.f32 (!%p270_p8), %v539_v19, %v539_v19  ;;  %v353_v31 = vmul.f32 (!%p270_p8), %v542_v24, %v542_v24  ;;  %v339_v33 = vmul.f32 (!%p270_p8), %v535_v27, %v535_v27 }
  0x27   : > { %v340_v29 = vadd.f32 %v337_v23, %v336_v22  ;;  %v354_v35 = vmul.f32 %v543_v30, %v543_v30  ;;  %s760_s14 = smov (!%p311_p9, %s626_s14), 3 }
  0x28   : > { %v355_v32 = vadd.f32 %v352_v26, %v351_v25  ;;  %s525_s12 = sshll.u32 %s760_s14, 3 }
  0x29   : > { %v341_v34 = vadd.f32 %v340_v29, %v338_v28  ;;  %s314_s5 = scalar_lea.vmem %s751_s3, %s525_s12 }
  0x2a   : > { %v356_v36 = vadd.f32 %v355_v32, %v353_v31 }
  0x2b   : > { %v342_v37 = vadd.f32 %v341_v34, %v339_v33 }
  0x2c   : > { %v357_v38 = vadd.f32 %v356_v36, %v354_v35 }
  0x2d   : > { %v343_v39 = vrot.slane %v342_v37, 4 }
  0x2e   : > { %v358_v40 = vrot.slane %v357_v38, 4 }
  0x2f   : > { %v344_v41 = vadd.f32 %v343_v39, %v342_v37 }
  0x30   : > { %v359_v42 = vadd.f32 %v358_v40, %v357_v38 }
  0x31   : > { %v345_v43 = vrot.slane %v344_v41, 2 }
  0x32   : > { %v360_v44 = vrot.slane %v359_v42, 2 }
  0x33   : > { %v346_v45 = vadd.f32 %v345_v43, %v344_v41 }
  0x34   : > { %v361_v46 = vadd.f32 %v360_v44, %v359_v42 }
  0x35   : > { %v347_v47 = vrot.slane %v346_v45, 1 }
  0x36   : > { %v362_v48 = vrot.slane %v361_v46, 1 }
  0x37   : > { %v348_v49 = vadd.f32 %v347_v47, %v346_v45 }
  0x38   : > { %v363_v50 = vadd.f32 %v362_v48, %v361_v46 }
  0x39   : > { %v349_v51 = vadd.f32 1e-10, %v348_v49 }
  0x3a   : > { %v364_v52 = vadd.f32 1e-10, %v363_v50 }
  0x3b   : > { %592 = vrsqrt.f32 %v349_v51 }
  0x3c   : > { %594 = vrsqrt.f32 %v364_v52 }
  0x45   : > { %v593_v53 = vpop.eup %592 }
  0x46   : > { %v595_v54 = vpop.eup %594  ;;  %v370_v56 = vmul.f32 %v593_v53, %v530_v15  ;;  %v371_v58 = vmul.f32 %v593_v53, %v531_v16  ;;  %v372_v60 = vmul.f32 %v593_v53, %v534_v21  ;;  %v373_v63 = vmul.f32 %v593_v53, %v535_v27 }
  0x47   : > { %v366_v55 = vmul.f32 %v595_v54, %v538_v18  ;;  %v367_v57 = vmul.f32 %v595_v54, %v539_v19  ;;  %v368_v59 = vmul.f32 %v595_v54, %v542_v24  ;;  %v369_v62 = vmul.f32 %v595_v54, %v543_v30 }
  0x49   : > { %v374_v61 = vsub.f32 %v366_v55, %v370_v56  ;;  %v375_v0 = vsub.f32 %v367_v57, %v371_v58  ;;  %v376_v1 = vsub.f32 %v368_v59, %v372_v60  ;;  %v377_v5 = vsub.f32 %v369_v62, %v373_v63 }
  0x4b   : > { %v378_v4 = vmul.f32 %v374_v61, %v374_v61  ;;  %v379_v6 = vmul.f32 %v375_v0, %v375_v0  ;;  %v380_v7 = vmul.f32 %v376_v1, %v376_v1  ;;  %v381_v10 = vmul.f32 %v377_v5, %v377_v5 }
  0xa0   : > { %v399_v2 = vpop.permute.xlu1 %398  ;;  %v389_v3 = vpop.permute.xlu0 %388 }
  0xa1   : > { %v406_v9 = vmul.f32 %v389_v3, %v378_v4  ;;  %v408_v13 = vmul.f32 %v399_v2, %v380_v7 }
  0xa4   : > { %v394_v8 = vpop.permute.xlu0 %393  ;;  %v404_v12 = vpop.permute.xlu1 %403 }
  0xa5   : > { %v407_v11 = vmul.f32 %v394_v8, %v379_v6  ;;  %v409_v15 = vmul.f32 %v404_v12, %v381_v10 }
  0xa7   : > { %v410_v14 = vadd.f32 %v407_v11, %v406_v9 }
  0xa9   : > { %v411_v16 = vadd.f32 %v410_v14, %v408_v13 }
  0xab   : > { %v412_v17 = vadd.f32 %v411_v16, %v409_v15 }
  0xad   : > { %413 = vadd.xlane.f32.xlu0 %v412_v17 }
 0x13a   : > { %v414_v18 = vpop.xlane.xlu0 %413 }
 0x13b   : > { %v415_v19 = vrot.slane %v414_v18, 4 }
 0x13d   : > { %v416_v20 = vadd.f32 %v415_v19, %v414_v18 }
 0x13f   : > { %v417_v21 = vrot.slane %v416_v20, 2 }
 0x141   : > { %v418_v22 = vadd.f32 %v417_v21, %v416_v20 }
 0x143   : > { %v419_v23 = vrot.slane %v418_v22, 1 }
 0x145   : > { %v420_v24 = vadd.f32 %v419_v23, %v418_v22 }
 0x147   : > { %546 = vpush %v420_v24 }
 0x178   : > { %s547_s28 = spop %546 }
 0x179   : > { %s422_s29 = smul.f32 0.015625, %s547_s28 }
 0x17b   : > { %v424_v25 = vstv %s422_s29 }
 0x17c   : > { %426 = vst [vmem:[%s314_s5] sm:$0xff] %v424_v25 }
 0x17d PF: > { %s13_s16 = sadd.s32 1, %s634_s16   ;;  %s753_s12 = smov %s622_s13 }
 0x17e   : > { %p10_p10 = scmp.ge.s32.totalorder %s13_s16, 6   ;;  %s754_s13 = smov %s696_s21 }
 0x17f   : > { %s755_s14 = smov %s630_s15  ;;  %s756_s15 = smov %s758_s17 }
 0x180   :  { %12 = sbr.rel (!%p10_p10) target bundleno = 3 (0x3), region = 161 }

// kernel: _forward_impl.8
= control target key start
LH: loop header
LB: loop body
LE: loop exit
PB: predicated region body
PF: predicated region fallthrough
CT: control target
= control target key end

     0   :  { %vm1421_vm0 = vcmask 785408   ;;  %s3342_s0 = inlined_call_operand.vmem [shape: bf16[864,512], index: 0, kind: input, shape index: {}]   ;;  %s3343_s1 = inlined_call_operand.vmem [shape: bf16[32,864], index: 1, kind: input, shape index: {}]   ;;  %s3344_s2 = inlined_call_operand.vmem [shape: f32[32,1], index: 2, kind: input, shape index: {}]   ;;  %s3345_s3 = inlined_call_operand.vmem [shape: bf16[32,512], index: 3, kind: output, shape index: {}]  }
   0x1   :  { %v2245_v0 = vld [vmem:[%s3342_s0 + $0x4] ss:$16 sps:$4 sm:$0xff]   ;;  %v2247_v1 = vld [vmem:[%s3342_s0 + $0xc] ss:$16 sps:$4 sm:$0xff]   ;;  %v2249_v2 = vld [vmem:[%s3342_s0] ss:$16 sps:$4 sm:$0xff]  }
   0x2   :  { %1428 = vmatprep.subr.bf16.mxu0 %v2245_v0  ;;  %v2250_v3 = vld [vmem:[%s3342_s0 + $0x8] ss:$16 sps:$4 sm:$0xff]   ;;  %1640 = vmatprep.subr.bf16.mxu1 %v2247_v1  ;;  %v2251_v4 = vld [vmem:[%s3342_s0 + $0x24] ss:$16 sps:$4 sm:$0xff]   ;;  %v2253_v5 = vld [vmem:[%s3342_s0 + $0x2c] ss:$16 sps:$4 sm:$0xff]  }
   0x3   :  { %1429 = vmatpush1.bf16.msra.mxu0 %v2249_v2  ;;  %1641 = vmatpush1.bf16.msra.mxu1 %v2250_v3  ;;  %v2255_v6 = vld [vmem:[%s3342_s0 + $0x20] ss:$16 sps:$4 sm:$0xff]   ;;  %v2256_v7 = vld [vmem:[%s3342_s0 + $0x28] ss:$16 sps:$4 sm:$0xff]   ;;  %v2257_v8 = vld [vmem:[%s3342_s0 + $0x44] ss:$16 sps:$4 sm:$0xff]  }
   0x4   :  { %1430 = vmatprep.subr.bf16.mxu0 %v2251_v4  ;;  %1642 = vmatprep.subr.bf16.mxu1 %v2253_v5  ;;  %v2259_v9 = vld [vmem:[%s3342_s0 + $0x4c] ss:$16 sps:$4 sm:$0xff]   ;;  %v2261_v10 = vld [vmem:[%s3342_s0 + $0x40] ss:$16 sps:$4 sm:$0xff]   ;;  %v2262_v11 = vld [vmem:[%s3342_s0 + $0x48] ss:$16 sps:$4 sm:$0xff]  }
   0x5   :  { %v2263_v12 = vld [vmem:[%s3342_s0 + $0x64] ss:$16 sps:$4 sm:$0xff]   ;;  %v2265_v13 = vld [vmem:[%s3342_s0 + $0x6c] ss:$16 sps:$4 sm:$0xff]   ;;  %v2267_v14 = vld [vmem:[%s3342_s0 + $0x60] ss:$16 sps:$4 sm:$0xff]  }
   0x6   :  { %v2268_v15 = vld [vmem:[%s3342_s0 + $0x68] ss:$16 sps:$4 sm:$0xff]   ;;  %v2269_v16 = vld [vmem:[%s3342_s0 + $0x84] ss:$16 sps:$4 sm:$0xff]   ;;  %v2271_v17 = vld [vmem:[%s3342_s0 + $0x8c] ss:$16 sps:$4 sm:$0xff]  }
   0x7   :  { %1431 = vmatpush1.bf16.msra.mxu0 %v2255_v6  ;;  %1643 = vmatpush1.bf16.msra.mxu1 %v2256_v7  ;;  %v2273_v18 = vld [vmem:[%s3342_s0 + $0x80] ss:$16 sps:$4 sm:$0xff]   ;;  %v2274_v19 = vld [vmem:[%s3342_s0 + $0x88] ss:$16 sps:$4 sm:$0xff]   ;;  %v2275_v20 = vld [vmem:[%s3342_s0 + $0xa4] ss:$16 sps:$4 sm:$0xff]  }
   0x8   :  { %1432 = vmatprep.subr.bf16.mxu0 %v2257_v8  ;;  %1644 = vmatprep.subr.bf16.mxu1 %v2259_v9  ;;  %v2277_v21 = vld [vmem:[%s3342_s0 + $0xac] ss:$16 sps:$4 sm:$0xff]   ;;  %v2279_v22 = vld [vmem:[%s3342_s0 + $0xa0] ss:$16 sps:$4 sm:$0xff]   ;;  %v2280_v23 = vld [vmem:[%s3342_s0 + $0xa8] ss:$16 sps:$4 sm:$0xff]  }
   0x9   :  { %v2281_v24 = vld [vmem:[%s3342_s0 + $0xc4] ss:$16 sps:$4 sm:$0xff]   ;;  %v2283_v25 = vld [vmem:[%s3342_s0 + $0xcc] ss:$16 sps:$4 sm:$0xff]   ;;  %v2285_v26 = vld [vmem:[%s3342_s0 + $0xc0] ss:$16 sps:$4 sm:$0xff]  }
   0xa   :  { %v2286_v27 = vld [vmem:[%s3342_s0 + $0xc8] ss:$16 sps:$4 sm:$0xff]   ;;  %v2287_v28 = vld [vmem:[%s3342_s0 + $0xe4] ss:$16 sps:$4 sm:$0xff]   ;;  %v2289_v29 = vld [vmem:[%s3342_s0 + $0xec] ss:$16 sps:$4 sm:$0xff]  }
   0xb   :  { %1433 = vmatpush1.bf16.msra.mxu0 %v2261_v10  ;;  %1645 = vmatpush1.bf16.msra.mxu1 %v2262_v11  ;;  %v2291_v30 = vld [vmem:[%s3342_s0 + $0xe0] ss:$16 sps:$4 sm:$0xff]   ;;  %v2292_v31 = vld [vmem:[%s3342_s0 + $0xe8] ss:$16 sps:$4 sm:$0xff]   ;;  %v2293_v32 = vld [vmem:[%s3342_s0 + $0x104] ss:$16 sps:$4 sm:$0xff]  }
   0xc   :  { %1434 = vmatprep.subr.bf16.mxu0 %v2263_v12  ;;  %1646 = vmatprep.subr.bf16.mxu1 %v2265_v13  ;;  %v2295_v33 = vld [vmem:[%s3342_s0 + $0x10c] ss:$16 sps:$4 sm:$0xff]   ;;  %v2297_v34 = vld [vmem:[%s3342_s0 + $0x100] ss:$16 sps:$4 sm:$0xff]   ;;  %v2298_v35 = vld [vmem:[%s3342_s0 + $0x108] ss:$16 sps:$4 sm:$0xff]  }
   0xd   :  { %v2299_v36 = vld [vmem:[%s3342_s0 + $0x124] ss:$16 sps:$4 sm:$0xff]   ;;  %v2301_v37 = vld [vmem:[%s3342_s0 + $0x12c] ss:$16 sps:$4 sm:$0xff]   ;;  %v2303_v38 = vld [vmem:[%s3342_s0 + $0x120] ss:$16 sps:$4 sm:$0xff]  }
   0xe   :  { %v2304_v39 = vld [vmem:[%s3342_s0 + $0x128] ss:$16 sps:$4 sm:$0xff]   ;;  %v2305_v40 = vld [vmem:[%s3342_s0 + $0x144] ss:$16 sps:$4 sm:$0xff]   ;;  %v2307_v41 = vld [vmem:[%s3342_s0 + $0x14c] ss:$16 sps:$4 sm:$0xff]  }
   0xf   :  { %1435 = vmatpush1.bf16.msra.mxu0 %v2267_v14  ;;  %1647 = vmatpush1.bf16.msra.mxu1 %v2268_v15  ;;  %v2309_v42 = vld [vmem:[%s3342_s0 + $0x140] ss:$16 sps:$4 sm:$0xff]   ;;  %v2310_v43 = vld [vmem:[%s3342_s0 + $0x148] ss:$16 sps:$4 sm:$0xff]   ;;  %v2311_v44 = vld [vmem:[%s3342_s0 + $0x164] ss:$16 sps:$4 sm:$0xff]  }
  0x10   :  { %1436 = vmatprep.subr.bf16.mxu0 %v2269_v16  ;;  %1648 = vmatprep.subr.bf16.mxu1 %v2271_v17  ;;  %v2313_v45 = vld [vmem:[%s3342_s0 + $0x16c] ss:$16 sps:$4 sm:$0xff]   ;;  %v2315_v46 = vld [vmem:[%s3342_s0 + $0x160] ss:$16 sps:$4 sm:$0xff]   ;;  %v2316_v47 = vld [vmem:[%s3342_s0 + $0x168] ss:$16 sps:$4 sm:$0xff]  }
  0x11   :  { %v2343_v48 = vld [vmem:[%s3343_s1 + $0x4] ss:$28 sps:$4 sm:$0xff]   ;;  %v2319_v50 = vld [vmem:[%s3342_s0 + $0x18c] ss:$16 sps:$4 sm:$0xff]   ;;  %v2322_v52 = vld [vmem:[%s3342_s0 + $0x188] ss:$16 sps:$4 sm:$0xff]  }
  0x12   :  { %v2317_v49 = vld [vmem:[%s3342_s0 + $0x184] ss:$16 sps:$4 sm:$0xff]   ;;  %1460 = vmatprep.mubr.bf16.mxu0 %v2343_v48  ;;  %1672 = vmatprep.mubr.bf16.mxu1 %v2343_v48  ;;  %v2321_v51 = vld [vmem:[%s3342_s0 + $0x180] ss:$16 sps:$4 sm:$0xff]   ;;  %v2325_v54 = vld [vmem:[%s3342_s0 + $0x1ac] ss:$16 sps:$4 sm:$0xff]  }
  0x13   :  { %1437 = vmatpush1.bf16.msra.mxu0 %v2273_v18  ;;  %1649 = vmatpush1.bf16.msra.mxu1 %v2274_v19  ;;  %v2323_v53 = vld [vmem:[%s3342_s0 + $0x1a4] ss:$16 sps:$4 sm:$0xff]   ;;  %v2327_v55 = vld [vmem:[%s3342_s0 + $0x1a0] ss:$16 sps:$4 sm:$0xff]   ;;  %v2328_v56 = vld [vmem:[%s3342_s0 + $0x1a8] ss:$16 sps:$4 sm:$0xff]  }
  0x14   :  { %1438 = vmatprep.subr.bf16.mxu0 %v2275_v20  ;;  %1650 = vmatprep.subr.bf16.mxu1 %v2277_v21  ;;  %v2329_v57 = vld [vmem:[%s3342_s0 + $0x1c4] ss:$16 sps:$4 sm:$0xff]   ;;  %v2331_v58 = vld [vmem:[%s3342_s0 + $0x1cc] ss:$16 sps:$4 sm:$0xff]   ;;  %v2333_v59 = vld [vmem:[%s3342_s0 + $0x1c0] ss:$16 sps:$4 sm:$0xff]  }
  0x15   :  { %v2334_v60 = vld [vmem:[%s3342_s0 + $0x1c8] ss:$16 sps:$4 sm:$0xff]   ;;  %v2335_v61 = vld [vmem:[%s3342_s0 + $0x1e4] ss:$16 sps:$4 sm:$0xff]   ;;  %v2337_v62 = vld [vmem:[%s3342_s0 + $0x1ec] ss:$16 sps:$4 sm:$0xff]  }
  0x16   :  { %v2339_v63 = vld [vmem:[%s3342_s0 + $0x1e0] ss:$16 sps:$4 sm:$0xff]   ;;  %v2340_v0 = vld [vmem:[%s3342_s0 + $0x1e8] ss:$16 sps:$4 sm:$0xff]   ;;  %v2346_v1 = vld [vmem:[%s3342_s0 + $0x204] ss:$16 sps:$4 sm:$0xff]  }
  0x17   :  { %1439 = vmatpush1.bf16.msra.mxu0 %v2279_v22  ;;  %1651 = vmatpush1.bf16.msra.mxu1 %v2280_v23  ;;  %v2349_v2 = vld [vmem:[%s3342_s0 + $0x20c] ss:$16 sps:$4 sm:$0xff]   ;;  %v2344_v4 = vld [vmem:[%s3342_s0 + $0x200] ss:$16 sps:$4 sm:$0xff]   ;;  %v2347_v5 = vld [vmem:[%s3342_s0 + $0x208] ss:$16 sps:$4 sm:$0xff]  }
  0x18   :  { %1440 = vmatprep.subr.bf16.mxu0 %v2281_v24  ;;  %1652 = vmatprep.subr.bf16.mxu1 %v2283_v25  ;;  %v2341_v3 = vld [vmem:[%s3343_s1] ss:$28 sps:$4 sm:$0xff]   ;;  %v2352_v6 = vld [vmem:[%s3342_s0 + $0x224] ss:$16 sps:$4 sm:$0xff]   ;;  %v2353_v9 = vld [vmem:[%s3342_s0 + $0x228] ss:$16 sps:$4 sm:$0xff]  }
  0x19   :  { %v2355_v7 = vld [vmem:[%s3342_s0 + $0x22c] ss:$16 sps:$4 sm:$0xff]   ;;  %v2350_v8 = vld [vmem:[%s3342_s0 + $0x220] ss:$16 sps:$4 sm:$0xff]   ;;  %v2358_v10 = vld [vmem:[%s3342_s0 + $0x244] ss:$16 sps:$4 sm:$0xff]  }
  0x1a   :  { %v2361_v11 = vld [vmem:[%s3342_s0 + $0x24c] ss:$16 sps:$4 sm:$0xff]   ;;  %v2356_v12 = vld [vmem:[%s3342_s0 + $0x240] ss:$16 sps:$4 sm:$0xff]   ;;  %v2359_v13 = vld [vmem:[%s3342_s0 + $0x248] ss:$16 sps:$4 sm:$0xff]  }
  0x1b   :  { %1441 = vmatpush1.bf16.msra.mxu0 %v2285_v26  ;;  %1653 = vmatpush1.bf16.msra.mxu1 %v2286_v27  ;;  %v2364_v14 = vld [vmem:[%s3342_s0 + $0x264] ss:$16 sps:$4 sm:$0xff]   ;;  %v2367_v15 = vld [vmem:[%s3342_s0 + $0x26c] ss:$16 sps:$4 sm:$0xff]   ;;  %v2362_v16 = vld [vmem:[%s3342_s0 + $0x260] ss:$16 sps:$4 sm:$0xff]  }
  0x1c   :  { %1442 = vmatprep.subr.bf16.mxu0 %v2287_v28  ;;  %1654 = vmatprep.subr.bf16.mxu1 %v2289_v29  ;;  %v2365_v17 = vld [vmem:[%s3342_s0 + $0x268] ss:$16 sps:$4 sm:$0xff]   ;;  %v2370_v18 = vld [vmem:[%s3342_s0 + $0x284] ss:$16 sps:$4 sm:$0xff]   ;;  %v2373_v19 = vld [vmem:[%s3342_s0 + $0x28c] ss:$16 sps:$4 sm:$0xff]  }
  0x1d   :  { %v2368_v20 = vld [vmem:[%s3342_s0 + $0x280] ss:$16 sps:$4 sm:$0xff]   ;;  %v2371_v21 = vld [vmem:[%s3342_s0 + $0x288] ss:$16 sps:$4 sm:$0xff]   ;;  %v2376_v22 = vld [vmem:[%s3342_s0 + $0x2a4] ss:$16 sps:$4 sm:$0xff]  }
  0x1e   :  { %v2379_v23 = vld [vmem:[%s3342_s0 + $0x2ac] ss:$16 sps:$4 sm:$0xff]   ;;  %v2374_v25 = vld [vmem:[%s3342_s0 + $0x2a0] ss:$16 sps:$4 sm:$0xff]   ;;  %v2377_v26 = vld [vmem:[%s3342_s0 + $0x2a8] ss:$16 sps:$4 sm:$0xff]  }
  0x1f   :  { %1443 = vmatpush1.bf16.msra.mxu0 %v2291_v30  ;;  %1655 = vmatpush1.bf16.msra.mxu1 %v2292_v31  ;;  %v2428_v24 = vld [vmem:[%s3343_s1 + $0x3c] ss:$28 sps:$4 sm:$0xff]   ;;  %v2382_v27 = vld [vmem:[%s3342_s0 + $0x2c4] ss:$16 sps:$4 sm:$0xff]   ;;  %v2380_v30 = vld [vmem:[%s3342_s0 + $0x2c0] ss:$16 sps:$4 sm:$0xff]  }
  0x20   :  { %1444 = vmatprep.subr.bf16.mxu0 %v2293_v32  ;;  %1656 = vmatprep.subr.bf16.mxu1 %v2295_v33  ;;  %v2385_v28 = vld [vmem:[%s3342_s0 + $0x2cc] ss:$16 sps:$4 sm:$0xff]   ;;  %v2436_v29 = vld [vmem:[%s3343_s1 + $0x38] ss:$28 sps:$4 sm:$0xff]   ;;  %v2404_v48 = vld [vmem:[%s3342_s0 + $0x340] ss:$16 sps:$4 sm:$0xff]  }
  0x21   :  { %v2383_v31 = vld [vmem:[%s3342_s0 + $0x2c8] ss:$16 sps:$4 sm:$0xff]   ;;  %v2388_v32 = vld [vmem:[%s3342_s0 + $0x2e4] ss:$16 sps:$4 sm:$0xff]   ;;  %v2391_v33 = vld [vmem:[%s3342_s0 + $0x2ec] ss:$16 sps:$4 sm:$0xff]  }
  0x23   :  { %1445 = vmatpush1.bf16.msra.mxu0 %v2297_v34  ;;  %1657 = vmatpush1.bf16.msra.mxu1 %v2298_v35  ;;  %v2445_v34 = vld [vmem:[%s3343_s1 + $0xc] ss:$28 sps:$4 sm:$0xff]   ;;  %v2589_v35 = vmov 0  }
  0x24   :  { %1446 = vmatprep.subr.bf16.mxu0 %v2299_v36  ;;  %1658 = vmatprep.subr.bf16.mxu1 %v2301_v37  ;;  %v2386_v36 = vld [vmem:[%s3342_s0 + $0x2e0] ss:$16 sps:$4 sm:$0xff]   ;;  %v2389_v37 = vld [vmem:[%s3342_s0 + $0x2e8] ss:$16 sps:$4 sm:$0xff]  }
  0x25   :  { %2243 = vset.pattern.permute.xlu0 %v2589_v35  ;;  %2244 = vset.pattern.permute.xlu1 %v2589_v35 }
  0x27   :  { %1447 = vmatpush1.bf16.msra.mxu0 %v2303_v38  ;;  %1659 = vmatpush1.bf16.msra.mxu1 %v2304_v39  ;;  %v2394_v38 = vld [vmem:[%s3342_s0 + $0x304] ss:$16 sps:$4 sm:$0xff]   ;;  %v2397_v39 = vld [vmem:[%s3342_s0 + $0x30c] ss:$16 sps:$4 sm:$0xff]  }
  0x28   :  { %1448 = vmatprep.subr.bf16.mxu0 %v2305_v40  ;;  %1660 = vmatprep.subr.bf16.mxu1 %v2307_v41  ;;  %v2392_v40 = vld [vmem:[%s3342_s0 + $0x300] ss:$16 sps:$4 sm:$0xff]   ;;  %v2395_v41 = vld [vmem:[%s3342_s0 + $0x308] ss:$16 sps:$4 sm:$0xff]  }
  0x2b   :  { %1449 = vmatpush1.bf16.msra.mxu0 %v2309_v42  ;;  %1661 = vmatpush1.bf16.msra.mxu1 %v2310_v43  ;;  %v2400_v42 = vld [vmem:[%s3342_s0 + $0x324] ss:$16 sps:$4 sm:$0xff]   ;;  %v2403_v43 = vld [vmem:[%s3342_s0 + $0x32c] ss:$16 sps:$4 sm:$0xff]  }
  0x2c   :  { %1450 = vmatprep.subr.bf16.mxu0 %v2311_v44  ;;  %1662 = vmatprep.subr.bf16.mxu1 %v2313_v45  ;;  %v2398_v44 = vld [vmem:[%s3342_s0 + $0x320] ss:$16 sps:$4 sm:$0xff]   ;;  %v2401_v45 = vld [vmem:[%s3342_s0 + $0x328] ss:$16 sps:$4 sm:$0xff]  }
  0x2f   :  { %1451 = vmatpush1.bf16.msra.mxu0 %v2315_v46  ;;  %1663 = vmatpush1.bf16.msra.mxu1 %v2316_v47  ;;  %v2406_v46 = vld [vmem:[%s3342_s0 + $0x344] ss:$16 sps:$4 sm:$0xff]   ;;  %v2409_v47 = vld [vmem:[%s3342_s0 + $0x34c] ss:$16 sps:$4 sm:$0xff]  }
  0x30   :  { %1452 = vmatprep.subr.bf16.mxu0 %v2317_v49  ;;  %1664 = vmatprep.subr.bf16.mxu1 %v2319_v50  ;;  %v2407_v49 = vld [vmem:[%s3342_s0 + $0x348] ss:$16 sps:$4 sm:$0xff]   ;;  %v2412_v50 = vld [vmem:[%s3342_s0 + $0x364] ss:$16 sps:$4 sm:$0xff]  }
  0x33   :  { %1453 = vmatpush1.bf16.msra.mxu0 %v2321_v51  ;;  %1665 = vmatpush1.bf16.msra.mxu1 %v2322_v52  ;;  %v2415_v51 = vld [vmem:[%s3342_s0 + $0x36c] ss:$16 sps:$4 sm:$0xff]   ;;  %v2410_v52 = vld [vmem:[%s3342_s0 + $0x360] ss:$16 sps:$4 sm:$0xff]  }
  0x34   :  { %1454 = vmatprep.subr.bf16.mxu0 %v2323_v53  ;;  %1666 = vmatprep.subr.bf16.mxu1 %v2325_v54  ;;  %v2413_v53 = vld [vmem:[%s3342_s0 + $0x368] ss:$16 sps:$4 sm:$0xff]   ;;  %v2418_v54 = vld [vmem:[%s3342_s0 + $0x384] ss:$16 sps:$4 sm:$0xff]  }
  0x37   :  { %1455 = vmatpush1.bf16.msra.mxu0 %v2327_v55  ;;  %1667 = vmatpush1.bf16.msra.mxu1 %v2328_v56  ;;  %v2421_v55 = vld [vmem:[%s3342_s0 + $0x38c] ss:$16 sps:$4 sm:$0xff]   ;;  %v2416_v56 = vld [vmem:[%s3342_s0 + $0x380] ss:$16 sps:$4 sm:$0xff]  }
  0x38   :  { %1456 = vmatprep.subr.bf16.mxu0 %v2329_v57  ;;  %1668 = vmatprep.subr.bf16.mxu1 %v2331_v58  ;;  %v2419_v57 = vld [vmem:[%s3342_s0 + $0x388] ss:$16 sps:$4 sm:$0xff]   ;;  %v2424_v58 = vld [vmem:[%s3342_s0 + $0x3a4] ss:$16 sps:$4 sm:$0xff]  }
  0x3b   :  { %1457 = vmatpush1.bf16.msra.mxu0 %v2333_v59  ;;  %1669 = vmatpush1.bf16.msra.mxu1 %v2334_v60  ;;  %v2427_v59 = vld [vmem:[%s3342_s0 + $0x3ac] ss:$16 sps:$4 sm:$0xff]   ;;  %v2422_v60 = vld [vmem:[%s3342_s0 + $0x3a0] ss:$16 sps:$4 sm:$0xff]  }
  0x3c   :  { %1458 = vmatprep.subr.bf16.mxu0 %v2335_v61  ;;  %1670 = vmatprep.subr.bf16.mxu1 %v2337_v62  ;;  %v2425_v61 = vld [vmem:[%s3342_s0 + $0x3a8] ss:$16 sps:$4 sm:$0xff]   ;;  %v2432_v62 = vld [vmem:[%s3342_s0 + $0x3c4] ss:$16 sps:$4 sm:$0xff]  }
  0x3f   :  { %1459 = vmatpush1.bf16.msra.mxu0 %v2339_v63  ;;  %1671 = vmatpush1.bf16.msra.mxu1 %v2340_v0  ;;  %v2435_v63 = vld [vmem:[%s3342_s0 + $0x3cc] ss:$16 sps:$4 sm:$0xff]   ;;  %v2430_v0 = vld [vmem:[%s3342_s0 + $0x3c0] ss:$16 sps:$4 sm:$0xff]  }
  0x40   :  { %1481 = vmatprep.subr.bf16.mxu0 %v2346_v1  ;;  %1693 = vmatprep.subr.bf16.mxu1 %v2349_v2  ;;  %v2433_v1 = vld [vmem:[%s3342_s0 + $0x3c8] ss:$16 sps:$4 sm:$0xff]   ;;  %v2439_v2 = vld [vmem:[%s3342_s0 + $0x3e4] ss:$16 sps:$4 sm:$0xff]  }
  0x42   :  { %1461 = vmatmul.mubr.bf16.vlgmr.msra.gmra.mrb[0].mxu0 %v2341_v3  ;;  %1673 = vmatmul.mubr.bf16.vlgmr.msra.gmra.mrb[0].mxu1 %v2341_v3  ;;  %v2442_v3 = vld [vmem:[%s3342_s0 + $0x3ec] ss:$16 sps:$4 sm:$0xff]  }
  0x43   :  { %1482 = vmatpush1.bf16.msra.mxu0 %v2344_v4  ;;  %1694 = vmatpush1.bf16.msra.mxu1 %v2347_v5  ;;  %v2437_v4 = vld [vmem:[%s3342_s0 + $0x3e0] ss:$16 sps:$4 sm:$0xff]   ;;  %v2440_v5 = vld [vmem:[%s3342_s0 + $0x3e8] ss:$16 sps:$4 sm:$0xff]  }
  0x44   :  { %1483 = vmatprep.subr.bf16.mxu0 %v2352_v6  ;;  %1695 = vmatprep.subr.bf16.mxu1 %v2355_v7  ;;  %v2448_v6 = vld [vmem:[%s3342_s0 + $0x404] ss:$16 sps:$4 sm:$0xff]   ;;  %v2451_v7 = vld [vmem:[%s3342_s0 + $0x40c] ss:$16 sps:$4 sm:$0xff]  }
  0x45   :  { %1470 = vmatprep.mubr.bf16.mxu0 %v2428_v24  ;;  %1682 = vmatprep.mubr.bf16.mxu1 %v2428_v24  ;;  %v2464_v24 = vld [vmem:[%s3342_s0 + $0x460] ss:$16 sps:$4 sm:$0xff]  }
  0x47   :  { %1484 = vmatpush1.bf16.msra.mxu0 %v2350_v8  ;;  %1696 = vmatpush1.bf16.msra.mxu1 %v2353_v9  ;;  %v2443_v8 = vld [vmem:[%s3343_s1 + $0x8] ss:$28 sps:$4 sm:$0xff]   ;;  %v2446_v9 = vld [vmem:[%s3342_s0 + $0x400] ss:$16 sps:$4 sm:$0xff]  }
  0x48   :  { %1485 = vmatprep.subr.bf16.mxu0 %v2358_v10  ;;  %1697 = vmatprep.subr.bf16.mxu1 %v2361_v11  ;;  %v2449_v10 = vld [vmem:[%s3342_s0 + $0x408] ss:$16 sps:$4 sm:$0xff]   ;;  %v2454_v11 = vld [vmem:[%s3342_s0 + $0x424] ss:$16 sps:$4 sm:$0xff]  }
  0x4a   :  { %1471 = vmatmul.mubr.bf16.gmra.mrb[4].mxu0 %v2436_v29  ;;  %1683 = vmatmul.mubr.bf16.gmra.mrb[4].mxu1 %v2436_v29  ;;  %v2473_v29 = vld [vmem:[%s3342_s0 + $0x488] ss:$16 sps:$4 sm:$0xff]  }
  0x4b   :  { %1486 = vmatpush1.bf16.msra.mxu0 %v2356_v12  ;;  %1698 = vmatpush1.bf16.msra.mxu1 %v2359_v13  ;;  %v2457_v12 = vld [vmem:[%s3342_s0 + $0x42c] ss:$16 sps:$4 sm:$0xff]   ;;  %v2530_v13 = vld [vmem:[%s3343_s1 + $0x44] ss:$28 sps:$4 sm:$0xff]  }
  0x4c   :  { %1487 = vmatprep.subr.bf16.mxu0 %v2364_v14  ;;  %1699 = vmatprep.subr.bf16.mxu1 %v2367_v15  ;;  %v2452_v14 = vld [vmem:[%s3342_s0 + $0x420] ss:$16 sps:$4 sm:$0xff]   ;;  %v2455_v15 = vld [vmem:[%s3342_s0 + $0x428] ss:$16 sps:$4 sm:$0xff]  }
  0x4d   :  { %1513 = vmatprep.mubr.bf16.mxu0 %v2445_v34  ;;  %1725 = vmatprep.mubr.bf16.mxu1 %v2445_v34  ;;  %v2484_v34 = vld [vmem:[%s3342_s0 + $0x4c4] ss:$16 sps:$4 sm:$0xff]  }
  0x4f   :  { %1488 = vmatpush1.bf16.msra.mxu0 %v2362_v16  ;;  %1700 = vmatpush1.bf16.msra.mxu1 %v2365_v17  ;;  %v2460_v16 = vld [vmem:[%s3342_s0 + $0x444] ss:$16 sps:$4 sm:$0xff]   ;;  %v2463_v17 = vld [vmem:[%s3342_s0 + $0x44c] ss:$16 sps:$4 sm:$0xff]  }
  0x50   :  { %1489 = vmatprep.subr.bf16.mxu0 %v2370_v18  ;;  %1701 = vmatprep.subr.bf16.mxu1 %v2373_v19  ;;  %v2458_v18 = vld [vmem:[%s3342_s0 + $0x440] ss:$16 sps:$4 sm:$0xff]   ;;  %v2461_v19 = vld [vmem:[%s3342_s0 + $0x448] ss:$16 sps:$4 sm:$0xff]  }
  0x53   :  { %1490 = vmatpush1.bf16.msra.mxu0 %v2368_v20  ;;  %1702 = vmatpush1.bf16.msra.mxu1 %v2371_v21  ;;  %v2538_v20 = vld [vmem:[%s3343_s1 + $0x40] ss:$28 sps:$4 sm:$0xff]   ;;  %v2466_v21 = vld [vmem:[%s3342_s0 + $0x464] ss:$16 sps:$4 sm:$0xff]  }
  0x54   :  { %1491 = vmatprep.subr.bf16.mxu0 %v2376_v22  ;;  %1703 = vmatprep.subr.bf16.mxu1 %v2379_v23  ;;  %v2469_v22 = vld [vmem:[%s3342_s0 + $0x46c] ss:$16 sps:$4 sm:$0xff]   ;;  %v2547_v23 = vld [vmem:[%s3343_s1 + $0x14] ss:$28 sps:$4 sm:$0xff]  }
  0x57   :  { %1492 = vmatpush1.bf16.msra.mxu0 %v2374_v25  ;;  %1704 = vmatpush1.bf16.msra.mxu1 %v2377_v26  ;;  %v2467_v25 = vld [vmem:[%s3342_s0 + $0x468] ss:$16 sps:$4 sm:$0xff]   ;;  %v2472_v26 = vld [vmem:[%s3342_s0 + $0x484] ss:$16 sps:$4 sm:$0xff]  }
  0x58   :  { %1493 = vmatprep.subr.bf16.mxu0 %v2382_v27  ;;  %1705 = vmatprep.subr.bf16.mxu1 %v2385_v28  ;;  %v2475_v27 = vld [vmem:[%s3342_s0 + $0x48c] ss:$16 sps:$4 sm:$0xff]   ;;  %v2470_v28 = vld [vmem:[%s3342_s0 + $0x480] ss:$16 sps:$4 sm:$0xff]  }
  0x5b   :  { %1494 = vmatpush1.bf16.msra.mxu0 %v2380_v30  ;;  %1706 = vmatpush1.bf16.msra.mxu1 %v2383_v31  ;;  %v2478_v30 = vld [vmem:[%s3342_s0 + $0x4a4] ss:$16 sps:$4 sm:$0xff]   ;;  %v2481_v31 = vld [vmem:[%s3342_s0 + $0x4ac] ss:$16 sps:$4 sm:$0xff]  }
  0x5c   :  { %1495 = vmatprep.subr.bf16.mxu0 %v2388_v32  ;;  %1707 = vmatprep.subr.bf16.mxu1 %v2391_v33  ;;  %v2476_v32 = vld [vmem:[%s3342_s0 + $0x4a0] ss:$16 sps:$4 sm:$0xff]   ;;  %v2479_v33 = vld [vmem:[%s3342_s0 + $0x4a8] ss:$16 sps:$4 sm:$0xff]  }
  0x5f   :  { %1496 = vmatpush1.bf16.msra.mxu0 %v2386_v36  ;;  %1708 = vmatpush1.bf16.msra.mxu1 %v2389_v37  ;;  %v2487_v36 = vld [vmem:[%s3342_s0 + $0x4cc] ss:$16 sps:$4 sm:$0xff]   ;;  %v2482_v37 = vld [vmem:[%s3342_s0 + $0x4c0] ss:$16 sps:$4 sm:$0xff]  }
  0x60   :  { %1497 = vmatprep.subr.bf16.mxu0 %v2394_v38  ;;  %1709 = vmatprep.subr.bf16.mxu1 %v2397_v39  ;;  %v2485_v38 = vld [vmem:[%s3342_s0 + $0x4c8] ss:$16 sps:$4 sm:$0xff]   ;;  %v2490_v39 = vld [vmem:[%s3342_s0 + $0x4e4] ss:$16 sps:$4 sm:$0xff]  }
  0x63   :  { %1498 = vmatpush1.bf16.msra.mxu0 %v2392_v40  ;;  %1710 = vmatpush1.bf16.msra.mxu1 %v2395_v41  ;;  %v2493_v40 = vld [vmem:[%s3342_s0 + $0x4ec] ss:$16 sps:$4 sm:$0xff]   ;;  %v247_v41 = vld [vmem:[%s3344_s2] sm:$0xff] }
  0x64   :  { %1499 = vmatprep.subr.bf16.mxu0 %v2400_v42  ;;  %1711 = vmatprep.subr.bf16.mxu1 %v2403_v43  ;;  %v249_v42 = vld [vmem:[%s3344_s2 + $0x10] sm:$0xff] }
  0x65   :  { %v2488_v43 = vld [vmem:[%s3342_s0 + $0x4e0] ss:$16 sps:$4 sm:$0xff]   ;;  %253 = vperm.xlu0 %2243, %v247_v41   ;;  %263 = vperm.xlu1 %2244, %v249_v42   ;;  %v2584_v42 = vld [vmem:[%s3342_s0 + $0x6a8] ss:$16 sps:$4 sm:$0xff]  }
  0x66   :  { %v2581_v41 = vld [vmem:[%s3342_s0 + $0x6a0] ss:$16 sps:$4 sm:$0xff]  }
  0x67   :  { %1500 = vmatpush1.bf16.msra.mxu0 %v2398_v44  ;;  %1712 = vmatpush1.bf16.msra.mxu1 %v2401_v45  ;;  %v2491_v44 = vld [vmem:[%s3342_s0 + $0x4e8] ss:$16 sps:$4 sm:$0xff]  }
  0x68   :  { %1501 = vmatprep.subr.bf16.mxu0 %v2406_v46  ;;  %1713 = vmatprep.subr.bf16.mxu1 %v2409_v47  ;;  %v248_v45 = vld [vmem:[%s3344_s2 + $0x8] sm:$0xff]  ;;  %v250_v46 = vld [vmem:[%s3344_s2 + $0x18] sm:$0xff]  ;;  %v2496_v47 = vld [vmem:[%s3342_s0 + $0x504] ss:$16 sps:$4 sm:$0xff]  }
  0x69   :  { %258 = vperm.xlu0 %2243, %v248_v45   ;;  %268 = vperm.xlu1 %2244, %v250_v46  }
  0x6b   :  { %1502 = vmatpush1.bf16.msra.mxu0 %v2404_v48  ;;  %1714 = vmatpush1.bf16.msra.mxu1 %v2407_v49  ;;  %v2499_v48 = vld [vmem:[%s3342_s0 + $0x50c] ss:$16 sps:$4 sm:$0xff]   ;;  %v2494_v49 = vld [vmem:[%s3342_s0 + $0x500] ss:$16 sps:$4 sm:$0xff]  }
  0x6c   :  { %1503 = vmatprep.subr.bf16.mxu0 %v2412_v50  ;;  %1715 = vmatprep.subr.bf16.mxu1 %v2415_v51  ;;  %v2497_v50 = vld [vmem:[%s3342_s0 + $0x508] ss:$16 sps:$4 sm:$0xff]   ;;  %v2502_v51 = vld [vmem:[%s3342_s0 + $0x524] ss:$16 sps:$4 sm:$0xff]  }
  0x6f   :  { %1504 = vmatpush1.bf16.msra.mxu0 %v2410_v52  ;;  %1716 = vmatpush1.bf16.msra.mxu1 %v2413_v53  ;;  %v2505_v52 = vld [vmem:[%s3342_s0 + $0x52c] ss:$16 sps:$4 sm:$0xff]   ;;  %v2500_v53 = vld [vmem:[%s3342_s0 + $0x520] ss:$16 sps:$4 sm:$0xff]  }
  0x70   :  { %1505 = vmatprep.subr.bf16.mxu0 %v2418_v54  ;;  %1717 = vmatprep.subr.bf16.mxu1 %v2421_v55  ;;  %v2503_v54 = vld [vmem:[%s3342_s0 + $0x528] ss:$16 sps:$4 sm:$0xff]   ;;  %v2508_v55 = vld [vmem:[%s3342_s0 + $0x544] ss:$16 sps:$4 sm:$0xff]  }
  0x73   :  { %1506 = vmatpush1.bf16.msra.mxu0 %v2416_v56  ;;  %1718 = vmatpush1.bf16.msra.mxu1 %v2419_v57  ;;  %v2511_v56 = vld [vmem:[%s3342_s0 + $0x54c] ss:$16 sps:$4 sm:$0xff]   ;;  %v2506_v57 = vld [vmem:[%s3342_s0 + $0x540] ss:$16 sps:$4 sm:$0xff]  }
  0x74   :  { %1507 = vmatprep.subr.bf16.mxu0 %v2424_v58  ;;  %1719 = vmatprep.subr.bf16.mxu1 %v2427_v59  ;;  %v2509_v58 = vld [vmem:[%s3342_s0 + $0x548] ss:$16 sps:$4 sm:$0xff]   ;;  %v2514_v59 = vld [vmem:[%s3342_s0 + $0x564] ss:$16 sps:$4 sm:$0xff]  }
  0x77   :  { %1508 = vmatpush1.bf16.msra.mxu0 %v2422_v60  ;;  %1720 = vmatpush1.bf16.msra.mxu1 %v2425_v61  ;;  %v2517_v60 = vld [vmem:[%s3342_s0 + $0x56c] ss:$16 sps:$4 sm:$0xff]   ;;  %v2512_v61 = vld [vmem:[%s3342_s0 + $0x560] ss:$16 sps:$4 sm:$0xff]  }
  0x78   :  { %1509 = vmatprep.subr.bf16.mxu0 %v2432_v62  ;;  %1721 = vmatprep.subr.bf16.mxu1 %v2435_v63  ;;  %v2515_v62 = vld [vmem:[%s3342_s0 + $0x568] ss:$16 sps:$4 sm:$0xff]   ;;  %v2520_v63 = vld [vmem:[%s3342_s0 + $0x584] ss:$16 sps:$4 sm:$0xff]  }
  0x7b   :  { %1510 = vmatpush1.bf16.msra.mxu0 %v2430_v0  ;;  %1722 = vmatpush1.bf16.msra.mxu1 %v2433_v1  ;;  %v2523_v0 = vld [vmem:[%s3342_s0 + $0x58c] ss:$16 sps:$4 sm:$0xff]   ;;  %v2518_v1 = vld [vmem:[%s3342_s0 + $0x580] ss:$16 sps:$4 sm:$0xff]  }
  0x7c   :  { %1511 = vmatprep.subr.bf16.mxu0 %v2439_v2  ;;  %1723 = vmatprep.subr.bf16.mxu1 %v2442_v3  ;;  %v2521_v2 = vld [vmem:[%s3342_s0 + $0x588] ss:$16 sps:$4 sm:$0xff]   ;;  %v2526_v3 = vld [vmem:[%s3342_s0 + $0x5a4] ss:$16 sps:$4 sm:$0xff]  }
  0x7f   :  { %1512 = vmatpush1.bf16.msra.mxu0 %v2437_v4  ;;  %1724 = vmatpush1.bf16.msra.mxu1 %v2440_v5  ;;  %v2529_v4 = vld [vmem:[%s3342_s0 + $0x5ac] ss:$16 sps:$4 sm:$0xff]   ;;  %v2524_v5 = vld [vmem:[%s3342_s0 + $0x5a0] ss:$16 sps:$4 sm:$0xff]  }
  0x80   :  { %1534 = vmatprep.subr.bf16.mxu0 %v2448_v6  ;;  %1746 = vmatprep.subr.bf16.mxu1 %v2451_v7  ;;  %v2527_v6 = vld [vmem:[%s3342_s0 + $0x5a8] ss:$16 sps:$4 sm:$0xff]   ;;  %v2534_v7 = vld [vmem:[%s3342_s0 + $0x5c4] ss:$16 sps:$4 sm:$0xff]  }
  0x82   :  { %1514 = vmatmul.mubr.bf16.vlgmr.msra.gmra.mrb[0].mxu0 %v2443_v8  ;;  %1726 = vmatmul.mubr.bf16.vlgmr.msra.gmra.mrb[0].mxu1 %v2443_v8  ;;  %v2537_v8 = vld [vmem:[%s3342_s0 + $0x5cc] ss:$16 sps:$4 sm:$0xff]  }
  0x83   :  { %1535 = vmatpush1.bf16.msra.mxu0 %v2446_v9  ;;  %1747 = vmatpush1.bf16.msra.mxu1 %v2449_v10  ;;  %v2532_v9 = vld [vmem:[%s3342_s0 + $0x5c0] ss:$16 sps:$4 sm:$0xff]   ;;  %v2535_v10 = vld [vmem:[%s3342_s0 + $0x5c8] ss:$16 sps:$4 sm:$0xff]  }
  0x84   :  { %1536 = vmatprep.subr.bf16.mxu0 %v2454_v11  ;;  %1748 = vmatprep.subr.bf16.mxu1 %v2457_v12  ;;  %v2541_v11 = vld [vmem:[%s3342_s0 + $0x5e4] ss:$16 sps:$4 sm:$0xff]   ;;  %v2544_v12 = vld [vmem:[%s3342_s0 + $0x5ec] ss:$16 sps:$4 sm:$0xff]  }
  0x85   :  { %1523 = vmatprep.mubr.bf16.mxu0 %v2530_v13  ;;  %1735 = vmatprep.mubr.bf16.mxu1 %v2530_v13  ;;  %v2539_v13 = vld [vmem:[%s3342_s0 + $0x5e0] ss:$16 sps:$4 sm:$0xff]  }
  0x87   :  { %1537 = vmatpush1.bf16.msra.mxu0 %v2452_v14  ;;  %1749 = vmatpush1.bf16.msra.mxu1 %v2455_v15  ;;  %v2542_v14 = vld [vmem:[%s3342_s0 + $0x5e8] ss:$16 sps:$4 sm:$0xff]   ;;  %v2550_v15 = vld [vmem:[%s3342_s0 + $0x604] ss:$16 sps:$4 sm:$0xff]  }
  0x88   :  { %1538 = vmatprep.subr.bf16.mxu0 %v2460_v16  ;;  %1750 = vmatprep.subr.bf16.mxu1 %v2463_v17  ;;  %v2553_v16 = vld [vmem:[%s3342_s0 + $0x60c] ss:$16 sps:$4 sm:$0xff]  }
  0x89   :  { %v2545_v17 = vld [vmem:[%s3343_s1 + $0x10] ss:$28 sps:$4 sm:$0xff]  }
  0x8a   :  { %1524 = vmatmul.mubr.bf16.gmra.mrb[4].mxu0 %v2538_v20  ;;  %1736 = vmatmul.mubr.bf16.gmra.mrb[4].mxu1 %v2538_v20  ;;  %v2556_v20 = vld [vmem:[%s3342_s0 + $0x624] ss:$16 sps:$4 sm:$0xff]  }
  0x8b   :  { %1539 = vmatpush1.bf16.msra.mxu0 %v2458_v18  ;;  %1751 = vmatpush1.bf16.msra.mxu1 %v2461_v19  ;;  %v2548_v18 = vld [vmem:[%s3342_s0 + $0x600] ss:$16 sps:$4 sm:$0xff]   ;;  %v2551_v19 = vld [vmem:[%s3342_s0 + $0x608] ss:$16 sps:$4 sm:$0xff]  }
  0x8c   :  { %1540 = vmatprep.subr.bf16.mxu0 %v2466_v21  ;;  %1752 = vmatprep.subr.bf16.mxu1 %v2469_v22  ;;  %v2559_v21 = vld [vmem:[%s3342_s0 + $0x62c] ss:$16 sps:$4 sm:$0xff]  }
  0x8d   :  { %1566 = vmatprep.mubr.bf16.mxu0 %v2547_v23  ;;  %1778 = vmatprep.mubr.bf16.mxu1 %v2547_v23  ;;  %v2572_v22 = vld [vmem:[%s3343_s1 + $0x4c] ss:$28 sps:$4 sm:$0xff]   ;;  %v2554_v23 = vld [vmem:[%s3342_s0 + $0x620] ss:$16 sps:$4 sm:$0xff]  }
  0x8f   :  { %1541 = vmatpush1.bf16.msra.mxu0 %v2464_v24  ;;  %1753 = vmatpush1.bf16.msra.mxu1 %v2467_v25  ;;  %v2557_v24 = vld [vmem:[%s3342_s0 + $0x628] ss:$16 sps:$4 sm:$0xff]   ;;  %v2562_v25 = vld [vmem:[%s3342_s0 + $0x644] ss:$16 sps:$4 sm:$0xff]  }
  0x90   :  { %1542 = vmatprep.subr.bf16.mxu0 %v2472_v26  ;;  %1754 = vmatprep.subr.bf16.mxu1 %v2475_v27  ;;  %v2565_v26 = vld [vmem:[%s3342_s0 + $0x64c] ss:$16 sps:$4 sm:$0xff]   ;;  %v2574_v27 = vld [vmem:[%s3343_s1 + $0x48] ss:$28 sps:$4 sm:$0xff]  }
  0x93   :  { %1543 = vmatpush1.bf16.msra.mxu0 %v2470_v28  ;;  %1755 = vmatpush1.bf16.msra.mxu1 %v2473_v29  ;;  %v2560_v28 = vld [vmem:[%s3342_s0 + $0x640] ss:$16 sps:$4 sm:$0xff]   ;;  %v2563_v29 = vld [vmem:[%s3342_s0 + $0x648] ss:$16 sps:$4 sm:$0xff]  }
  0x94   :  { %1544 = vmatprep.subr.bf16.mxu0 %v2478_v30  ;;  %1756 = vmatprep.subr.bf16.mxu1 %v2481_v31  ;;  %v2568_v30 = vld [vmem:[%s3342_s0 + $0x664] ss:$16 sps:$4 sm:$0xff]   ;;  %v2571_v31 = vld [vmem:[%s3342_s0 + $0x66c] ss:$16 sps:$4 sm:$0xff]  }
  0x97   :  { %1545 = vmatpush1.bf16.msra.mxu0 %v2476_v32  ;;  %1757 = vmatpush1.bf16.msra.mxu1 %v2479_v33  ;;  %v2566_v32 = vld [vmem:[%s3342_s0 + $0x660] ss:$16 sps:$4 sm:$0xff]   ;;  %v2569_v33 = vld [vmem:[%s3342_s0 + $0x668] ss:$16 sps:$4 sm:$0xff]  }
  0x98   :  { %1546 = vmatprep.subr.bf16.mxu0 %v2484_v34  ;;  %1758 = vmatprep.subr.bf16.mxu1 %v2487_v36  ;;  %v2577_v34 = vld [vmem:[%s3342_s0 + $0x684] ss:$16 sps:$4 sm:$0xff]   ;;  %v2580_v36 = vld [vmem:[%s3342_s0 + $0x68c] ss:$16 sps:$4 sm:$0xff]  }
  0x9b   :  { %1547 = vmatpush1.bf16.msra.mxu0 %v2482_v37  ;;  %1759 = vmatpush1.bf16.msra.mxu1 %v2485_v38  ;;  %v2575_v37 = vld [vmem:[%s3342_s0 + $0x680] ss:$16 sps:$4 sm:$0xff]   ;;  %v2578_v38 = vld [vmem:[%s3342_s0 + $0x688] ss:$16 sps:$4 sm:$0xff]  }
  0x9c   :  { %1548 = vmatprep.subr.bf16.mxu0 %v2490_v39  ;;  %1760 = vmatprep.subr.bf16.mxu1 %v2493_v40  ;;  %v2583_v39 = vld [vmem:[%s3342_s0 + $0x6a4] ss:$16 sps:$4 sm:$0xff]   ;;  %v2586_v40 = vld [vmem:[%s3342_s0 + $0x6ac] ss:$16 sps:$4 sm:$0xff]  }
  0x9f   :  { %1549 = vmatpush1.bf16.msra.mxu0 %v2488_v43  ;;  %1761 = vmatpush1.bf16.msra.mxu1 %v2491_v44  ;;  %v2587_v43 = vld [vmem:[%s3343_s1 + $0x18] ss:$28 sps:$4 sm:$0xff]   ;;  %v2588_v44 = vld [vmem:[%s3343_s1 + $0x50] ss:$28 sps:$4 sm:$0xff]  }
  0xa0   :  { %1550 = vmatprep.subr.bf16.mxu0 %v2496_v47  ;;  %1762 = vmatprep.subr.bf16.mxu1 %v2499_v48 }
  0xa3   :  { %1551 = vmatpush1.bf16.msra.mxu0 %v2494_v49  ;;  %1763 = vmatpush1.bf16.msra.mxu1 %v2497_v50 }
  0xa4   :  { %1552 = vmatprep.subr.bf16.mxu0 %v2502_v51  ;;  %1764 = vmatprep.subr.bf16.mxu1 %v2505_v52 }
  0xa7   :  { %1553 = vmatpush1.bf16.msra.mxu0 %v2500_v53  ;;  %1765 = vmatpush1.bf16.msra.mxu1 %v2503_v54 }
  0xa8   :  { %1554 = vmatprep.subr.bf16.mxu0 %v2508_v55  ;;  %1766 = vmatprep.subr.bf16.mxu1 %v2511_v56 }
  0xab   :  { %1555 = vmatpush1.bf16.msra.mxu0 %v2506_v57  ;;  %1767 = vmatpush1.bf16.msra.mxu1 %v2509_v58 }
  0xac   :  { %1556 = vmatprep.subr.bf16.mxu0 %v2514_v59  ;;  %1768 = vmatprep.subr.bf16.mxu1 %v2517_v60 }
  0xaf   :  { %1557 = vmatpush1.bf16.msra.mxu0 %v2512_v61  ;;  %1769 = vmatpush1.bf16.msra.mxu1 %v2515_v62 }
  0xb0   :  { %1558 = vmatprep.subr.bf16.mxu0 %v2520_v63  ;;  %1770 = vmatprep.subr.bf16.mxu1 %v2523_v0 }
  0xb3   :  { %1559 = vmatpush1.bf16.msra.mxu0 %v2518_v1  ;;  %1771 = vmatpush1.bf16.msra.mxu1 %v2521_v2 }
  0xb4   :  { %1560 = vmatprep.subr.bf16.mxu0 %v2526_v3  ;;  %1772 = vmatprep.subr.bf16.mxu1 %v2529_v4 }
  0xb7   :  { %1561 = vmatpush1.bf16.msra.mxu0 %v2524_v5  ;;  %1773 = vmatpush1.bf16.msra.mxu1 %v2527_v6 }
  0xb8   :  { %1562 = vmatprep.subr.bf16.mxu0 %v2534_v7  ;;  %1774 = vmatprep.subr.bf16.mxu1 %v2537_v8 }
  0xbb   :  { %1563 = vmatpush1.bf16.msra.mxu0 %v2532_v9  ;;  %1775 = vmatpush1.bf16.msra.mxu1 %v2535_v10 }
  0xbc   :  { %1564 = vmatprep.subr.bf16.mxu0 %v2541_v11  ;;  %1776 = vmatprep.subr.bf16.mxu1 %v2544_v12 }
  0xbf   :  { %1565 = vmatpush1.bf16.msra.mxu0 %v2539_v13  ;;  %1777 = vmatpush1.bf16.msra.mxu1 %v2542_v14 }
  0xc0   :  { %1587 = vmatprep.subr.bf16.mxu0 %v2550_v15  ;;  %1799 = vmatprep.subr.bf16.mxu1 %v2553_v16 }
  0xc2   :  { %1567 = vmatmul.mubr.bf16.vlgmr.msra.gmra.mrb[0].mxu0 %v2545_v17  ;;  %1779 = vmatmul.mubr.bf16.vlgmr.msra.gmra.mrb[0].mxu1 %v2545_v17 }
  0xc3   :  { %1588 = vmatpush1.bf16.msra.mxu0 %v2548_v18  ;;  %1800 = vmatpush1.bf16.msra.mxu1 %v2551_v19 }
  0xc4   :  { %1589 = vmatprep.subr.bf16.mxu0 %v2556_v20  ;;  %1801 = vmatprep.subr.bf16.mxu1 %v2559_v21 }
  0xc5   :  { %1576 = vmatprep.mubr.bf16.mxu0 %v2572_v22  ;;  %1788 = vmatprep.mubr.bf16.mxu1 %v2572_v22 }
  0xc7   :  { %1590 = vmatpush1.bf16.msra.mxu0 %v2554_v23  ;;  %1802 = vmatpush1.bf16.msra.mxu1 %v2557_v24 }
  0xc8   :  { %1591 = vmatprep.subr.bf16.mxu0 %v2562_v25  ;;  %1803 = vmatprep.subr.bf16.mxu1 %v2565_v26 }
  0xca   :  { %1577 = vmatmul.mubr.bf16.gmra.mrb[4].mxu0 %v2574_v27  ;;  %1789 = vmatmul.mubr.bf16.gmra.mrb[4].mxu1 %v2574_v27 }
  0xcb   :  { %1592 = vmatpush1.bf16.msra.mxu0 %v2560_v28  ;;  %1804 = vmatpush1.bf16.msra.mxu1 %v2563_v29 }
  0xcc   :  { %1593 = vmatprep.subr.bf16.mxu0 %v2568_v30  ;;  %1805 = vmatprep.subr.bf16.mxu1 %v2571_v31 }
  0xcd   :  { %1619 = vmatprep.mubr.bf16.mxu0 %v2589_v35  ;;  %1831 = vmatprep.mubr.bf16.mxu1 %v2589_v35 }
  0xcf   :  { %1594 = vmatpush1.bf16.msra.mxu0 %v2566_v32  ;;  %1806 = vmatpush1.bf16.msra.mxu1 %v2569_v33 }
  0xd0   :  { %1595 = vmatprep.subr.bf16.mxu0 %v2577_v34  ;;  %1807 = vmatprep.subr.bf16.mxu1 %v2580_v36 }
  0xd3   :  { %1596 = vmatpush1.bf16.msra.mxu0 %v2575_v37  ;;  %1808 = vmatpush1.bf16.msra.mxu1 %v2578_v38 }
  0xd4   :  { %1597 = vmatprep.subr.bf16.mxu0 %v2583_v39  ;;  %1809 = vmatprep.subr.bf16.mxu1 %v2586_v40 }
  0xd7   :  { %1598 = vmatpush1.bf16.msra.mxu0 %v2581_v41  ;;  %1810 = vmatpush1.bf16.msra.mxu1 %v2584_v42 }
  0xda   :  { %2158 = vmatmul.mubr.msk.bf16.vlgmr.msra.gmra.mrb[0].mxu0 %vm1421_vm0, %v2587_v43  ;;  %2160 = vmatmul.mubr.msk.bf16.vlgmr.msra.gmra.mrb[0].mxu1 %vm1421_vm0, %v2587_v43 }
  0xdb   :  { %1629 = vmatprep.mubr.bf16.mxu0 %v2589_v35  ;;  %1841 = vmatprep.mubr.bf16.mxu1 %v2589_v35 }
  0xe2   :  { %2159 = vmatmul.mubr.msk.bf16.gmra.mrb[4].mxu0 %vm1421_vm0, %v2588_v44  ;;  %2161 = vmatmul.mubr.msk.bf16.gmra.mrb[4].mxu1 %vm1421_vm0, %v2588_v44 }
  0xe4   :  { %v254_v45 = vpop.permute.xlu0 %253  ;;  %v264_v47 = vpop.permute.xlu1 %263 }
  0xe8   :  { %v259_v46 = vpop.permute.xlu0 %258  ;;  %v269_v9 = vpop.permute.xlu1 %268 }
 0x1ad   :  { %v1621_v48 = vpop.f32.mrb[0].mxu0  ;;  %v1833_v49 = vpop.f32.mrb[0].mxu1 }
 0x1ae   :  { %v2178_v50 = vadd.f32 %v1621_v48, %v254_v45  ;;  %v2186_v51 = vadd.f32 %v1833_v49, %v254_v45  ;;  %v1623_v52 = vpop.f32.mrb[1].mxu0  ;;  %v1835_v53 = vpop.f32.mrb[1].mxu1 }
 0x1af   :  { %v2179_v54 = vadd.f32 %v1623_v52, %v254_v45  ;;  %v2187_v55 = vadd.f32 %v1835_v53, %v254_v45  ;;  %v1625_v56 = vpop.f32.mrb[2].mxu0  ;;  %v1837_v57 = vpop.f32.mrb[2].mxu1 }
 0x1b0   :  { %v1852_v35 = vmax.f32 %v2178_v50, 0.0  ;;  %v1854_v58 = vmax.f32 %v2186_v51, 0.0  ;;  %v2180_v59 = vadd.f32 %v1625_v56, %v259_v46  ;;  %v2188_v60 = vadd.f32 %v1837_v57, %v259_v46  ;;  %v1627_v61 = vpop.f32.mrb[3].mxu0  ;;  %v1839_v62 = vpop.f32.mrb[3].mxu1 }
 0x1b1   :  { %v1853_v63 = vmax.f32 %v2179_v54, 0.0  ;;  %v1855_v0 = vmax.f32 %v2187_v55, 0.0  ;;  %v2181_v1 = vadd.f32 %v1627_v61, %v259_v46  ;;  %v2189_v2 = vadd.f32 %v1839_v62, %v259_v46 }
 0x1b2   :  { %v1856_v3 = vmax.f32 %v2180_v59, 0.0  ;;  %v1858_v4 = vmax.f32 %v2188_v60, 0.0 }
 0x1b3   :  { %v2170_v5 = vpack.c.bf16 %v1853_v63, %v1852_v35  ;;  %v2171_v6 = vpack.c.bf16 %v1855_v0, %v1854_v58  ;;  %v1857_v7 = vmax.f32 %v2181_v1, 0.0  ;;  %v1859_v8 = vmax.f32 %v2189_v2, 0.0 }
 0x1b5   :  { %1916 = vst [vmem:[%s3345_s3] sm:$0xff] %v2170_v5  ;;  %1917 = vst [vmem:[%s3345_s3 + $0x8] sm:$0xff] %v2171_v6  ;;  %v2172_v10 = vpack.c.bf16 %v1857_v7, %v1856_v3  ;;  %v2173_v11 = vpack.c.bf16 %v1859_v8, %v1858_v4  ;;  %v1631_v12 = vpop.f32.mrb[4].mxu0  ;;  %v1843_v13 = vpop.f32.mrb[4].mxu1 }
 0x1b6   :  { %v2182_v14 = vadd.f32 %v1631_v12, %v264_v47  ;;  %v2190_v15 = vadd.f32 %v1843_v13, %v264_v47  ;;  %v1633_v16 = vpop.f32.mrb[5].mxu0  ;;  %v1845_v17 = vpop.f32.mrb[5].mxu1 }
 0x1b7   :  { %1918 = vst [vmem:[%s3345_s3 + $0x10] sm:$0xff] %v2172_v10  ;;  %1919 = vst [vmem:[%s3345_s3 + $0x18] sm:$0xff] %v2173_v11  ;;  %v2183_v18 = vadd.f32 %v1633_v16, %v264_v47  ;;  %v2191_v19 = vadd.f32 %v1845_v17, %v264_v47  ;;  %v1635_v20 = vpop.f32.mrb[6].mxu0  ;;  %v1847_v21 = vpop.f32.mrb[6].mxu1 }
 0x1b8   :  { %v1860_v22 = vmax.f32 %v2182_v14, 0.0  ;;  %v1862_v23 = vmax.f32 %v2190_v15, 0.0  ;;  %v2184_v24 = vadd.f32 %v1635_v20, %v269_v9  ;;  %v2192_v25 = vadd.f32 %v1847_v21, %v269_v9  ;;  %v1637_v26 = vpop.f32.mrb[7].mxu0  ;;  %v1849_v27 = vpop.f32.mrb[7].mxu1 }
 0x1b9   :  { %v1861_v28 = vmax.f32 %v2183_v18, 0.0  ;;  %v1863_v29 = vmax.f32 %v2191_v19, 0.0  ;;  %v2185_v30 = vadd.f32 %v1637_v26, %v269_v9  ;;  %v2193_v31 = vadd.f32 %v1849_v27, %v269_v9 }
 0x1ba   :  { %v1864_v32 = vmax.f32 %v2184_v24, 0.0  ;;  %v1866_v33 = vmax.f32 %v2192_v25, 0.0 }
 0x1bb   :  { %v2174_v34 = vpack.c.bf16 %v1861_v28, %v1860_v22  ;;  %v2175_v36 = vpack.c.bf16 %v1863_v29, %v1862_v23  ;;  %v1865_v37 = vmax.f32 %v2185_v30, 0.0  ;;  %v1867_v38 = vmax.f32 %v2193_v31, 0.0 }
 0x1bd   :  { %1920 = vst [vmem:[%s3345_s3 + $0x20] sm:$0xff] %v2174_v34  ;;  %1921 = vst [vmem:[%s3345_s3 + $0x28] sm:$0xff] %v2175_v36  ;;  %v2176_v39 = vpack.c.bf16 %v1865_v37, %v1864_v32  ;;  %v2177_v40 = vpack.c.bf16 %v1867_v38, %v1866_v33 }
 0x1bf   :  { %1922 = vst [vmem:[%s3345_s3 + $0x30] sm:$0xff] %v2176_v39  ;;  %1923 = vst [vmem:[%s3345_s3 + $0x38] sm:$0xff] %v2177_v40 }

</bundles_post_ra>
